<compile_context>
chip_gen: v5e
topology: v5e:2x2
jax: 0.10.0
libtpu: 0.0.40
codegen_flags: <defaults>
</compile_context>

<pallas_src>
import math

import jax
import jax.numpy as jnp
from jax.experimental import pallas as pl
from jax.experimental.pallas import tpu as pltpu

C1 = 16    # conv1 out-channels padded 10 -> 16  (p1 lane width = 12*C1 = 192)
C2 = 32    # conv2 out-channels padded 20 -> 32  (conv2 lane width per parity = 4*C2 = 128)
F1 = 64    # fc1 out-features padded 50 -> 64


# ----------------------------- fused Pallas kernel ---------------------------

def _fused_kernel(xk_ref, w1e_ref, w1o_ref, b1_ref, w2_ref, b2_ref,
                  wf1_ref, bf1_ref, wf2_ref, bf2_ref, o_ref):
    tb = o_ref.shape[0]

    # ---- conv1: two width-banded MXU matmuls; their elementwise max IS the 2x2
    #      max-pool over width.  xk rows = (q = out-row parity, ihp = pooled row, n),
    #      lanes = kh*28 + iw.  Reshape is a leading-dim merge (tb multiple of 16).
    xk = xk_ref[...].reshape(24 * tb, 140)                         # bf16
    y_e = jnp.dot(xk, w1e_ref[...], preferred_element_type=jnp.float32)
    y_o = jnp.dot(xk, w1o_ref[...], preferred_element_type=jnp.float32)
    y1 = jnp.maximum(jnp.maximum(y_e, y_o) + b1_ref[...], 0.0)     # (24*tb, 12*C1)
    y1 = y1.astype(jnp.bfloat16)

    # pool over output height = max of the two q blocks (whole-tile select, no relayout)
    y1 = y1.reshape(2, 12 * tb, 12 * C1)
    p1 = jnp.maximum(y1[0], y1[1])                                 # rows = (ihp, n)
    p1 = p1.reshape(12, tb, 12 * C1)                               # (12, tb, 192) bf16

    # ---- conv2: 5 accumulating width-banded matmuls over kh.  w2_ref[kh] columns
    #      [0:4*C2] are the even output columns, [4*C2:8*C2] the odd ones.
    z = jnp.dot(p1[0:8].reshape(8 * tb, 12 * C1), w2_ref[0],
                preferred_element_type=jnp.float32)                # (8*tb, 8*C2)
    for kh in range(1, 5):
        lhs = p1[kh:kh + 8].reshape(8 * tb, 12 * C1)
        z = z + jnp.dot(lhs, w2_ref[kh], preferred_element_type=jnp.float32)

    # TODO(synk): Dropout2d (training-mode channel masking) not implemented; eval identity.
    z_e = z[:, :4 * C2]                                            # lane-aligned halves
    z_o = z[:, 4 * C2:]
    y2 = jnp.maximum(jnp.maximum(z_e, z_o) + b2_ref[...], 0.0)     # width pool + relu
    y2 = y2.astype(jnp.bfloat16).reshape(8, tb, 4 * C2)            # rows were (oh2, n)

    # ---- 2x2 height pool folded into fc1: 4 accumulating (tb,128)@(128,F1) dots ------
    h1 = jnp.zeros((tb, F1), jnp.float32)
    for hp in range(4):
        f_hp = jnp.maximum(y2[2 * hp], y2[2 * hp + 1])             # (tb, 4*C2) bf16
        h1 = h1 + jnp.dot(f_hp, wf1_ref[hp], preferred_element_type=jnp.float32)
    h1 = jnp.maximum(h1 + bf1_ref[...], 0.0)                       # (tb, F1)
    # TODO(synk): F.dropout (training mode) not implemented; eval identity.

    # ---- fc2 + masked log_softmax over the 10 real classes ----------------------------
    logits = jnp.dot(h1.astype(jnp.bfloat16), wf2_ref[...],
                     preferred_element_type=jnp.float32) + bf2_ref[...]
    lane = jax.lax.broadcasted_iota(jnp.int32, logits.shape, 1)
    logits = jnp.where(lane < 10, logits, jnp.float32(-1e30))
    m = jnp.max(logits, axis=-1, keepdims=True)
    s = logits - m
    lse = jnp.log(jnp.sum(jnp.exp(s), axis=-1, keepdims=True))
    o_ref[...] = (s - lse).astype(o_ref.dtype)                     # (tb, 128) lane-dense


# --------------------------- weight packing (one-time) -----------------------

def init_params(key):
    """Raw PyTorch-layout params matching MnistConv._initialize_weights stats."""
    ks = jax.random.split(key, 4)
    w1 = jax.random.normal(ks[0], (10, 1, 5, 5), jnp.float32) * math.sqrt(2.0 / (10 * 25))
    w2 = jax.random.normal(ks[1], (20, 10, 5, 5), jnp.float32) * math.sqrt(2.0 / (20 * 25))
    wfc1 = jax.random.normal(ks[2], (50, 320), jnp.float32) * 0.01
    wfc2 = jax.random.normal(ks[3], (10, 50), jnp.float32) * 0.01
    z = lambda n: jnp.zeros((n,), jnp.float32)
    return {"w1": w1, "b1": z(10), "w2": w2, "b2": z(20),
            "wfc1": wfc1, "bfc1": z(50), "wfc2": wfc2, "bfc2": z(10)}


def pack_params(raw):
    """Repack torch-layout weights into lane-dense, minimally padded bf16 matrices."""
    w1, b1 = raw["w1"], raw["b1"]
    w2, b2 = raw["w2"], raw["b2"]
    wf1, bf1 = raw["wfc1"], raw["bfc1"]
    wf2, bf2 = raw["wfc2"], raw["bfc2"]

    # conv1 width-banded weights: W_s[kh*28 + iw, iwp*C1 + co] = w1[co,0,kh, iw-(2*iwp+s)]
    iw = jnp.arange(28)[:, None, None]
    owp = jnp.arange(12)[None, :, None]
    kw = jnp.arange(5)[None, None, :]
    w1v = w1[:, 0]                                                 # (co, kh, kw)

    def conv1_band(s):
        sel = (iw == 2 * owp + s + kw).astype(jnp.float32)         # (28, 12, 5)
        b = jnp.einsum('iok,chk->hioc', sel, w1v)                  # (kh, iw, iwp, co)
        b = jnp.pad(b, ((0, 0), (0, 0), (0, 0), (0, C1 - 10)))
        return b.reshape(140, 12 * C1).astype(jnp.bfloat16)

    w1e, w1o = conv1_band(0), conv1_band(1)
    b1p = jnp.tile(jnp.pad(b1, (0, C1 - 10)), 12).reshape(1, 12 * C1).astype(jnp.float32)

    # conv2 width-banded weights, one (12*C1, 8*C2) slab per kh:
    #   rows = iw*C1 + ci ; cols = s*4*C2 + owp*C2 + co  (s = output-column parity)
    iw2 = jnp.arange(12)[:, None, None]
    owp2 = jnp.arange(4)[None, :, None]
    kw2 = jnp.arange(5)[None, None, :]

    def conv2_band(s):
        sel = (iw2 == 2 * owp2 + s + kw2).astype(jnp.float32)      # (12, 4, 5)
        b = jnp.einsum('iok,dchk->hicod', sel, w2)                 # (kh, iw, ci, owp, co)
        b = jnp.pad(b, ((0, 0), (0, 0), (0, C1 - 10), (0, 0), (0, C2 - 20)))
        return b.reshape(5, 12 * C1, 4 * C2)

    w2p = jnp.concatenate([conv2_band(0), conv2_band(1)], axis=-1).astype(jnp.bfloat16)
    b2p = jnp.tile(jnp.pad(b2, (0, C2 - 20)), 4).reshape(1, 4 * C2).astype(jnp.float32)

    # fc1: fold the torch NCHW flatten order (c*16 + h*4 + w) into 4 per-hp slabs,
    #   rows = wp*C2 + c, cols = j (padded to F1).
    wf1r = jnp.transpose(wf1.reshape(50, 20, 4, 4), (2, 3, 1, 0))  # (hp, wp, c, j)
    wf1r = jnp.pad(wf1r, ((0, 0), (0, 0), (0, C2 - 20), (0, F1 - 50)))
    wf1p = wf1r.reshape(4, 4 * C2, F1).astype(jnp.bfloat16)
    bf1p = jnp.pad(bf1, (0, F1 - 50)).reshape(1, F1).astype(jnp.float32)

    wf2p = jnp.pad(wf2.T, ((0, F1 - 50), (0, 118))).astype(jnp.bfloat16)   # (F1, 128)
    bf2p = jnp.pad(bf2, (0, 118)).reshape(1, 128).astype(jnp.float32)

    return dict(w1e=w1e, w1o=w1o, b1=b1p, w2=w2p, b2=b2p,
                wf1=wf1p, bf1=bf1p, wf2=wf2p, bf2=bf2p)


# ------------------------------- forward wrapper ------------------------------

def _choose_tb(n):
    """Batch tile: large enough to amortize the ~0.35us/step grid overhead and fill the
    MXU M dim, small enough that realistic batches keep a >=2-step grid for v7x."""
    if n >= 128:
        return 64
    if n >= 64:
        return 32
    return 16


def mnist_conv_forward(x_nchw, packed):
    n = x_nchw.shape[0]
    tb = _choose_tb(n)
    npad = ((n + tb - 1) // tb) * tb

    x = x_nchw[:, 0].astype(jnp.bfloat16)                          # (N, 28, 28), Cin == 1
    if npad != n:
        x = jnp.pad(x, ((0, npad - n), (0, 0), (0, 0)))

    # conv1 im2col built once in XLA (cheap gather on a tiny tensor), rows ordered
    # (q, ihp, n) so all in-kernel pools / conv2 row slices are whole-tile selects:
    #   xk[q*12 + ihp, n, kh*28 + iw] = x[n, 2*ihp + q + kh, iw]
    rows = (2 * jnp.arange(12)[None, :, None]
            + jnp.arange(2)[:, None, None]
            + jnp.arange(5)[None, None, :])                        # (2, 12, 5), values 0..27
    xk = jnp.transpose(x[:, rows, :], (1, 2, 0, 3, 4)).reshape(24, npad, 140)

    cb2 = lambda i: (0, 0)
    cb3 = lambda i: (0, 0, 0)
    grid_spec = pltpu.PrefetchScalarGridSpec(
        num_scalar_prefetch=0,
        grid=(npad // tb,),
        in_specs=[
            pl.BlockSpec((24, tb, 140), lambda i: (0, i, 0)),      # conv1 im2col (bf16)
            pl.BlockSpec((140, 12 * C1), cb2),                     # conv1 band (even cols)
            pl.BlockSpec((140, 12 * C1), cb2),                     # conv1 band (odd cols)
            pl.BlockSpec((1, 12 * C1), cb2),                       # conv1 bias (tiled)
            pl.BlockSpec((5, 12 * C1, 8 * C2), cb3),               # conv2 banded weights
            pl.BlockSpec((1, 4 * C2), cb2),                        # conv2 bias (tiled)
            pl.BlockSpec((4, 4 * C2, F1), cb3),                    # fc1 per-hp slabs
            pl.BlockSpec((1, F1), cb2),                            # fc1 bias
            pl.BlockSpec((F1, 128), cb2),                          # fc2 weight
            pl.BlockSpec((1, 128), cb2),                           # fc2 bias
        ],
        out_specs=pl.BlockSpec((tb, 128), lambda i: (i, 0)),
    )
    out = pl.pallas_call(
        _fused_kernel,
        out_shape=jax.ShapeDtypeStruct((npad, 128), jnp.float32),
        grid_spec=grid_spec,
        compiler_params=pltpu.CompilerParams(
            dimension_semantics=("parallel",),
            vmem_limit_bytes=48 * 1024 * 1024,
        ),
    )(xk, packed["w1e"], packed["w1o"], packed["b1"], packed["w2"], packed["b2"],
      packed["wf1"], packed["bf1"], packed["wf2"], packed["bf2"])
    return out[:n, :10]


# ------------------------------ pure-JAX reference ----------------------------

def reference_forward(x_nchw, raw):
    dn = ("NCHW", "OIHW", "NCHW")
    y = jax.lax.conv_general_dilated(x_nchw, raw["w1"], (1, 1), "VALID",
                                     dimension_numbers=dn)
    y = y + raw["b1"][None, :, None, None]
    y = jax.lax.reduce_window(y, -jnp.inf, jax.lax.max, (1, 1, 2, 2), (1, 1, 2, 2), "VALID")
    y = jnp.maximum(y, 0.0)
    y = jax.lax.conv_general_dilated(y, raw["w2"], (1, 1), "VALID",
                                     dimension_numbers=dn)
    y = y + raw["b2"][None, :, None, None]
    y = jax.lax.reduce_window(y, -jnp.inf, jax.lax.max, (1, 1, 2, 2), (1, 1, 2, 2), "VALID")
    y = jnp.maximum(y, 0.0)
    y = y.reshape(y.shape[0], 320)
    y = jnp.maximum(y @ raw["wfc1"].T + raw["bfc1"], 0.0)
    y = y @ raw["wfc2"].T + raw["bfc2"]
    return jax.nn.log_softmax(y, axis=1)


if __name__ == "__main__":
    key = jax.random.PRNGKey(0)
    kp, kx = jax.random.split(key)
    raw = init_params(kp)
    packed = pack_params(raw)
    fwd = jax.jit(mnist_conv_forward)

    # MNIST-shaped NCHW input, batch = 2
    x = jax.random.normal(kx, (2, 1, 28, 28), jnp.float32)
    out = jax.block_until_ready(fwd(x, packed))
    assert out.shape == (2, 10)
    # rows are valid log-probabilities
    assert bool(jnp.allclose(jnp.sum(jnp.exp(out), axis=1), 1.0, atol=1e-3))
    # matches the pure-JAX f32 reference (bf16 matmul inputs -> loose tolerance)
    ref = reference_forward(x, raw)
    assert bool(jnp.allclose(out, ref, atol=5e-2)), (out, ref)

    # exercise the multi-step grid + batch-padding path as well
    x2 = jax.random.normal(jax.random.PRNGKey(1), (18, 1, 28, 28), jnp.float32)
    out2 = jax.block_until_ready(fwd(x2, packed))
    ref2 = reference_forward(x2, raw)
    assert out2.shape == (18, 10)
    assert bool(jnp.allclose(out2, ref2, atol=5e-2))

    print("KERNEL_OK")
</pallas_src>

<mosaic_0001>
module attributes {stable_mosaic.version = 11 : i64} {
  func.func @_fused_kernel(%arg0: i32, %arg1: memref<24x16x140xbf16, #tpu.memory_space<vmem>>, %arg2: memref<140x192xbf16, #tpu.memory_space<vmem>>, %arg3: memref<140x192xbf16, #tpu.memory_space<vmem>>, %arg4: memref<1x192xf32, #tpu.memory_space<vmem>>, %arg5: memref<5x192x256xbf16, #tpu.memory_space<vmem>>, %arg6: memref<1x128xf32, #tpu.memory_space<vmem>>, %arg7: memref<4x128x64xbf16, #tpu.memory_space<vmem>>, %arg8: memref<1x64xf32, #tpu.memory_space<vmem>>, %arg9: memref<64x128xbf16, #tpu.memory_space<vmem>>, %arg10: memref<1x128xf32, #tpu.memory_space<vmem>>, %arg11: memref<16x128xf32, #tpu.memory_space<vmem>>) attributes {dimension_semantics = [#tpu.dimension_semantics<parallel>], iteration_bounds = array<i64: 1>, scalar_prefetch = 0 : i64, scratch_operands = 0 : i64, tpu.core_type = #tpu.core_type<tc>, window_params = [{transform_indices = @transform_0, window_bounds = array<i64: 24, 16, 140>}, {pipeline_mode = #tpu.pipeline_mode<synchronous>, transform_indices = @transform_1, window_bounds = array<i64: 140, 192>}, {pipeline_mode = #tpu.pipeline_mode<synchronous>, transform_indices = @transform_2, window_bounds = array<i64: 140, 192>}, {pipeline_mode = #tpu.pipeline_mode<synchronous>, transform_indices = @transform_3, window_bounds = array<i64: 1, 192>}, {pipeline_mode = #tpu.pipeline_mode<synchronous>, transform_indices = @transform_4, window_bounds = array<i64: 5, 192, 256>}, {pipeline_mode = #tpu.pipeline_mode<synchronous>, transform_indices = @transform_5, window_bounds = array<i64: 1, 128>}, {pipeline_mode = #tpu.pipeline_mode<synchronous>, transform_indices = @transform_6, window_bounds = array<i64: 4, 128, 64>}, {pipeline_mode = #tpu.pipeline_mode<synchronous>, transform_indices = @transform_7, window_bounds = array<i64: 1, 64>}, {pipeline_mode = #tpu.pipeline_mode<synchronous>, transform_indices = @transform_8, window_bounds = array<i64: 64, 128>}, {pipeline_mode = #tpu.pipeline_mode<synchronous>, transform_indices = @transform_9, window_bounds = array<i64: 1, 128>}, {transform_indices = @transform_10, window_bounds = array<i64: 16, 128>}]} {
    %c0 = arith.constant 0 : index
    %c0_0 = arith.constant 0 : index
    %c0_1 = arith.constant 0 : index
    %0 = vector.load %arg1[%c0, %c0_0, %c0_1] : memref<24x16x140xbf16, #tpu.memory_space<vmem>>, vector<24x16x140xbf16>
    %1 = vector.shape_cast %0 : vector<24x16x140xbf16> to vector<384x140xbf16>
    %c0_2 = arith.constant 0 : index
    %c0_3 = arith.constant 0 : index
    %2 = vector.load %arg2[%c0_2, %c0_3] : memref<140x192xbf16, #tpu.memory_space<vmem>>, vector<140x192xbf16>
    %cst = arith.constant dense<0.000000e+00> : vector<384x192xf32>
    %3 = tpu.matmul %1, %2, %cst {dimension_numbers = #tpu.dot_dimension_numbers<[1], [0], [0], [1], [0, 0, 1, 1], [], []>} : vector<384x140xbf16>, vector<140x192xbf16>, vector<384x192xf32> -> vector<384x192xf32>
    %c0_4 = arith.constant 0 : index
    %c0_5 = arith.constant 0 : index
    %4 = vector.load %arg3[%c0_4, %c0_5] : memref<140x192xbf16, #tpu.memory_space<vmem>>, vector<140x192xbf16>
    %cst_6 = arith.constant dense<0.000000e+00> : vector<384x192xf32>
    %5 = tpu.matmul %1, %4, %cst_6 {dimension_numbers = #tpu.dot_dimension_numbers<[1], [0], [0], [1], [0, 0, 1, 1], [], []>} : vector<384x140xbf16>, vector<140x192xbf16>, vector<384x192xf32> -> vector<384x192xf32>
    %6 = arith.maximumf %3, %5 : vector<384x192xf32>
    %c0_7 = arith.constant 0 : index
    %c0_8 = arith.constant 0 : index
    %7 = vector.load %arg4[%c0_7, %c0_8] : memref<1x192xf32, #tpu.memory_space<vmem>>, vector<1x192xf32>
    %8 = vector.broadcast %7 : vector<1x192xf32> to vector<384x192xf32>
    %9 = arith.addf %6, %8 : vector<384x192xf32>
    %cst_9 = arith.constant 0.000000e+00 : f32
    %10 = vector.broadcast %cst_9 : f32 to vector<384x192xf32>
    %11 = arith.maximumf %9, %10 : vector<384x192xf32>
    %12 = arith.truncf %11 : vector<384x192xf32> to vector<384x192xbf16>
    %13 = vector.shape_cast %12 : vector<384x192xbf16> to vector<2x192x192xbf16>
    %14 = vector.extract_strided_slice %13 {offsets = [0, 0, 0], sizes = [1, 192, 192], strides = [1, 1, 1]} : vector<2x192x192xbf16> to vector<1x192x192xbf16>
    %15 = vector.shape_cast %14 : vector<1x192x192xbf16> to vector<192x192xbf16>
    %16 = vector.extract_strided_slice %13 {offsets = [1, 0, 0], sizes = [1, 192, 192], strides = [1, 1, 1]} : vector<2x192x192xbf16> to vector<1x192x192xbf16>
    %17 = vector.shape_cast %16 : vector<1x192x192xbf16> to vector<192x192xbf16>
    %18 = arith.maximumf %15, %17 : vector<192x192xbf16>
    %19 = vector.shape_cast %18 : vector<192x192xbf16> to vector<12x16x192xbf16>
    %20 = vector.extract_strided_slice %19 {offsets = [0, 0, 0], sizes = [8, 16, 192], strides = [1, 1, 1]} : vector<12x16x192xbf16> to vector<8x16x192xbf16>
    %21 = vector.shape_cast %20 : vector<8x16x192xbf16> to vector<128x192xbf16>
    %c0_10 = arith.constant 0 : index
    %c0_11 = arith.constant 0 : index
    %c0_12 = arith.constant 0 : index
    %22 = vector.load %arg5[%c0_10, %c0_11, %c0_12] : memref<5x192x256xbf16, #tpu.memory_space<vmem>>, vector<1x192x256xbf16>
    %23 = vector.shape_cast %22 : vector<1x192x256xbf16> to vector<192x256xbf16>
    %cst_13 = arith.constant dense<0.000000e+00> : vector<128x256xf32>
    %24 = tpu.matmul %21, %23, %cst_13 {dimension_numbers = #tpu.dot_dimension_numbers<[1], [0], [0], [1], [0, 0, 1, 1], [], []>} : vector<128x192xbf16>, vector<192x256xbf16>, vector<128x256xf32> -> vector<128x256xf32>
    %25 = vector.extract_strided_slice %19 {offsets = [1, 0, 0], sizes = [8, 16, 192], strides = [1, 1, 1]} : vector<12x16x192xbf16> to vector<8x16x192xbf16>
    %26 = vector.shape_cast %25 : vector<8x16x192xbf16> to vector<128x192xbf16>
    %c1 = arith.constant 1 : index
    %c0_14 = arith.constant 0 : index
    %c0_15 = arith.constant 0 : index
    %27 = vector.load %arg5[%c1, %c0_14, %c0_15] : memref<5x192x256xbf16, #tpu.memory_space<vmem>>, vector<1x192x256xbf16>
    %28 = vector.shape_cast %27 : vector<1x192x256xbf16> to vector<192x256xbf16>
    %cst_16 = arith.constant dense<0.000000e+00> : vector<128x256xf32>
    %29 = tpu.matmul %26, %28, %cst_16 {dimension_numbers = #tpu.dot_dimension_numbers<[1], [0], [0], [1], [0, 0, 1, 1], [], []>} : vector<128x192xbf16>, vector<192x256xbf16>, vector<128x256xf32> -> vector<128x256xf32>
    %30 = arith.addf %24, %29 : vector<128x256xf32>
    %31 = vector.extract_strided_slice %19 {offsets = [2, 0, 0], sizes = [8, 16, 192], strides = [1, 1, 1]} : vector<12x16x192xbf16> to vector<8x16x192xbf16>
    %32 = vector.shape_cast %31 : vector<8x16x192xbf16> to vector<128x192xbf16>
    %c2 = arith.constant 2 : index
    %c0_17 = arith.constant 0 : index
    %c0_18 = arith.constant 0 : index
    %33 = vector.load %arg5[%c2, %c0_17, %c0_18] : memref<5x192x256xbf16, #tpu.memory_space<vmem>>, vector<1x192x256xbf16>
    %34 = vector.shape_cast %33 : vector<1x192x256xbf16> to vector<192x256xbf16>
    %cst_19 = arith.constant dense<0.000000e+00> : vector<128x256xf32>
    %35 = tpu.matmul %32, %34, %cst_19 {dimension_numbers = #tpu.dot_dimension_numbers<[1], [0], [0], [1], [0, 0, 1, 1], [], []>} : vector<128x192xbf16>, vector<192x256xbf16>, vector<128x256xf32> -> vector<128x256xf32>
    %36 = arith.addf %30, %35 : vector<128x256xf32>
    %37 = vector.extract_strided_slice %19 {offsets = [3, 0, 0], sizes = [8, 16, 192], strides = [1, 1, 1]} : vector<12x16x192xbf16> to vector<8x16x192xbf16>
    %38 = vector.shape_cast %37 : vector<8x16x192xbf16> to vector<128x192xbf16>
    %c3 = arith.constant 3 : index
    %c0_20 = arith.constant 0 : index
    %c0_21 = arith.constant 0 : index
    %39 = vector.load %arg5[%c3, %c0_20, %c0_21] : memref<5x192x256xbf16, #tpu.memory_space<vmem>>, vector<1x192x256xbf16>
    %40 = vector.shape_cast %39 : vector<1x192x256xbf16> to vector<192x256xbf16>
    %cst_22 = arith.constant dense<0.000000e+00> : vector<128x256xf32>
    %41 = tpu.matmul %38, %40, %cst_22 {dimension_numbers = #tpu.dot_dimension_numbers<[1], [0], [0], [1], [0, 0, 1, 1], [], []>} : vector<128x192xbf16>, vector<192x256xbf16>, vector<128x256xf32> -> vector<128x256xf32>
    %42 = arith.addf %36, %41 : vector<128x256xf32>
    %43 = vector.extract_strided_slice %19 {offsets = [4, 0, 0], sizes = [8, 16, 192], strides = [1, 1, 1]} : vector<12x16x192xbf16> to vector<8x16x192xbf16>
    %44 = vector.shape_cast %43 : vector<8x16x192xbf16> to vector<128x192xbf16>
    %c4 = arith.constant 4 : index
    %c0_23 = arith.constant 0 : index
    %c0_24 = arith.constant 0 : index
    %45 = vector.load %arg5[%c4, %c0_23, %c0_24] : memref<5x192x256xbf16, #tpu.memory_space<vmem>>, vector<1x192x256xbf16>
    %46 = vector.shape_cast %45 : vector<1x192x256xbf16> to vector<192x256xbf16>
    %cst_25 = arith.constant dense<0.000000e+00> : vector<128x256xf32>
    %47 = tpu.matmul %44, %46, %cst_25 {dimension_numbers = #tpu.dot_dimension_numbers<[1], [0], [0], [1], [0, 0, 1, 1], [], []>} : vector<128x192xbf16>, vector<192x256xbf16>, vector<128x256xf32> -> vector<128x256xf32>
    %48 = arith.addf %42, %47 : vector<128x256xf32>
    %49 = vector.extract_strided_slice %48 {offsets = [0, 0], sizes = [128, 128], strides = [1, 1]} : vector<128x256xf32> to vector<128x128xf32>
    %50 = vector.extract_strided_slice %48 {offsets = [0, 128], sizes = [128, 128], strides = [1, 1]} : vector<128x256xf32> to vector<128x128xf32>
    %51 = arith.maximumf %49, %50 : vector<128x128xf32>
    %c0_26 = arith.constant 0 : index
    %c0_27 = arith.constant 0 : index
    %52 = vector.load %arg6[%c0_26, %c0_27] : memref<1x128xf32, #tpu.memory_space<vmem>>, vector<1x128xf32>
    %53 = vector.broadcast %52 : vector<1x128xf32> to vector<128x128xf32>
    %54 = arith.addf %51, %53 : vector<128x128xf32>
    %cst_28 = arith.constant 0.000000e+00 : f32
    %55 = vector.broadcast %cst_28 : f32 to vector<128x128xf32>
    %56 = arith.maximumf %54, %55 : vector<128x128xf32>
    %57 = arith.truncf %56 : vector<128x128xf32> to vector<128x128xbf16>
    %58 = vector.shape_cast %57 : vector<128x128xbf16> to vector<8x16x128xbf16>
    %cst_29 = arith.constant 0.000000e+00 : f32
    %59 = vector.broadcast %cst_29 : f32 to vector<16x64xf32>
    %60 = vector.extract_strided_slice %58 {offsets = [0, 0, 0], sizes = [1, 16, 128], strides = [1, 1, 1]} : vector<8x16x128xbf16> to vector<1x16x128xbf16>
    %61 = vector.shape_cast %60 : vector<1x16x128xbf16> to vector<16x128xbf16>
    %62 = vector.extract_strided_slice %58 {offsets = [1, 0, 0], sizes = [1, 16, 128], strides = [1, 1, 1]} : vector<8x16x128xbf16> to vector<1x16x128xbf16>
    %63 = vector.shape_cast %62 : vector<1x16x128xbf16> to vector<16x128xbf16>
    %64 = arith.maximumf %61, %63 : vector<16x128xbf16>
    %c0_30 = arith.constant 0 : index
    %c0_31 = arith.constant 0 : index
    %c0_32 = arith.constant 0 : index
    %65 = vector.load %arg7[%c0_30, %c0_31, %c0_32] : memref<4x128x64xbf16, #tpu.memory_space<vmem>>, vector<1x128x64xbf16>
    %66 = vector.shape_cast %65 : vector<1x128x64xbf16> to vector<128x64xbf16>
    %cst_33 = arith.constant dense<0.000000e+00> : vector<16x64xf32>
    %67 = tpu.matmul %64, %66, %cst_33 {dimension_numbers = #tpu.dot_dimension_numbers<[1], [0], [0], [1], [0, 0, 1, 1], [], []>} : vector<16x128xbf16>, vector<128x64xbf16>, vector<16x64xf32> -> vector<16x64xf32>
    %68 = arith.addf %59, %67 : vector<16x64xf32>
    %69 = vector.extract_strided_slice %58 {offsets = [2, 0, 0], sizes = [1, 16, 128], strides = [1, 1, 1]} : vector<8x16x128xbf16> to vector<1x16x128xbf16>
    %70 = vector.shape_cast %69 : vector<1x16x128xbf16> to vector<16x128xbf16>
    %71 = vector.extract_strided_slice %58 {offsets = [3, 0, 0], sizes = [1, 16, 128], strides = [1, 1, 1]} : vector<8x16x128xbf16> to vector<1x16x128xbf16>
    %72 = vector.shape_cast %71 : vector<1x16x128xbf16> to vector<16x128xbf16>
    %73 = arith.maximumf %70, %72 : vector<16x128xbf16>
    %c1_34 = arith.constant 1 : index
    %c0_35 = arith.constant 0 : index
    %c0_36 = arith.constant 0 : index
    %74 = vector.load %arg7[%c1_34, %c0_35, %c0_36] : memref<4x128x64xbf16, #tpu.memory_space<vmem>>, vector<1x128x64xbf16>
    %75 = vector.shape_cast %74 : vector<1x128x64xbf16> to vector<128x64xbf16>
    %cst_37 = arith.constant dense<0.000000e+00> : vector<16x64xf32>
    %76 = tpu.matmul %73, %75, %cst_37 {dimension_numbers = #tpu.dot_dimension_numbers<[1], [0], [0], [1], [0, 0, 1, 1], [], []>} : vector<16x128xbf16>, vector<128x64xbf16>, vector<16x64xf32> -> vector<16x64xf32>
    %77 = arith.addf %68, %76 : vector<16x64xf32>
    %78 = vector.extract_strided_slice %58 {offsets = [4, 0, 0], sizes = [1, 16, 128], strides = [1, 1, 1]} : vector<8x16x128xbf16> to vector<1x16x128xbf16>
    %79 = vector.shape_cast %78 : vector<1x16x128xbf16> to vector<16x128xbf16>
    %80 = vector.extract_strided_slice %58 {offsets = [5, 0, 0], sizes = [1, 16, 128], strides = [1, 1, 1]} : vector<8x16x128xbf16> to vector<1x16x128xbf16>
    %81 = vector.shape_cast %80 : vector<1x16x128xbf16> to vector<16x128xbf16>
    %82 = arith.maximumf %79, %81 : vector<16x128xbf16>
    %c2_38 = arith.constant 2 : index
    %c0_39 = arith.constant 0 : index
    %c0_40 = arith.constant 0 : index
    %83 = vector.load %arg7[%c2_38, %c0_39, %c0_40] : memref<4x128x64xbf16, #tpu.memory_space<vmem>>, vector<1x128x64xbf16>
    %84 = vector.shape_cast %83 : vector<1x128x64xbf16> to vector<128x64xbf16>
    %cst_41 = arith.constant dense<0.000000e+00> : vector<16x64xf32>
    %85 = tpu.matmul %82, %84, %cst_41 {dimension_numbers = #tpu.dot_dimension_numbers<[1], [0], [0], [1], [0, 0, 1, 1], [], []>} : vector<16x128xbf16>, vector<128x64xbf16>, vector<16x64xf32> -> vector<16x64xf32>
    %86 = arith.addf %77, %85 : vector<16x64xf32>
    %87 = vector.extract_strided_slice %58 {offsets = [6, 0, 0], sizes = [1, 16, 128], strides = [1, 1, 1]} : vector<8x16x128xbf16> to vector<1x16x128xbf16>
    %88 = vector.shape_cast %87 : vector<1x16x128xbf16> to vector<16x128xbf16>
    %89 = vector.extract_strided_slice %58 {offsets = [7, 0, 0], sizes = [1, 16, 128], strides = [1, 1, 1]} : vector<8x16x128xbf16> to vector<1x16x128xbf16>
    %90 = vector.shape_cast %89 : vector<1x16x128xbf16> to vector<16x128xbf16>
    %91 = arith.maximumf %88, %90 : vector<16x128xbf16>
    %c3_42 = arith.constant 3 : index
    %c0_43 = arith.constant 0 : index
    %c0_44 = arith.constant 0 : index
    %92 = vector.load %arg7[%c3_42, %c0_43, %c0_44] : memref<4x128x64xbf16, #tpu.memory_space<vmem>>, vector<1x128x64xbf16>
    %93 = vector.shape_cast %92 : vector<1x128x64xbf16> to vector<128x64xbf16>
    %cst_45 = arith.constant dense<0.000000e+00> : vector<16x64xf32>
    %94 = tpu.matmul %91, %93, %cst_45 {dimension_numbers = #tpu.dot_dimension_numbers<[1], [0], [0], [1], [0, 0, 1, 1], [], []>} : vector<16x128xbf16>, vector<128x64xbf16>, vector<16x64xf32> -> vector<16x64xf32>
    %95 = arith.addf %86, %94 : vector<16x64xf32>
    %c0_46 = arith.constant 0 : index
    %c0_47 = arith.constant 0 : index
    %96 = vector.load %arg8[%c0_46, %c0_47] : memref<1x64xf32, #tpu.memory_space<vmem>>, vector<1x64xf32>
    %97 = vector.broadcast %96 : vector<1x64xf32> to vector<16x64xf32>
    %98 = arith.addf %95, %97 : vector<16x64xf32>
    %cst_48 = arith.constant 0.000000e+00 : f32
    %99 = vector.broadcast %cst_48 : f32 to vector<16x64xf32>
    %100 = arith.maximumf %98, %99 : vector<16x64xf32>
    %101 = arith.truncf %100 : vector<16x64xf32> to vector<16x64xbf16>
    %c0_49 = arith.constant 0 : index
    %c0_50 = arith.constant 0 : index
    %102 = vector.load %arg9[%c0_49, %c0_50] : memref<64x128xbf16, #tpu.memory_space<vmem>>, vector<64x128xbf16>
    %cst_51 = arith.constant dense<0.000000e+00> : vector<16x128xf32>
    %103 = tpu.matmul %101, %102, %cst_51 {dimension_numbers = #tpu.dot_dimension_numbers<[1], [0], [0], [1], [0, 0, 1, 1], [], []>} : vector<16x64xbf16>, vector<64x128xbf16>, vector<16x128xf32> -> vector<16x128xf32>
    %c0_52 = arith.constant 0 : index
    %c0_53 = arith.constant 0 : index
    %104 = vector.load %arg10[%c0_52, %c0_53] : memref<1x128xf32, #tpu.memory_space<vmem>>, vector<1x128xf32>
    %105 = vector.broadcast %104 : vector<1x128xf32> to vector<16x128xf32>
    %106 = arith.addf %103, %105 : vector<16x128xf32>
    %107 = tpu.iota {dimensions = array<i32: 1>} : vector<16x128xi32>
    %c10_i32 = arith.constant 10 : i32
    %108 = vector.broadcast %c10_i32 : i32 to vector<16x128xi32>
    %109 = arith.cmpi slt, %107, %108 : vector<16x128xi32>
    %cst_54 = arith.constant -1.000000e+30 : f32
    %110 = vector.broadcast %cst_54 : f32 to vector<16x128xf32>
    %111 = arith.select %109, %106, %110 : vector<16x128xi1>, vector<16x128xf32>
    %cst_55 = arith.constant dense<0xFF800000> : vector<16xf32>
    %112 = vector.multi_reduction <maximumf>, %111, %cst_55 [1] : vector<16x128xf32> to vector<16xf32>
    %113 = vector.shape_cast %112 : vector<16xf32> to vector<16x1xf32>
    %114 = vector.broadcast %113 : vector<16x1xf32> to vector<16x128xf32>
    %115 = arith.subf %111, %114 : vector<16x128xf32>
    %116 = math.exp %115 : vector<16x128xf32>
    %cst_56 = arith.constant dense<0.000000e+00> : vector<16xf32>
    %117 = vector.multi_reduction <add>, %116, %cst_56 [1] : vector<16x128xf32> to vector<16xf32>
    %118 = vector.shape_cast %117 : vector<16xf32> to vector<16x1xf32>
    %119 = math.log %118 : vector<16x1xf32>
    %120 = vector.broadcast %119 : vector<16x1xf32> to vector<16x128xf32>
    %121 = arith.subf %115, %120 : vector<16x128xf32>
    %c0_57 = arith.constant 0 : index
    %c0_58 = arith.constant 0 : index
    %122 = vector.load %arg11[%c0_57, %c0_58] : memref<16x128xf32, #tpu.memory_space<vmem>>, vector<16x128xf32>
    tpu.vector_store %arg11[%c0_57, %c0_58], %121 {strides = array<i32>} : memref<16x128xf32, #tpu.memory_space<vmem>>, vector<16x128xf32>,
    return
  }
  func.func @transform_0(%arg0: i32) -> (i32, i32, i32) {
    %c0_i32 = arith.constant 0 : i32
    %c0_i32_0 = arith.constant 0 : i32
    %c0_i32_1 = arith.constant 0 : i32
    return %c0_i32, %arg0, %c0_i32_0 : i32, i32, i32
  }
  func.func @transform_1(%arg0: i32) -> (i32, i32) {
    %c0_i32 = arith.constant 0 : i32
    %c0_i32_0 = arith.constant 0 : i32
    %c0_i32_1 = arith.constant 0 : i32
    return %c0_i32, %c0_i32_0 : i32, i32
  }
  func.func @transform_2(%arg0: i32) -> (i32, i32) {
    %c0_i32 = arith.constant 0 : i32
    %c0_i32_0 = arith.constant 0 : i32
    %c0_i32_1 = arith.constant 0 : i32
    return %c0_i32, %c0_i32_0 : i32, i32
  }
  func.func @transform_3(%arg0: i32) -> (i32, i32) {
    %c0_i32 = arith.constant 0 : i32
    %c0_i32_0 = arith.constant 0 : i32
    %c0_i32_1 = arith.constant 0 : i32
    return %c0_i32, %c0_i32_0 : i32, i32
  }
  func.func @transform_4(%arg0: i32) -> (i32, i32, i32) {
    %c0_i32 = arith.constant 0 : i32
    %c0_i32_0 = arith.constant 0 : i32
    %c0_i32_1 = arith.constant 0 : i32
    %c0_i32_2 = arith.constant 0 : i32
    return %c0_i32, %c0_i32_0, %c0_i32_1 : i32, i32, i32
  }
  func.func @transform_5(%arg0: i32) -> (i32, i32) {
    %c0_i32 = arith.constant 0 : i32
    %c0_i32_0 = arith.constant 0 : i32
    %c0_i32_1 = arith.constant 0 : i32
    return %c0_i32, %c0_i32_0 : i32, i32
  }
  func.func @transform_6(%arg0: i32) -> (i32, i32, i32) {
    %c0_i32 = arith.constant 0 : i32
    %c0_i32_0 = arith.constant 0 : i32
    %c0_i32_1 = arith.constant 0 : i32
    %c0_i32_2 = arith.constant 0 : i32
    return %c0_i32, %c0_i32_0, %c0_i32_1 : i32, i32, i32
  }
  func.func @transform_7(%arg0: i32) -> (i32, i32) {
    %c0_i32 = arith.constant 0 : i32
    %c0_i32_0 = arith.constant 0 : i32
    %c0_i32_1 = arith.constant 0 : i32
    return %c0_i32, %c0_i32_0 : i32, i32
  }
  func.func @transform_8(%arg0: i32) -> (i32, i32) {
    %c0_i32 = arith.constant 0 : i32
    %c0_i32_0 = arith.constant 0 : i32
    %c0_i32_1 = arith.constant 0 : i32
    return %c0_i32, %c0_i32_0 : i32, i32
  }
  func.func @transform_9(%arg0: i32) -> (i32, i32) {
    %c0_i32 = arith.constant 0 : i32
    %c0_i32_0 = arith.constant 0 : i32
    %c0_i32_1 = arith.constant 0 : i32
    return %c0_i32, %c0_i32_0 : i32, i32
  }
  func.func @transform_10(%arg0: i32) -> (i32, i32) {
    %c0_i32 = arith.constant 0 : i32
    %c0_i32_0 = arith.constant 0 : i32
    return %arg0, %c0_i32 : i32, i32
  }
}

</mosaic_0001>

<bundles_post_ra>
// kernel: mnist_conv_forward.1
= control target key start
LH: loop header
LB: loop body
LE: loop exit
PB: predicated region body
PF: predicated region fallthrough
CT: control target
= control target key end

     0   :  { %vm479_vm0 = vcmask 1045504   ;;  %vm406_vm1 = vcmask 97280   ;;  %vm2381_vm2 = vcmask 523264   ;;  %s9363_s1 = inlined_call_operand.vmem [shape: bf16[140,192], index: 1, kind: input, shape index: {}]   ;;  %s9364_s0 = inlined_call_operand.vmem [shape: bf16[24,16,140], index: 0, kind: input, shape index: {}]   ;;  %s9365_s2 = inlined_call_operand.vmem [shape: bf16[140,192], index: 2, kind: input, shape index: {}]   ;;  %s9366_s4 = inlined_call_operand.vmem [shape: bf16[5,192,256], index: 4, kind: input, shape index: {}]   ;;  %s9367_s3 = inlined_call_operand.vmem [shape: f32[1,192], index: 3, kind: input, shape index: {}]   ;;  %s9368_s5 = inlined_call_operand.vmem [shape: f32[1,128], index: 5, kind: input, shape index: {}]   ;;  %s9369_s6 = inlined_call_operand.vmem [shape: bf16[4,128,64], index: 6, kind: input, shape index: {}]   ;;  %s9370_s7 = inlined_call_operand.vmem [shape: f32[1,64], index: 7, kind: input, shape index: {}]   ;;  %s9371_s9 = inlined_call_operand.vmem [shape: f32[1,128], index: 9, kind: input, shape index: {}]   ;;  %s9372_s8 = inlined_call_operand.vmem [shape: bf16[64,128], index: 8, kind: input, shape index: {}]   ;;  %s9373_s10 = inlined_call_operand.vmem [shape: f32[16,128], index: 10, kind: output, shape index: {}]  }
   0x1   :  { %v4843_v0 = vld [vmem:[%s9363_s1 + $0x70] sm:$0xf]  ;;  %v5937_v1 = vld [vmem:[%s9363_s1 + $0x74] sm:$0xf0]  ;;  %v5936_v2 = vld [vmem:[%s9363_s1 + $0x74] sm:$0xf] }
   0x2   :  { %v4844_v3 = vor.u32 %v5937_v1, %v4843_v0  ;;  %v4845_v4 = vld [vmem:[%s9363_s1 + $0x78] sm:$0xf0]  ;;  %v5938_v5 = vld [vmem:[%s9363_s1 + $0x84] sm:$0xf]  ;;  %v4853_v6 = vld [vmem:[%s9363_s1 + $0x88] sm:$0x30] }
   0x3   :  { %v4848_v7 = vor.u32 %v5936_v2, %v4845_v4  ;;  %v4856_v8 = vor.u32 %v5938_v5, %v4853_v6  ;;  %v4835_v9 = vld [vmem:[%s9363_s1 + $0x60] sm:$0xf]  ;;  %v5935_v10 = vld [vmem:[%s9363_s1 + $0x64] sm:$0xf0]  ;;  %v5934_v11 = vld [vmem:[%s9363_s1 + $0x64] sm:$0xf] }
   0x4   :  { %486 = vmatpush.bf16.msra.mxu0 %v4844_v3  ;;  %v4836_v12 = vor.u32 %v5935_v10, %v4835_v9  ;;  %v4837_v13 = vld [vmem:[%s9363_s1 + $0x68] sm:$0xf0]  ;;  %v5874_v14 = vld [vmem:[%s9364_s0 + $0x4] sm:$0xf]  ;;  %v4851_v19 = vld [vmem:[%s9363_s1 + $0x80] sm:$0xf] }
   0x5   :  { %v4597_v15 = vld [vmem:[%s9364_s0 + $0x8] sm:$0xf0]  ;;  %744 = vmatpush.bf16.msra.mxu2 %v4848_v7  ;;  %v484_v16 = vsel %vm479_vm0, %v4856_v8, 0  ;;  %v4840_v17 = vor.u32 %v5934_v11, %v4837_v13  ;;  %v5939_v20 = vld [vmem:[%s9363_s1 + $0x84] sm:$0x30] }
   0x6   :  { %v6217_v18 = vor.u32 %v5874_v14, %v4597_v15  ;;  %880 = vmatpush.bf16.msra.mxu3 %v484_v16  ;;  %v4852_v21 = vor.u32 %v5939_v20, %v4851_v19  ;;  %v4827_v22 = vld [vmem:[%s9363_s1 + $0x50] sm:$0xf]  ;;  %v5933_v23 = vld [vmem:[%s9363_s1 + $0x54] sm:$0xf0]  ;;  %v5932_v24 = vld [vmem:[%s9363_s1 + $0x54] sm:$0xf] }
   0x7   :  { %v4829_v25 = vld [vmem:[%s9363_s1 + $0x58] sm:$0xf0]  ;;  %v4828_v27 = vor.u32 %v5933_v23, %v4827_v22  ;;  %v4819_v29 = vld [vmem:[%s9363_s1 + $0x40] sm:$0xf]  ;;  %v5931_v30 = vld [vmem:[%s9363_s1 + $0x44] sm:$0xf0] }
   0x8   :  { %487 = vmatpush.bf16.msra.mxu0 %v4836_v12  ;;  %v481_v26 = vsel %vm479_vm0, %v4852_v21, 0  ;;  %v4832_v28 = vor.u32 %v5932_v24, %v4829_v25  ;;  %v5930_v31 = vld [vmem:[%s9363_s1 + $0x44] sm:$0xf]  ;;  %v4821_v32 = vld [vmem:[%s9363_s1 + $0x48] sm:$0xf0]  ;;  %v4820_v33 = vor.u32 %v5931_v30, %v4819_v29 }
   0x9   :  { %745 = vmatpush.bf16.msra.mxu2 %v4840_v17  ;;  %4881 = vmatmul.msk.bf16.vlgmr.msra.gmra.mxu3 %vm406_vm1, %v6217_v18  ;;  %v4824_v34 = vor.u32 %v5930_v31, %v4821_v32  ;;  %v4811_v35 = vld [vmem:[%s9363_s1 + $0x30] sm:$0xf]  ;;  %v5929_v36 = vld [vmem:[%s9363_s1 + $0x34] sm:$0xf0]  ;;  %v5928_v37 = vld [vmem:[%s9363_s1 + $0x34] sm:$0xf] }
   0xa   :  { %622 = vmatpush.bf16.msra.mxu1 %v481_v26  ;;  %v4813_v38 = vld [vmem:[%s9363_s1 + $0x38] sm:$0xf0]  ;;  %v4971_v39 = vld [vmem:[%s9365_s2 + $0x80] sm:$0xf]  ;;  %v4812_v40 = vor.u32 %v5929_v36, %v4811_v35  ;;  %v5927_v42 = vld [vmem:[%s9363_s1 + $0x24] sm:$0xf0] }
   0xb   :  { %v4803_v41 = vld [vmem:[%s9363_s1 + $0x20] sm:$0xf]  ;;  %v5957_v43 = vld [vmem:[%s9365_s2 + $0x84] sm:$0x30]  ;;  %v4816_v44 = vor.u32 %v5928_v37, %v4813_v38  ;;  %v5926_v45 = vld [vmem:[%s9363_s1 + $0x24] sm:$0xf] }
   0xc   :  { %488 = vmatpush.bf16.msra.mxu0 %v4828_v27  ;;  %v4805_v46 = vld [vmem:[%s9363_s1 + $0x28] sm:$0xf0]  ;;  %v4972_v47 = vor.u32 %v5957_v43, %v4971_v39  ;;  %v4963_v48 = vld [vmem:[%s9365_s2 + $0x70] sm:$0xf]  ;;  %v5876_v49 = vld [vmem:[%s9364_s0 + $0x14] sm:$0xf]  ;;  %v4804_v54 = vor.u32 %v5927_v42, %v4803_v41 }
   0xd   :  { %746 = vmatpush.bf16.msra.mxu2 %v4832_v28  ;;  %4857 = vmatmul.msk.bf16.vlgmr.msra.gmra.mxu1 %vm406_vm1, %v6217_v18  ;;  %v4605_v50 = vld [vmem:[%s9364_s0 + $0x18] sm:$0xf0]  ;;  %v5955_v51 = vld [vmem:[%s9365_s2 + $0x74] sm:$0xf0]  ;;  %v4808_v55 = vor.u32 %v5926_v45, %v4805_v46  ;;  %v4795_v57 = vld [vmem:[%s9363_s1 + $0x10] sm:$0xf] }
   0xe   :  { %v1109_v52 = vsel %vm479_vm0, %v4972_v47, 0  ;;  %v4964_v53 = vor.u32 %v5955_v51, %v4963_v48  ;;  %v6297_v56 = vor.u32 %v5876_v49, %v4605_v50  ;;  %v5925_v58 = vld [vmem:[%s9363_s1 + $0x14] sm:$0xf0]  ;;  %v5924_v59 = vld [vmem:[%s9363_s1 + $0x14] sm:$0xf] }
   0xf   :  { %1250 = vmatpush.bf16.msrb.mxu3 %v1109_v52  ;;  %v4797_v60 = vld [vmem:[%s9363_s1 + $0x18] sm:$0xf0]  ;;  %v4796_v61 = vor.u32 %v5925_v58, %v4795_v57  ;;  %v5956_v62 = vld [vmem:[%s9365_s2 + $0x84] sm:$0xf]  ;;  %v4973_v63 = vld [vmem:[%s9365_s2 + $0x88] sm:$0x30] }
  0x10   :  { %489 = vmatpush.bf16.msra.mxu0 %v4820_v33  ;;  %1114 = vmatpush.bf16.msrb.mxu1 %v4964_v53  ;;  %v4800_v0 = vor.u32 %v5924_v59, %v4797_v60  ;;  %v4787_v1 = vld [vmem:[%s9363_s1] sm:$0xf]  ;;  %v5923_v2 = vld [vmem:[%s9363_s1 + $0x4] sm:$0xf0]  ;;  %v5922_v3 = vld [vmem:[%s9363_s1 + $0x4] sm:$0xf]  ;;  %v4976_v7 = vor.u32 %v5956_v62, %v4973_v63 }
  0x11   :  { %747 = vmatpush.bf16.msra.mxu2 %v4824_v34  ;;  %v4789_v4 = vld [vmem:[%s9363_s1 + $0x8] sm:$0xf0]  ;;  %v5954_v5 = vld [vmem:[%s9365_s2 + $0x74] sm:$0xf]  ;;  %v4965_v6 = vld [vmem:[%s9365_s2 + $0x78] sm:$0xf0]  ;;  %v4788_v8 = vor.u32 %v5923_v2, %v4787_v1 }
  0x12   :  { %v4595_v9 = vld [vmem:[%s9364_s0] sm:$0xf]  ;;  %v5875_v10 = vld [vmem:[%s9364_s0 + $0x4] sm:$0xf0]  ;;  %v4792_v11 = vor.u32 %v5922_v3, %v4789_v4  ;;  %v4968_v12 = vor.u32 %v5954_v5, %v4965_v6  ;;  %v1112_v14 = vsel %vm479_vm0, %v4976_v7, 0 }
  0x13   :  { %v6345_v13 = vor.u32 %v5875_v10, %v4595_v9  ;;  %v5878_v15 = vld [vmem:[%s9364_s0 + $0x24] sm:$0xf]  ;;  %v4613_v16 = vld [vmem:[%s9364_s0 + $0x28] sm:$0xf0]  ;;  %v4603_v19 = vld [vmem:[%s9364_s0 + $0x10] sm:$0xf] }
  0x14   :  { %490 = vmatpush.bf16.msra.mxu0 %v4812_v40  ;;  %v6356_v17 = vor.u32 %v5878_v15, %v4613_v16  ;;  %v5877_v20 = vld [vmem:[%s9364_s0 + $0x14] sm:$0xf0]  ;;  %v5880_v22 = vld [vmem:[%s9364_s0 + $0x34] sm:$0xf]  ;;  %v4621_v23 = vld [vmem:[%s9364_s0 + $0x38] sm:$0xf0] }
  0x15   :  { %748 = vmatpush.bf16.msra.mxu2 %v4816_v44  ;;  %v6368_v21 = vor.u32 %v5877_v20, %v4603_v19  ;;  %v6378_v24 = vor.u32 %v5880_v22, %v4621_v23  ;;  %v4955_v25 = vld [vmem:[%s9365_s2 + $0x60] sm:$0xf]  ;;  %v5953_v26 = vld [vmem:[%s9365_s2 + $0x64] sm:$0xf0]  ;;  %v5952_v27 = vld [vmem:[%s9365_s2 + $0x64] sm:$0xf] }
  0x16   :  { %v4956_v28 = vor.u32 %v5953_v26, %v4955_v25  ;;  %v4957_v29 = vld [vmem:[%s9365_s2 + $0x68] sm:$0xf0]  ;;  %v4611_v31 = vld [vmem:[%s9364_s0 + $0x20] sm:$0xf]  ;;  %v5879_v32 = vld [vmem:[%s9364_s0 + $0x24] sm:$0xf0] }
  0x17   :  { %v4960_v30 = vor.u32 %v5952_v27, %v4957_v29  ;;  %v6402_v33 = vor.u32 %v5879_v32, %v4611_v31  ;;  %v5882_v34 = vld [vmem:[%s9364_s0 + $0x44] sm:$0xf]  ;;  %v4629_v35 = vld [vmem:[%s9364_s0 + $0x48] sm:$0xf0]  ;;  %v4619_v37 = vld [vmem:[%s9364_s0 + $0x30] sm:$0xf] }
  0x18   :  { %491 = vmatpush.bf16.msra.mxu0 %v4804_v54  ;;  %1115 = vmatpush.bf16.msrb.mxu1 %v4956_v28  ;;  %v6412_v36 = vor.u32 %v5882_v34, %v4629_v35  ;;  %v5881_v38 = vld [vmem:[%s9364_s0 + $0x34] sm:$0xf0]  ;;  %v5884_v40 = vld [vmem:[%s9364_s0 + $0x54] sm:$0xf]  ;;  %v4637_v41 = vld [vmem:[%s9364_s0 + $0x58] sm:$0xf0] }
  0x19   :  { %749 = vmatpush.bf16.msra.mxu2 %v4808_v55  ;;  %4882 = vmatmul.msk.bf16.gmra.mxu3 %vm406_vm1, %v6297_v56  ;;  %v6424_v39 = vor.u32 %v5881_v38, %v4619_v37  ;;  %v6434_v42 = vor.u32 %v5884_v40, %v4637_v41  ;;  %v4627_v43 = vld [vmem:[%s9364_s0 + $0x40] sm:$0xf]  ;;  %v5883_v44 = vld [vmem:[%s9364_s0 + $0x44] sm:$0xf0]  ;;  %v5886_v46 = vld [vmem:[%s9364_s0 + $0x64] sm:$0xf] }
  0x1a   :  { %v6446_v45 = vor.u32 %v5883_v44, %v4627_v43  ;;  %v4645_v47 = vld [vmem:[%s9364_s0 + $0x68] sm:$0xf0]  ;;  %v4947_v49 = vld [vmem:[%s9365_s2 + $0x50] sm:$0xf]  ;;  %v5951_v50 = vld [vmem:[%s9365_s2 + $0x54] sm:$0xf0] }
  0x1b   :  { %v6456_v48 = vor.u32 %v5886_v46, %v4645_v47  ;;  %v5950_v51 = vld [vmem:[%s9365_s2 + $0x54] sm:$0xf]  ;;  %v4948_v52 = vor.u32 %v5951_v50, %v4947_v49  ;;  %v4949_v53 = vld [vmem:[%s9365_s2 + $0x58] sm:$0xf0]  ;;  %v4635_v55 = vld [vmem:[%s9364_s0 + $0x50] sm:$0xf] }
  0x1c   :  { %492 = vmatpush.bf16.msra.mxu0 %v4796_v61  ;;  %v4952_v54 = vor.u32 %v5950_v51, %v4949_v53  ;;  %v5885_v57 = vld [vmem:[%s9364_s0 + $0x54] sm:$0xf0]  ;;  %v5888_v59 = vld [vmem:[%s9364_s0 + $0x74] sm:$0xf]  ;;  %v4653_v60 = vld [vmem:[%s9364_s0 + $0x78] sm:$0xf0] }
  0x1d   :  { %750 = vmatpush.bf16.msra.mxu2 %v4800_v0  ;;  %4858 = vmatmul.msk.bf16.gmra.mxu1 %vm406_vm1, %v6297_v56  ;;  %v6480_v58 = vor.u32 %v5885_v57, %v4635_v55  ;;  %v6490_v61 = vor.u32 %v5888_v59, %v4653_v60  ;;  %v4643_v62 = vld [vmem:[%s9364_s0 + $0x60] sm:$0xf]  ;;  %v5887_v63 = vld [vmem:[%s9364_s0 + $0x64] sm:$0xf0]  ;;  %v5890_v1 = vld [vmem:[%s9364_s0 + $0x84] sm:$0xf] }
  0x1e   :  { %1116 = vmatpush.bf16.msrb.mxu1 %v4948_v52  ;;  %v6502_v0 = vor.u32 %v5887_v63, %v4643_v62  ;;  %v4661_v2 = vld [vmem:[%s9364_s0 + $0x88] sm:$0xf0]  ;;  %v4651_v6 = vld [vmem:[%s9364_s0 + $0x70] sm:$0xf]  ;;  %v5889_v7 = vld [vmem:[%s9364_s0 + $0x74] sm:$0xf0] }
  0x1f   :  { %v6512_v3 = vor.u32 %v5890_v1, %v4661_v2  ;;  %v5892_v10 = vld [vmem:[%s9364_s0 + $0x94] sm:$0xf]  ;;  %v4939_v15 = vld [vmem:[%s9365_s2 + $0x40] sm:$0xf]  ;;  %v5949_v16 = vld [vmem:[%s9365_s2 + $0x44] sm:$0xf0] }
  0x20   :  { %493 = vmatpush.bf16.msra.mxu0 %v4788_v8  ;;  %v6524_v8 = vor.u32 %v5889_v7, %v4651_v6  ;;  %v5948_v19 = vld [vmem:[%s9365_s2 + $0x44] sm:$0xf]  ;;  %v4940_v22 = vor.u32 %v5949_v16, %v4939_v15  ;;  %v4941_v23 = vld [vmem:[%s9365_s2 + $0x48] sm:$0xf0]  ;;  %v4659_v27 = vld [vmem:[%s9364_s0 + $0x80] sm:$0xf] }
  0x21   :  { %751 = vmatpush.bf16.msra.mxu2 %v4792_v11  ;;  %v4669_v11 = vld [vmem:[%s9364_s0 + $0x98] sm:$0xf0]  ;;  %v4944_v25 = vor.u32 %v5948_v19, %v4941_v23  ;;  %v5891_v28 = vld [vmem:[%s9364_s0 + $0x84] sm:$0xf0]  ;;  %v5894_v34 = vld [vmem:[%s9364_s0 + $0xa4] sm:$0xf] }
  0x22   :  { %1117 = vmatpush.bf16.msrb.mxu1 %v4940_v22  ;;  %v6558_v29 = vor.u32 %v5891_v28, %v4659_v27  ;;  %v4677_v35 = vld [vmem:[%s9364_s0 + $0xa8] sm:$0xf0]  ;;  %v4667_v49 = vld [vmem:[%s9364_s0 + $0x90] sm:$0xf]  ;;  %v5893_v50 = vld [vmem:[%s9364_s0 + $0x94] sm:$0xf0] }
  0x23   :  { %494 = vmatmul.bf16.vlgmr.msra.gmra.mxu0 %v6345_v13  ;;  %v6570_v38 = vor.u32 %v5894_v34, %v4677_v35  ;;  %v6586_v52 = vor.u32 %v5893_v50, %v4667_v49  ;;  %v5896_v59 = vld [vmem:[%s9364_s0 + $0xb4] sm:$0xf]  ;;  %v4685_v60 = vld [vmem:[%s9364_s0 + $0xb8] sm:$0xf0]  ;;  %v5898_v22 = vld [vmem:[%s9364_s0 + $0xc4] sm:$0xf] }
  0x24   :  { %1372 = vmatpush.bf16.msrb.mxu0 %v4968_v12  ;;  %752 = vmatmul.bf16.vlgmr.msra.gmra.mxu2 %v6345_v13  ;;  %v6600_v63 = vor.u32 %v5896_v59, %v4685_v60  ;;  %v4693_v23 = vld [vmem:[%s9364_s0 + $0xc8] sm:$0xf0]  ;;  %v4931_v34 = vld [vmem:[%s9365_s2 + $0x30] sm:$0xf]  ;;  %v5947_v35 = vld [vmem:[%s9365_s2 + $0x34] sm:$0xf0] }
  0x25   :  { %1508 = vmatpush.bf16.msrb.mxu2 %v1112_v14  ;;  %v6534_v14 = vor.u32 %v5892_v10, %v4669_v11  ;;  %v5895_v10 = vld [vmem:[%s9364_s0 + $0xa4] sm:$0xf0]  ;;  %v4683_v50 = vld [vmem:[%s9364_s0 + $0xb0] sm:$0xf] }
  0x28   :  { %1373 = vmatpush.bf16.msrb.mxu0 %v4960_v30 }
  0x29   :  { %4883 = vmatmul.msk.bf16.gmra.mxu3 %vm406_vm1, %v6356_v17 }
  0x2c   :  { %1374 = vmatpush.bf16.msrb.mxu0 %v4952_v54 }
  0x2d   :  { %4859 = vmatmul.msk.bf16.gmra.mxu1 %vm406_vm1, %v6356_v17 }
  0x30   :  { %1375 = vmatpush.bf16.msrb.mxu0 %v4944_v25 }
  0x33   :  { %499 = vmatmul.bf16.gmra.mxu0 %v6368_v21 }
  0x34   :  { %757 = vmatmul.bf16.gmra.mxu2 %v6368_v21 }
  0x39   :  { %4884 = vmatmul.msk.bf16.gmra.mxu3 %vm406_vm1, %v6378_v24 }
  0x3d   :  { %4860 = vmatmul.msk.bf16.gmra.mxu1 %vm406_vm1, %v6378_v24 }
  0x43   :  { %504 = vmatmul.bf16.gmra.mxu0 %v6402_v33 }
  0x44   :  { %762 = vmatmul.bf16.gmra.mxu2 %v6402_v33 }
  0x49   :  { %4885 = vmatmul.msk.bf16.gmra.mxu3 %vm406_vm1, %v6412_v36 }
  0x4d   :  { %4861 = vmatmul.msk.bf16.gmra.mxu1 %vm406_vm1, %v6412_v36 }
  0x53   :  { %509 = vmatmul.bf16.gmra.mxu0 %v6424_v39 }
  0x54   :  { %767 = vmatmul.bf16.gmra.mxu2 %v6424_v39 }
  0x59   :  { %4886 = vmatmul.msk.bf16.gmra.mxu3 %vm406_vm1, %v6434_v42 }
  0x5d   :  { %4862 = vmatmul.msk.bf16.gmra.mxu1 %vm406_vm1, %v6434_v42 }
  0x63   :  { %514 = vmatmul.bf16.gmra.mxu0 %v6446_v45 }
  0x64   :  { %772 = vmatmul.bf16.gmra.mxu2 %v6446_v45 }
  0x69   :  { %4887 = vmatmul.msk.bf16.gmra.mxu3 %vm406_vm1, %v6456_v48 }
  0x6d   :  { %4863 = vmatmul.msk.bf16.gmra.mxu1 %vm406_vm1, %v6456_v48 }
  0x73   :  { %519 = vmatmul.bf16.gmra.mxu0 %v6480_v58 }
  0x74   :  { %777 = vmatmul.bf16.gmra.mxu2 %v6480_v58 }
  0x79   :  { %4888 = vmatmul.msk.bf16.gmra.mxu3 %vm406_vm1, %v6490_v61 }
  0x7d   :  { %4864 = vmatmul.msk.bf16.gmra.mxu1 %vm406_vm1, %v6490_v61 }
  0x83   :  { %524 = vmatmul.bf16.gmra.mxu0 %v6502_v0 }
  0x84   :  { %782 = vmatmul.bf16.gmra.mxu2 %v6502_v0 }
  0x89   :  { %4889 = vmatmul.msk.bf16.gmra.mxu3 %vm406_vm1, %v6512_v3 }
  0x8a   :  { %v624_v4 = vpop.f32.mrf.mxu1 }
  0x8c   :  { %v882_v5 = vpop.f32.mrf.mxu3 }
  0x8d   :  { %4865 = vmatmul.msk.bf16.gmra.mxu1 %vm406_vm1, %v6512_v3 }
  0x92   :  { %v626_v9 = vpop.f32.mrf.mxu1 }
  0x93   :  { %529 = vmatmul.bf16.gmra.mxu0 %v6524_v8 }
  0x94   :  { %787 = vmatmul.bf16.gmra.mxu2 %v6524_v8  ;;  %v884_v12 = vpop.f32.mrf.mxu3 }
  0x99   :  { %4890 = vmatmul.msk.bf16.gmra.mxu3 %vm406_vm1, %v6534_v14 }
  0x9a   :  { %v629_v20 = vpop.f32.mrf.mxu1 }
  0x9c   :  { %v887_v26 = vpop.f32.mrf.mxu3 }
  0x9d   :  { %4866 = vmatmul.msk.bf16.gmra.mxu1 %vm406_vm1, %v6534_v14 }
  0xa0   :  { %v495_v30 = vpop.f32.mrf.mxu0 }
  0xa1   :  { %v6560_v31 = vadd.f32 %v624_v4, %v495_v30 }
  0xa2   :  { %v631_v32 = vpop.f32.mrf.mxu1 }
  0xa3   :  { %534 = vmatmul.bf16.gmra.mxu0 %v6558_v29 }
  0xa4   :  { %792 = vmatmul.bf16.gmra.mxu2 %v6558_v29  ;;  %v889_v37 = vpop.f32.mrf.mxu3 }
  0xa7   :  { %v753_v40 = vpop.f32.mrf.mxu2 }
  0xa8   :  { %v6572_v41 = vadd.f32 %v882_v5, %v753_v40  ;;  %v497_v43 = vpop.f32.mrf.mxu0 }
  0xa9   :  { %v6574_v44 = vadd.f32 %v626_v9, %v497_v43  ;;  %4891 = vmatmul.msk.bf16.gmra.mxu3 %vm406_vm1, %v6570_v38  ;;  %v4675_v9 = vld [vmem:[%s9364_s0 + $0xa0] sm:$0xf]  ;;  %v4932_v43 = vor.u32 %v5947_v35, %v4931_v34  ;;  %v5899_v35 = vld [vmem:[%s9364_s0 + $0xc4] sm:$0xf0] }
  0xaa   :  { %v634_v46 = vpop.f32.mrf.mxu1  ;;  %v4691_v34 = vld [vmem:[%s9364_s0 + $0xc0] sm:$0xf] }
  0xab   :  { %1118 = vmatpush.bf16.msrb.mxu1 %v4932_v43 }
  0xac   :  { %v892_v47 = vpop.f32.mrf.mxu3 }
  0xad   :  { %4867 = vmatmul.msk.bf16.gmra.mxu1 %vm406_vm1, %v6570_v38 }
  0xaf   :  { %v755_v51 = vpop.f32.mrf.mxu2 }
  0xb0   :  { %v6588_v53 = vadd.f32 %v884_v12, %v755_v51  ;;  %v500_v54 = vpop.f32.mrf.mxu0  ;;  %v6616_v12 = vor.u32 %v5895_v10, %v4675_v9  ;;  %v5897_v51 = vld [vmem:[%s9364_s0 + $0xb4] sm:$0xf0]  ;;  %v5900_v9 = vld [vmem:[%s9364_s0 + $0xd4] sm:$0xf]  ;;  %v4701_v10 = vld [vmem:[%s9364_s0 + $0xd8] sm:$0xf0] }
  0xb1   :  { %v6590_v55 = vadd.f32 %v629_v20, %v500_v54 }
  0xb2   :  { %v636_v57 = vpop.f32.mrf.mxu1 }
  0xb3   :  { %539 = vmatmul.bf16.gmra.mxu0 %v6586_v52 }
  0xb4   :  { %797 = vmatmul.bf16.gmra.mxu2 %v6586_v52  ;;  %v894_v62 = vpop.f32.mrf.mxu3 }
  0xb7   :  { %v758_v1 = vpop.f32.mrf.mxu2 }
  0xb8   :  { %v6602_v2 = vadd.f32 %v887_v26, %v758_v1  ;;  %v502_v4 = vpop.f32.mrf.mxu0  ;;  %v6630_v26 = vor.u32 %v5898_v22, %v4693_v23 }
  0xb9   :  { %v6604_v5 = vadd.f32 %v631_v32, %v502_v4  ;;  %4892 = vmatmul.msk.bf16.gmra.mxu3 %vm406_vm1, %v6600_v63 }
  0xba   :  { %v639_v6 = vpop.f32.mrf.mxu1 }
  0xbc   :  { %v897_v7 = vpop.f32.mrf.mxu3 }
  0xbd   :  { %4868 = vmatmul.msk.bf16.gmra.mxu1 %vm406_vm1, %v6600_v63 }
  0xbf   :  { %v760_v11 = vpop.f32.mrf.mxu2 }
  0xc0   :  { %v6618_v15 = vadd.f32 %v889_v37, %v760_v11  ;;  %v505_v16 = vpop.f32.mrf.mxu0  ;;  %v5946_v37 = vld [vmem:[%s9365_s2 + $0x34] sm:$0xf] }
  0xc1   :  { %v6620_v19 = vadd.f32 %v634_v46, %v505_v16  ;;  %v4933_v46 = vld [vmem:[%s9365_s2 + $0x38] sm:$0xf0]  ;;  %v6672_v16 = vor.u32 %v5900_v9, %v4701_v10 }
  0xc2   :  { %v641_v20 = vpop.f32.mrf.mxu1 }
  0xc3   :  { %544 = vmatmul.bf16.gmra.mxu0 %v6616_v12 }
  0xc4   :  { %802 = vmatmul.bf16.gmra.mxu2 %v6616_v12  ;;  %v899_v25 = vpop.f32.mrf.mxu3 }
  0xc7   :  { %v763_v27 = vpop.f32.mrf.mxu2 }
  0xc8   :  { %v6632_v28 = vadd.f32 %v892_v47, %v763_v27  ;;  %v507_v30 = vpop.f32.mrf.mxu0  ;;  %v4936_v47 = vor.u32 %v5946_v37, %v4933_v46  ;;  %v6688_v37 = vor.u32 %v5899_v35, %v4691_v34  ;;  %v4699_v34 = vld [vmem:[%s9364_s0 + $0xd0] sm:$0xf]  ;;  %v5901_v35 = vld [vmem:[%s9364_s0 + $0xd4] sm:$0xf0] }
  0xc9   :  { %v6634_v32 = vadd.f32 %v636_v57, %v507_v30  ;;  %4893 = vmatmul.msk.bf16.gmra.mxu3 %vm406_vm1, %v6630_v26  ;;  %v6658_v57 = vor.u32 %v5897_v51, %v4683_v50  ;;  %v5902_v50 = vld [vmem:[%s9364_s0 + $0xe4] sm:$0xf]  ;;  %v4709_v51 = vld [vmem:[%s9364_s0 + $0xe8] sm:$0xf0] }
  0xca   :  { %v644_v40 = vpop.f32.mrf.mxu1  ;;  %1376 = vmatpush.bf16.msrb.mxu0 %v4936_v47 }
  0xcc   :  { %v902_v49 = vpop.f32.mrf.mxu3 }
  0xcd   :  { %4869 = vmatmul.msk.bf16.gmra.mxu1 %vm406_vm1, %v6630_v26 }
  0xcf   :  { %v765_v54 = vpop.f32.mrf.mxu2 }
  0xd0   :  { %v6660_v59 = vadd.f32 %v894_v62, %v765_v54  ;;  %v510_v60 = vpop.f32.mrf.mxu0 }
  0xd1   :  { %v6662_v1 = vadd.f32 %v639_v6, %v510_v60  ;;  %v6702_v60 = vor.u32 %v5902_v50, %v4709_v51 }
  0xd2   :  { %v646_v4 = vpop.f32.mrf.mxu1 }
  0xd3   :  { %549 = vmatmul.bf16.gmra.mxu0 %v6658_v57  ;;  %9479 = vst [vmem:[#allocation4_spill] sm:$0xff] %v6702_v60 }
  0xd4   :  { %807 = vmatmul.bf16.gmra.mxu2 %v6658_v57  ;;  %v904_v11 = vpop.f32.mrf.mxu3 }
  0xd7   :  { %v768_v62 = vpop.f32.mrf.mxu2 }
  0xd8   :  { %v6674_v22 = vadd.f32 %v897_v7, %v768_v62  ;;  %v512_v6 = vpop.f32.mrf.mxu0 }
  0xd9   :  { %v6676_v23 = vadd.f32 %v641_v20, %v512_v6  ;;  %4894 = vmatmul.msk.bf16.gmra.mxu3 %vm406_vm1, %v6672_v16 }
  0xda   :  { %9477 = vst [vmem:[#allocation2_spill] sm:$0xff] %v6674_v22  ;;  %v649_v27 = vpop.f32.mrf.mxu1 }
  0xdc   :  { %v907_v30 = vpop.f32.mrf.mxu3 }
  0xdd   :  { %4870 = vmatmul.msk.bf16.gmra.mxu1 %vm406_vm1, %v6672_v16 }
  0xdf   :  { %v770_v7 = vpop.f32.mrf.mxu2 }
  0xe0   :  { %v6690_v20 = vadd.f32 %v899_v25, %v770_v7  ;;  %v515_v43 = vpop.f32.mrf.mxu0  ;;  %v6718_v7 = vor.u32 %v5901_v35, %v4699_v34 }
  0xe1   :  { %v6692_v46 = vadd.f32 %v644_v40, %v515_v43 }
  0xe2   :  { %9478 = vst [vmem:[#allocation3_spill] sm:$0xff] %v6690_v20  ;;  %v651_v47 = vpop.f32.mrf.mxu1 }
  0xe3   :  { %554 = vmatmul.bf16.gmra.mxu0 %v6688_v37  ;;  %9481 = vst [vmem:[#allocation6_spill] sm:$0xff] %v6718_v7 }
  0xe4   :  { %812 = vmatmul.bf16.gmra.mxu2 %v6688_v37  ;;  %v909_v54 = vpop.f32.mrf.mxu3 }
  0xe7   :  { %v773_v25 = vpop.f32.mrf.mxu2 }
  0xe8   :  { %v6704_v9 = vadd.f32 %v902_v49, %v773_v25  ;;  %v517_v40 = vpop.f32.mrf.mxu0  ;;  %v5904_v25 = vld [vmem:[%s9364_s0 + $0xf4] sm:$0xf] }
  0xe9   :  { %v6706_v10 = vadd.f32 %v646_v4, %v517_v40  ;;  %4895 = vmatmul.msk.bf16.gmra.mxu3 %vm406_vm1, %v6702_v60  ;;  %v4717_v40 = vld [vmem:[%s9364_s0 + $0xf8] sm:$0xf0] }
  0xea   :  { %9480 = vst [vmem:[#allocation5_spill] sm:$0xff] %v6704_v9  ;;  %v654_v62 = vpop.f32.mrf.mxu1  ;;  %v6732_v35 = vor.u32 %v5904_v25, %v4717_v40  ;;  %v5945_v9 = vld [vmem:[%s9365_s2 + $0x24] sm:$0xf0]  ;;  %v5944_v25 = vld [vmem:[%s9365_s2 + $0x24] sm:$0xf] }
  0xec   :  { %v912_v6 = vpop.f32.mrf.mxu3  ;;  %9484 = vst [vmem:[#allocation9_spill] sm:$0xff] %v6732_v35 }
  0xed   :  { %4871 = vmatmul.msk.bf16.gmra.mxu1 %vm406_vm1, %v6702_v60  ;;  %v5903_v60 = vld [vmem:[%s9364_s0 + $0xe4] sm:$0xf0] }
  0xef   :  { %v775_v49 = vpop.f32.mrf.mxu2 }
  0xf0   :  { %v6720_v4 = vadd.f32 %v904_v11, %v775_v49  ;;  %v520_v43 = vpop.f32.mrf.mxu0 }
  0xf1   :  { %v6722_v50 = vadd.f32 %v649_v27, %v520_v43 }
  0xf2   :  { %9482 = vst [vmem:[#allocation7_spill] sm:$0xff] %v6720_v4  ;;  %v656_v51 = vpop.f32.mrf.mxu1  ;;  %v4923_v4 = vld [vmem:[%s9365_s2 + $0x20] sm:$0xf] }
  0xf3   :  { %9483 = vst [vmem:[#allocation8_spill] sm:$0xff] %v6722_v50  ;;  %559 = vmatmul.bf16.gmra.mxu0 %v6718_v7  ;;  %v4924_v40 = vor.u32 %v5945_v9, %v4923_v4  ;;  %v5906_v50 = vld [vmem:[%s9364_s0 + $0x104] sm:$0xf] }
  0xf4   :  { %817 = vmatmul.bf16.gmra.mxu2 %v6718_v7  ;;  %v914_v34 = vpop.f32.mrf.mxu3 }
  0xf5   :  { %1119 = vmatpush.bf16.msrb.mxu1 %v4924_v40  ;;  %v4725_v40 = vld [vmem:[%s9364_s0 + $0x108] sm:$0xf0] }
  0xf7   :  { %v778_v11 = vpop.f32.mrf.mxu2 }
  0xf8   :  { %v6734_v49 = vadd.f32 %v907_v30, %v778_v11  ;;  %v522_v27 = vpop.f32.mrf.mxu0 }
  0xf9   :  { %v6736_v43 = vadd.f32 %v651_v47, %v522_v27  ;;  %4896 = vmatmul.msk.bf16.gmra.mxu3 %vm406_vm1, %v6732_v35  ;;  %v4925_v47 = vld [vmem:[%s9365_s2 + $0x28] sm:$0xf0] }
  0xfa   :  { %9485 = vst [vmem:[#allocation10_spill] sm:$0xff] %v6734_v49  ;;  %v659_v30 = vpop.f32.mrf.mxu1  ;;  %v4928_v11 = vor.u32 %v5944_v25, %v4925_v47  ;;  %v4707_v49 = vld [vmem:[%s9364_s0 + $0xe0] sm:$0xf] }
  0xfb   :  { %9486 = vst [vmem:[#allocation11_spill] sm:$0xff] %v6736_v43  ;;  %v6760_v4 = vor.u32 %v5903_v60, %v4707_v49  ;;  %v6774_v49 = vor.u32 %v5906_v50, %v4725_v40  ;;  %v5905_v50 = vld [vmem:[%s9364_s0 + $0xf4] sm:$0xf0] }
  0xfc   :  { %v917_v27 = vpop.f32.mrf.mxu3  ;;  %1377 = vmatpush.bf16.msrb.mxu0 %v4928_v11 }
  0xfd   :  { %4872 = vmatmul.msk.bf16.gmra.mxu1 %vm406_vm1, %v6732_v35  ;;  %9487 = vst [vmem:[#allocation12_spill] sm:$0xff] %v6760_v4  ;;  %v4715_v35 = vld [vmem:[%s9364_s0 + $0xf0] sm:$0xf] }
  0xfe   :  { %9490 = vst [vmem:[#allocation15_spill] sm:$0xff] %v6774_v49  ;;  %v6790_v40 = vor.u32 %v5905_v50, %v4715_v35 }
  0xff   :  { %v780_v9 = vpop.f32.mrf.mxu2 }
 0x100   :  { %v6762_v43 = vadd.f32 %v909_v54, %v780_v9  ;;  %v525_v25 = vpop.f32.mrf.mxu0  ;;  %9493 = vst [vmem:[#allocation18_spill] sm:$0xff] %v6790_v40 }
 0x101   :  { %v6764_v47 = vadd.f32 %v654_v62, %v525_v25 }
 0x102   :  { %9488 = vst [vmem:[#allocation13_spill] sm:$0xff] %v6762_v43  ;;  %v661_v20 = vpop.f32.mrf.mxu1 }
 0x103   :  { %9489 = vst [vmem:[#allocation14_spill] sm:$0xff] %v6764_v47  ;;  %564 = vmatmul.bf16.gmra.mxu0 %v6760_v4  ;;  %v4733_v47 = vld [vmem:[%s9364_s0 + $0x118] sm:$0xf0] }
 0x104   :  { %822 = vmatmul.bf16.gmra.mxu2 %v6760_v4  ;;  %v919_v60 = vpop.f32.mrf.mxu3  ;;  %v5912_v4 = vld [vmem:[%s9364_s0 + $0x134] sm:$0xf] }
 0x107   :  { %v783_v54 = vpop.f32.mrf.mxu2 }
 0x108   :  { %v6776_v11 = vadd.f32 %v912_v6, %v783_v54  ;;  %v527_v62 = vpop.f32.mrf.mxu0 }
 0x109   :  { %v6778_v9 = vadd.f32 %v656_v51, %v527_v62  ;;  %4897 = vmatmul.msk.bf16.gmra.mxu3 %vm406_vm1, %v6774_v49 }
 0x10a   :  { %9491 = vst [vmem:[#allocation16_spill] sm:$0xff] %v6776_v11  ;;  %v664_v25 = vpop.f32.mrf.mxu1 }
 0x10b   :  { %9492 = vst [vmem:[#allocation17_spill] sm:$0xff] %v6778_v9  ;;  %v5908_v9 = vld [vmem:[%s9364_s0 + $0x114] sm:$0xf] }
 0x10c   :  { %v922_v43 = vpop.f32.mrf.mxu3  ;;  %v6804_v50 = vor.u32 %v5908_v9, %v4733_v47  ;;  %v5907_v47 = vld [vmem:[%s9364_s0 + $0x104] sm:$0xf0] }
 0x10d   :  { %4873 = vmatmul.msk.bf16.gmra.mxu1 %vm406_vm1, %v6774_v49 }
 0x10e   :  { %9496 = vst [vmem:[#allocation21_spill] sm:$0xff] %v6804_v50 }
 0x10f   :  { %v785_v6 = vpop.f32.mrf.mxu2 }
 0x110   :  { %v6792_v51 = vadd.f32 %v914_v34, %v785_v6  ;;  %v530_v54 = vpop.f32.mrf.mxu0 }
 0x111   :  { %v6794_v62 = vadd.f32 %v659_v30, %v530_v54 }
 0x112   :  { %9494 = vst [vmem:[#allocation19_spill] sm:$0xff] %v6792_v51  ;;  %v666_v11 = vpop.f32.mrf.mxu1 }
 0x113   :  { %9495 = vst [vmem:[#allocation20_spill] sm:$0xff] %v6794_v62  ;;  %569 = vmatmul.bf16.gmra.mxu0 %v6790_v40  ;;  %v4723_v62 = vld [vmem:[%s9364_s0 + $0x100] sm:$0xf] }
 0x114   :  { %827 = vmatmul.bf16.gmra.mxu2 %v6790_v40  ;;  %v924_v35 = vpop.f32.mrf.mxu3  ;;  %v6820_v9 = vor.u32 %v5907_v47, %v4723_v62  ;;  %v4741_v40 = vld [vmem:[%s9364_s0 + $0x128] sm:$0xf0] }
 0x116   :  { %9499 = vst [vmem:[#allocation24_spill] sm:$0xff] %v6820_v9 }
 0x117   :  { %v788_v34 = vpop.f32.mrf.mxu2 }
 0x118   :  { %v6806_v6 = vadd.f32 %v917_v27, %v788_v34  ;;  %v532_v30 = vpop.f32.mrf.mxu0 }
 0x119   :  { %v6808_v54 = vadd.f32 %v661_v20, %v532_v30  ;;  %4898 = vmatmul.msk.bf16.gmra.mxu3 %vm406_vm1, %v6804_v50 }
 0x11a   :  { %9497 = vst [vmem:[#allocation22_spill] sm:$0xff] %v6806_v6  ;;  %v669_v51 = vpop.f32.mrf.mxu1 }
 0x11b   :  { %9498 = vst [vmem:[#allocation23_spill] sm:$0xff] %v6808_v54  ;;  %v5910_v54 = vld [vmem:[%s9364_s0 + $0x124] sm:$0xf] }
 0x11c   :  { %v927_v49 = vpop.f32.mrf.mxu3  ;;  %v6834_v47 = vor.u32 %v5910_v54, %v4741_v40  ;;  %v5942_v40 = vld [vmem:[%s9365_s2 + $0x14] sm:$0xf] }
 0x11d   :  { %4874 = vmatmul.msk.bf16.gmra.mxu1 %vm406_vm1, %v6804_v50  ;;  %v5943_v50 = vld [vmem:[%s9365_s2 + $0x14] sm:$0xf0] }
 0x11e   :  { %9502 = vst [vmem:[#allocation27_spill] sm:$0xff] %v6834_v47 }
 0x11f   :  { %v790_v27 = vpop.f32.mrf.mxu2 }
 0x120   :  { %v6822_v20 = vadd.f32 %v919_v60, %v790_v27  ;;  %v535_v34 = vpop.f32.mrf.mxu0 }
 0x121   :  { %v6824_v30 = vadd.f32 %v664_v25, %v535_v34 }
 0x122   :  { %9500 = vst [vmem:[#allocation25_spill] sm:$0xff] %v6822_v20  ;;  %v671_v6 = vpop.f32.mrf.mxu1  ;;  %v4915_v20 = vld [vmem:[%s9365_s2 + $0x10] sm:$0xf] }
 0x123   :  { %9501 = vst [vmem:[#allocation26_spill] sm:$0xff] %v6824_v30  ;;  %574 = vmatmul.bf16.gmra.mxu0 %v6820_v9  ;;  %v4916_v54 = vor.u32 %v5943_v50, %v4915_v20 }
 0x124   :  { %832 = vmatmul.bf16.gmra.mxu2 %v6820_v9  ;;  %v929_v62 = vpop.f32.mrf.mxu3 }
 0x125   :  { %1120 = vmatpush.bf16.msrb.mxu1 %v4916_v54  ;;  %v4749_v54 = vld [vmem:[%s9364_s0 + $0x138] sm:$0xf0] }
 0x127   :  { %v793_v60 = vpop.f32.mrf.mxu2 }
 0x128   :  { %v6836_v27 = vadd.f32 %v922_v43, %v793_v60  ;;  %v537_v25 = vpop.f32.mrf.mxu0 }
 0x129   :  { %v6838_v34 = vadd.f32 %v666_v11, %v537_v25  ;;  %4899 = vmatmul.msk.bf16.gmra.mxu3 %vm406_vm1, %v6834_v47  ;;  %v4917_v11 = vld [vmem:[%s9365_s2 + $0x18] sm:$0xf0] }
 0x12a   :  { %9503 = vst [vmem:[#allocation28_spill] sm:$0xff] %v6836_v27  ;;  %v674_v43 = vpop.f32.mrf.mxu1  ;;  %v4920_v60 = vor.u32 %v5942_v40, %v4917_v11  ;;  %v4731_v27 = vld [vmem:[%s9364_s0 + $0x110] sm:$0xf] }
 0x12b   :  { %9504 = vst [vmem:[#allocation29_spill] sm:$0xff] %v6838_v34  ;;  %v5909_v34 = vld [vmem:[%s9364_s0 + $0x114] sm:$0xf0] }
 0x12c   :  { %v932_v25 = vpop.f32.mrf.mxu3  ;;  %1378 = vmatpush.bf16.msrb.mxu0 %v4920_v60  ;;  %v6862_v20 = vor.u32 %v5909_v34, %v4731_v27  ;;  %v6876_v34 = vor.u32 %v5912_v4, %v4749_v54  ;;  %v5911_v4 = vld [vmem:[%s9364_s0 + $0x124] sm:$0xf0] }
 0x12d   :  { %4875 = vmatmul.msk.bf16.gmra.mxu1 %vm406_vm1, %v6834_v47  ;;  %v4739_v47 = vld [vmem:[%s9364_s0 + $0x120] sm:$0xf] }
 0x12e   :  { %9505 = vst [vmem:[#allocation30_spill] sm:$0xff] %v6862_v20  ;;  %v6892_v54 = vor.u32 %v5911_v4, %v4739_v47 }
 0x12f   :  { %v795_v50 = vpop.f32.mrf.mxu2  ;;  %9508 = vst [vmem:[#allocation33_spill] sm:$0xff] %v6876_v34 }
 0x130   :  { %v6864_v30 = vadd.f32 %v924_v35, %v795_v50  ;;  %v540_v40 = vpop.f32.mrf.mxu0  ;;  %9511 = vst [vmem:[#allocation36_spill] sm:$0xff] %v6892_v54 }
 0x131   :  { %v6866_v11 = vadd.f32 %v669_v51, %v540_v40 }
 0x132   :  { %9506 = vst [vmem:[#allocation31_spill] sm:$0xff] %v6864_v30  ;;  %v676_v9 = vpop.f32.mrf.mxu1 }
 0x133   :  { %9507 = vst [vmem:[#allocation32_spill] sm:$0xff] %v6866_v11  ;;  %579 = vmatmul.bf16.gmra.mxu0 %v6862_v20  ;;  %v4757_v11 = vld [vmem:[%s9364_s0 + $0x148] sm:$0xf0] }
 0x134   :  { %837 = vmatmul.bf16.gmra.mxu2 %v6862_v20  ;;  %v934_v27 = vpop.f32.mrf.mxu3  ;;  %v5918_v20 = vld [vmem:[%s9364_s0 + $0x164] sm:$0xf] }
 0x137   :  { %v798_v35 = vpop.f32.mrf.mxu2 }
 0x138   :  { %v6878_v60 = vadd.f32 %v927_v49, %v798_v35  ;;  %v542_v51 = vpop.f32.mrf.mxu0 }
 0x139   :  { %v6880_v50 = vadd.f32 %v671_v6, %v542_v51  ;;  %4900 = vmatmul.msk.bf16.gmra.mxu3 %vm406_vm1, %v6876_v34 }
 0x13a   :  { %9509 = vst [vmem:[#allocation34_spill] sm:$0xff] %v6878_v60  ;;  %v679_v40 = vpop.f32.mrf.mxu1 }
 0x13b   :  { %9510 = vst [vmem:[#allocation35_spill] sm:$0xff] %v6880_v50  ;;  %v5914_v50 = vld [vmem:[%s9364_s0 + $0x144] sm:$0xf] }
 0x13c   :  { %v937_v30 = vpop.f32.mrf.mxu3  ;;  %v6906_v4 = vor.u32 %v5914_v50, %v4757_v11  ;;  %v5913_v11 = vld [vmem:[%s9364_s0 + $0x134] sm:$0xf0] }
 0x13d   :  { %4876 = vmatmul.msk.bf16.gmra.mxu1 %vm406_vm1, %v6876_v34 }
 0x13e   :  { %9514 = vst [vmem:[#allocation39_spill] sm:$0xff] %v6906_v4 }
 0x13f   :  { %v800_v49 = vpop.f32.mrf.mxu2 }
 0x140   :  { %v6894_v6 = vadd.f32 %v929_v62, %v800_v49  ;;  %v545_v35 = vpop.f32.mrf.mxu0 }
 0x141   :  { %v6896_v51 = vadd.f32 %v674_v43, %v545_v35 }
 0x142   :  { %9512 = vst [vmem:[#allocation37_spill] sm:$0xff] %v6894_v6  ;;  %v681_v60 = vpop.f32.mrf.mxu1 }
 0x143   :  { %9513 = vst [vmem:[#allocation38_spill] sm:$0xff] %v6896_v51  ;;  %584 = vmatmul.bf16.gmra.mxu0 %v6892_v54  ;;  %v4747_v51 = vld [vmem:[%s9364_s0 + $0x130] sm:$0xf] }
 0x144   :  { %842 = vmatmul.bf16.gmra.mxu2 %v6892_v54  ;;  %v939_v47 = vpop.f32.mrf.mxu3  ;;  %v6922_v50 = vor.u32 %v5913_v11, %v4747_v51  ;;  %v4765_v54 = vld [vmem:[%s9364_s0 + $0x158] sm:$0xf0] }
 0x146   :  { %9517 = vst [vmem:[#allocation42_spill] sm:$0xff] %v6922_v50 }
 0x147   :  { %v803_v62 = vpop.f32.mrf.mxu2 }
 0x148   :  { %v6908_v49 = vadd.f32 %v932_v25, %v803_v62  ;;  %v547_v43 = vpop.f32.mrf.mxu0 }
 0x149   :  { %v6910_v35 = vadd.f32 %v676_v9, %v547_v43  ;;  %4901 = vmatmul.msk.bf16.gmra.mxu3 %vm406_vm1, %v6906_v4 }
 0x14a   :  { %9515 = vst [vmem:[#allocation40_spill] sm:$0xff] %v6908_v49  ;;  %v684_v6 = vpop.f32.mrf.mxu1 }
 0x14b   :  { %9516 = vst [vmem:[#allocation41_spill] sm:$0xff] %v6910_v35  ;;  %v5916_v35 = vld [vmem:[%s9364_s0 + $0x154] sm:$0xf] }
 0x14c   :  { %v942_v34 = vpop.f32.mrf.mxu3  ;;  %v6936_v11 = vor.u32 %v5916_v35, %v4765_v54  ;;  %v5940_v54 = vld [vmem:[%s9365_s2 + $0x4] sm:$0xf] }
 0x14d   :  { %4877 = vmatmul.msk.bf16.gmra.mxu1 %vm406_vm1, %v6906_v4  ;;  %v5941_v4 = vld [vmem:[%s9365_s2 + $0x4] sm:$0xf0] }
 0x14e   :  { %9520 = vst [vmem:[#allocation45_spill] sm:$0xff] %v6936_v11 }
 0x14f   :  { %v805_v25 = vpop.f32.mrf.mxu2 }
 0x150   :  { %v6924_v9 = vadd.f32 %v934_v27, %v805_v25  ;;  %v550_v62 = vpop.f32.mrf.mxu0 }
 0x151   :  { %v6926_v43 = vadd.f32 %v679_v40, %v550_v62 }
 0x152   :  { %9518 = vst [vmem:[#allocation43_spill] sm:$0xff] %v6924_v9  ;;  %v686_v49 = vpop.f32.mrf.mxu1  ;;  %v4907_v9 = vld [vmem:[%s9365_s2] sm:$0xf] }
 0x153   :  { %9519 = vst [vmem:[#allocation44_spill] sm:$0xff] %v6926_v43  ;;  %589 = vmatmul.bf16.gmra.mxu0 %v6922_v50  ;;  %v4908_v35 = vor.u32 %v5941_v4, %v4907_v9 }
 0x154   :  { %847 = vmatmul.bf16.gmra.mxu2 %v6922_v50  ;;  %v944_v51 = vpop.f32.mrf.mxu3 }
 0x155   :  { %1121 = vmatpush.bf16.msrb.mxu1 %v4908_v35  ;;  %v4773_v35 = vld [vmem:[%s9364_s0 + $0x168] sm:$0xf0] }
 0x157   :  { %v808_v27 = vpop.f32.mrf.mxu2 }
 0x158   :  { %v6938_v25 = vadd.f32 %v937_v30, %v808_v27  ;;  %v552_v40 = vpop.f32.mrf.mxu0 }
 0x159   :  { %v6940_v62 = vadd.f32 %v681_v60, %v552_v40  ;;  %4902 = vmatmul.msk.bf16.gmra.mxu3 %vm406_vm1, %v6936_v11  ;;  %v4909_v60 = vld [vmem:[%s9365_s2 + $0x8] sm:$0xf0] }
 0x15a   :  { %9521 = vst [vmem:[#allocation46_spill] sm:$0xff] %v6938_v25  ;;  %v689_v30 = vpop.f32.mrf.mxu1  ;;  %v4912_v27 = vor.u32 %v5940_v54, %v4909_v60  ;;  %v4755_v25 = vld [vmem:[%s9364_s0 + $0x140] sm:$0xf] }
 0x15b   :  { %9522 = vst [vmem:[#allocation47_spill] sm:$0xff] %v6940_v62  ;;  %v5915_v62 = vld [vmem:[%s9364_s0 + $0x144] sm:$0xf0] }
 0x15c   :  { %v947_v40 = vpop.f32.mrf.mxu3  ;;  %1379 = vmatpush.bf16.msrb.mxu0 %v4912_v27  ;;  %v6964_v9 = vor.u32 %v5915_v62, %v4755_v25  ;;  %v6978_v62 = vor.u32 %v5918_v20, %v4773_v35  ;;  %v5917_v20 = vld [vmem:[%s9364_s0 + $0x154] sm:$0xf0] }
 0x15d   :  { %4878 = vmatmul.msk.bf16.gmra.mxu1 %vm406_vm1, %v6936_v11  ;;  %v4763_v11 = vld [vmem:[%s9364_s0 + $0x150] sm:$0xf] }
 0x15e   :  { %9523 = vst [vmem:[#allocation48_spill] sm:$0xff] %v6964_v9  ;;  %v6994_v35 = vor.u32 %v5917_v20, %v4763_v11 }
 0x15f   :  { %v810_v4 = vpop.f32.mrf.mxu2  ;;  %9526 = vst [vmem:[#allocation51_spill] sm:$0xff] %v6978_v62 }
 0x160   :  { %v6966_v43 = vadd.f32 %v939_v47, %v810_v4  ;;  %v555_v54 = vpop.f32.mrf.mxu0  ;;  %9529 = vst [vmem:[#allocation54_spill] sm:$0xff] %v6994_v35 }
 0x161   :  { %v6968_v60 = vadd.f32 %v684_v6, %v555_v54 }
 0x162   :  { %9524 = vst [vmem:[#allocation49_spill] sm:$0xff] %v6966_v43  ;;  %v691_v50 = vpop.f32.mrf.mxu1 }
 0x163   :  { %9525 = vst [vmem:[#allocation50_spill] sm:$0xff] %v6968_v60  ;;  %594 = vmatmul.bf16.gmra.mxu0 %v6964_v9  ;;  %v4781_v60 = vld [vmem:[%s9364_s0 + $0x178] sm:$0xf0] }
 0x164   :  { %852 = vmatmul.bf16.gmra.mxu2 %v6964_v9  ;;  %v949_v25 = vpop.f32.mrf.mxu3 }
 0x167   :  { %v813_v47 = vpop.f32.mrf.mxu2 }
 0x168   :  { %v6980_v27 = vadd.f32 %v942_v34, %v813_v47  ;;  %v557_v6 = vpop.f32.mrf.mxu0 }
 0x169   :  { %v6982_v4 = vadd.f32 %v686_v49, %v557_v6  ;;  %4903 = vmatmul.msk.bf16.gmra.mxu3 %vm406_vm1, %v6978_v62 }
 0x16a   :  { %9527 = vst [vmem:[#allocation52_spill] sm:$0xff] %v6980_v27  ;;  %v694_v54 = vpop.f32.mrf.mxu1 }
 0x16b   :  { %9528 = vst [vmem:[#allocation53_spill] sm:$0xff] %v6982_v4  ;;  %v5920_v4 = vld [vmem:[%s9364_s0 + $0x174] sm:$0xf] }
 0x16c   :  { %v952_v43 = vpop.f32.mrf.mxu3  ;;  %v7008_v20 = vor.u32 %v5920_v4, %v4781_v60  ;;  %v5919_v60 = vld [vmem:[%s9364_s0 + $0x164] sm:$0xf0] }
 0x16d   :  { %4879 = vmatmul.msk.bf16.gmra.mxu1 %vm406_vm1, %v6978_v62 }
 0x16e   :  { %9532 = vst [vmem:[#allocation57_spill] sm:$0xff] %v7008_v20 }
 0x16f   :  { %v815_v34 = vpop.f32.mrf.mxu2 }
 0x170   :  { %v6996_v49 = vadd.f32 %v944_v51, %v815_v34  ;;  %v560_v47 = vpop.f32.mrf.mxu0 }
 0x171   :  { %v6998_v6 = vadd.f32 %v689_v30, %v560_v47 }
 0x172   :  { %9530 = vst [vmem:[#allocation55_spill] sm:$0xff] %v6996_v49  ;;  %v696_v27 = vpop.f32.mrf.mxu1 }
 0x173   :  { %9531 = vst [vmem:[#allocation56_spill] sm:$0xff] %v6998_v6  ;;  %599 = vmatmul.bf16.gmra.mxu0 %v6994_v35  ;;  %v4771_v6 = vld [vmem:[%s9364_s0 + $0x160] sm:$0xf] }
 0x174   :  { %857 = vmatmul.bf16.gmra.mxu2 %v6994_v35  ;;  %v954_v11 = vpop.f32.mrf.mxu3  ;;  %v7024_v4 = vor.u32 %v5919_v60, %v4771_v6  ;;  %v5139_v35 = vld [vmem:[%s9366_s4 + $0x170] sm:$0xf]  ;;  %v6005_v6 = vld [vmem:[%s9366_s4 + $0x174] sm:$0xf0]  ;;  %v5141_v60 = vld [vmem:[%s9366_s4 + $0x178] sm:$0xf0] }
 0x176   :  { %9535 = vst [vmem:[#allocation60_spill] sm:$0xff] %v7024_v4 }
 0x177   :  { %v818_v51 = vpop.f32.mrf.mxu2 }
 0x178   :  { %v7010_v34 = vadd.f32 %v947_v40, %v818_v51  ;;  %v562_v30 = vpop.f32.mrf.mxu0 }
 0x179   :  { %v7012_v47 = vadd.f32 %v691_v50, %v562_v30  ;;  %4904 = vmatmul.msk.bf16.gmra.mxu3 %vm406_vm1, %v7008_v20 }
 0x17a   :  { %9533 = vst [vmem:[#allocation58_spill] sm:$0xff] %v7010_v34  ;;  %v699_v49 = vpop.f32.mrf.mxu1 }
 0x17b   :  { %9534 = vst [vmem:[#allocation59_spill] sm:$0xff] %v7012_v47 }
 0x17c   :  { %v957_v62 = vpop.f32.mrf.mxu3 }
 0x17d   :  { %4880 = vmatmul.msk.bf16.gmra.mxu1 %vm406_vm1, %v7008_v20 }
 0x17f   :  { %v820_v40 = vpop.f32.mrf.mxu2 }
 0x180   :  { %v7026_v50 = vadd.f32 %v949_v25, %v820_v40  ;;  %v565_v51 = vpop.f32.mrf.mxu0  ;;  %v6004_v25 = vld [vmem:[%s9366_s4 + $0x174] sm:$0xf] }
 0x181   :  { %v7028_v30 = vadd.f32 %v694_v54, %v565_v51  ;;  %v5140_v54 = vor.u32 %v6005_v6, %v5139_v35  ;;  %v5144_v40 = vor.u32 %v6004_v25, %v5141_v60  ;;  %v5107_v35 = vld [vmem:[%s9366_s4 + $0x130] sm:$0xf]  ;;  %v5997_v6 = vld [vmem:[%s9366_s4 + $0x134] sm:$0xf0] }
 0x182   :  { %9536 = vst [vmem:[#allocation61_spill] sm:$0xff] %v7026_v50  ;;  %v701_v34 = vpop.f32.mrf.mxu1 }
 0x183   :  { %9537 = vst [vmem:[#allocation62_spill] sm:$0xff] %v7028_v30  ;;  %604 = vmatmul.bf16.gmra.mxu0 %v7024_v4  ;;  %2459 = vmatpush.bf16.msra.mxu3 %v5140_v54  ;;  %v5108_v54 = vor.u32 %v5997_v6, %v5107_v35 }
 0x184   :  { %862 = vmatmul.bf16.gmra.mxu2 %v7024_v4  ;;  %v959_v47 = vpop.f32.mrf.mxu3 }
 0x185   :  { %2557 = vmatpush.bf16.msra.mxu2 %v5144_v40  ;;  %v4779_v40 = vld [vmem:[%s9364_s0 + $0x170] sm:$0xf]  ;;  %2406 = vmatpush.bf16.msra.mxu1 %v5108_v54 }
 0x187   :  { %v823_v51 = vpop.f32.mrf.mxu2 }
 0x188   :  { %v7044_v50 = vadd.f32 %v952_v43, %v823_v51  ;;  %v567_v20 = vpop.f32.mrf.mxu0  ;;  %v5996_v43 = vld [vmem:[%s9366_s4 + $0x134] sm:$0xf]  ;;  %v5921_v51 = vld [vmem:[%s9364_s0 + $0x174] sm:$0xf0] }
 0x189   :  { %v7046_v30 = vadd.f32 %v696_v27, %v567_v20  ;;  %4977 = vmatmul.msk.bf16.vlgmr.msrb.gmra.mxu3 %vm406_vm1, %v6217_v18  ;;  %v5109_v27 = vld [vmem:[%s9366_s4 + $0x138] sm:$0xf0]  ;;  %v7069_v35 = vor.u32 %v5921_v51, %v4779_v40 }
 0x18a   :  { %9538 = vst [vmem:[#allocation63_spill] sm:$0xff] %v7044_v50  ;;  %v704_v25 = vpop.f32.mrf.mxu1  ;;  %v5112_v20 = vor.u32 %v5996_v43, %v5109_v27 }
 0x18b   :  { %9539 = vst [vmem:[#allocation64_spill] sm:$0xff] %v7046_v30 }
 0x18c   :  { %v962_v60 = vpop.f32.mrf.mxu3  ;;  %2504 = vmatpush.bf16.msra.mxu0 %v5112_v20 }
 0x18d   :  { %1122 = vmatmul.bf16.vlgmr.msrb.gmra.mxu1 %v6345_v13 }
 0x18f   :  { %v825_v50 = vpop.f32.mrf.mxu2 }
 0x190   :  { %v7071_v6 = vadd.f32 %v954_v11, %v825_v50  ;;  %v570_v30 = vpop.f32.mrf.mxu0 }
 0x191   :  { %v7073_v43 = vadd.f32 %v699_v49, %v570_v30 }
 0x192   :  { %v706_v27 = vpop.f32.mrf.mxu1 }
 0x193   :  { %609 = vmatmul.bf16.gmra.mxu0 %v7069_v35 }
 0x194   :  { %867 = vmatmul.bf16.gmra.mxu2 %v7069_v35  ;;  %v964_v4 = vpop.f32.mrf.mxu3 }
 0x197   :  { %v828_v9 = vpop.f32.mrf.mxu2 }
 0x198   :  { %v7077_v7 = vadd.f32 %v957_v62, %v828_v9  ;;  %v572_v54 = vpop.f32.mrf.mxu0 }
 0x199   :  { %v7079_v22 = vadd.f32 %v701_v34, %v572_v54  ;;  %4978 = vmatmul.msk.bf16.gmra.mxu3 %vm406_vm1, %v6297_v56 }
 0x19a   :  { %9540 = vst [vmem:[#allocation65_spill] sm:$0xff] %v7077_v7  ;;  %v709_v11 = vpop.f32.mrf.mxu1 }
 0x19c   :  { %v967_v50 = vpop.f32.mrf.mxu3 }
 0x19d   :  { %1127 = vmatmul.bf16.gmra.mxu1 %v6368_v21 }
 0x19f   :  { %v830_v49 = vpop.f32.mrf.mxu2 }
 0x1a0   :  { %v7084_v30 = vadd.f32 %v959_v47, %v830_v49  ;;  %v575_v20 = vpop.f32.mrf.mxu0 }
 0x1a1   :  { %v7086_v40 = vadd.f32 %v704_v25, %v575_v20 }
 0x1a2   :  { %9541 = vst [vmem:[#allocation66_spill] sm:$0xff] %v7084_v30  ;;  %v711_v51 = vpop.f32.mrf.mxu1 }
 0x1a3   :  { %1380 = vmatmul.bf16.vlgmr.msrb.gmra.mxu0 %v6345_v13 }
 0x1a4   :  { %v969_v9 = vpop.f32.mrf.mxu3  ;;  %5001 = vmatmul.msk.bf16.vlgmr.msrb.gmra.mxu2 %vm406_vm1, %v6217_v18 }
 0x1a7   :  { %v833_v62 = vpop.f32.mrf.mxu2 }
 0x1a8   :  { %v7091_v34 = vadd.f32 %v962_v60, %v833_v62  ;;  %v577_v54 = vpop.f32.mrf.mxu0 }
 0x1a9   :  { %v7093_v7 = vadd.f32 %v706_v27, %v577_v54  ;;  %4979 = vmatmul.msk.bf16.gmra.mxu3 %vm406_vm1, %v6356_v17 }
 0x1aa   :  { %9542 = vst [vmem:[#allocation67_spill] sm:$0xff] %v7091_v34  ;;  %v714_v47 = vpop.f32.mrf.mxu1 }
 0x1ac   :  { %v972_v49 = vpop.f32.mrf.mxu3 }
 0x1ad   :  { %1132 = vmatmul.bf16.gmra.mxu1 %v6402_v33 }
 0x1af   :  { %v835_v25 = vpop.f32.mrf.mxu2 }
 0x1b0   :  { %v7098_v20 = vadd.f32 %v964_v4, %v835_v25  ;;  %v580_v13 = vpop.f32.mrf.mxu0  ;;  %v5099_v4 = vld [vmem:[%s9366_s4 + $0x120] sm:$0xf] }
 0x1b1   :  { %v7100_v30 = vadd.f32 %v709_v11, %v580_v13 }
 0x1b2   :  { %9543 = vst [vmem:[#allocation68_spill] sm:$0xff] %v7098_v20  ;;  %v716_v18 = vpop.f32.mrf.mxu1 }
 0x1b3   :  { %9544 = vst [vmem:[#allocation69_spill] sm:$0xff] %v7100_v30  ;;  %1385 = vmatmul.bf16.gmra.mxu0 %v6368_v21  ;;  %v5995_v21 = vld [vmem:[%s9366_s4 + $0x124] sm:$0xf0] }
 0x1b4   :  { %v974_v60 = vpop.f32.mrf.mxu3  ;;  %5002 = vmatmul.msk.bf16.gmra.mxu2 %vm406_vm1, %v6297_v56  ;;  %v5994_v56 = vld [vmem:[%s9366_s4 + $0x124] sm:$0xf] }
 0x1b7   :  { %v838_v27 = vpop.f32.mrf.mxu2 }
 0x1b8   :  { %v7105_v62 = vadd.f32 %v967_v50, %v838_v27  ;;  %v582_v54 = vpop.f32.mrf.mxu0  ;;  %v5100_v50 = vor.u32 %v5995_v21, %v5099_v4 }
 0x1b9   :  { %v7107_v34 = vadd.f32 %v711_v51, %v582_v54  ;;  %4980 = vmatmul.msk.bf16.gmra.mxu3 %vm406_vm1, %v6378_v24  ;;  %v5101_v51 = vld [vmem:[%s9366_s4 + $0x128] sm:$0xf0] }
 0x1ba   :  { %9545 = vst [vmem:[#allocation70_spill] sm:$0xff] %v7105_v62  ;;  %v719_v11 = vpop.f32.mrf.mxu1  ;;  %v5104_v25 = vor.u32 %v5994_v56, %v5101_v51  ;;  %2407 = vmatpush.bf16.msra.mxu1 %v5100_v50 }
 0x1bb   :  { %9546 = vst [vmem:[#allocation71_spill] sm:$0xff] %v7107_v34 }
 0x1bc   :  { %v977_v13 = vpop.f32.mrf.mxu3  ;;  %2505 = vmatpush.bf16.msra.mxu0 %v5104_v25 }
 0x1bd   :  { %1137 = vmatmul.bf16.gmra.mxu1 %v6424_v39 }
 0x1bf   :  { %v840_v27 = vpop.f32.mrf.mxu2 }
 0x1c0   :  { %v7124_v54 = vadd.f32 %v969_v9, %v840_v27  ;;  %v585_v62 = vpop.f32.mrf.mxu0 }
 0x1c1   :  { %v7126_v20 = vadd.f32 %v714_v47, %v585_v62 }
 0x1c2   :  { %9547 = vst [vmem:[#allocation72_spill] sm:$0xff] %v7124_v54  ;;  %v721_v34 = vpop.f32.mrf.mxu1 }
 0x1c3   :  { %9548 = vst [vmem:[#allocation73_spill] sm:$0xff] %v7126_v20  ;;  %1390 = vmatmul.bf16.gmra.mxu0 %v6402_v33 }
 0x1c4   :  { %v979_v4 = vpop.f32.mrf.mxu3  ;;  %5003 = vmatmul.msk.bf16.gmra.mxu2 %vm406_vm1, %v6356_v17 }
 0x1c7   :  { %v843_v21 = vpop.f32.mrf.mxu2 }
 0x1c8   :  { %v7131_v56 = vadd.f32 %v972_v49, %v843_v21  ;;  %v587_v50 = vpop.f32.mrf.mxu0 }
 0x1c9   :  { %v7133_v51 = vadd.f32 %v716_v18, %v587_v50  ;;  %4981 = vmatmul.msk.bf16.gmra.mxu3 %vm406_vm1, %v6412_v36 }
 0x1ca   :  { %9549 = vst [vmem:[#allocation74_spill] sm:$0xff] %v7131_v56  ;;  %v724_v9 = vpop.f32.mrf.mxu1 }
 0x1cb   :  { %9550 = vst [vmem:[#allocation75_spill] sm:$0xff] %v7133_v51 }
 0x1cc   :  { %v982_v25 = vpop.f32.mrf.mxu3 }
 0x1cd   :  { %1142 = vmatmul.bf16.gmra.mxu1 %v6446_v45 }
 0x1cf   :  { %v845_v47 = vpop.f32.mrf.mxu2 }
 0x1d0   :  { %v7138_v62 = vadd.f32 %v974_v60, %v845_v47  ;;  %v590_v33 = vpop.f32.mrf.mxu0 }
 0x1d1   :  { %v7140_v27 = vadd.f32 %v719_v11, %v590_v33 }
 0x1d2   :  { %9551 = vst [vmem:[#allocation76_spill] sm:$0xff] %v7138_v62  ;;  %v726_v17 = vpop.f32.mrf.mxu1 }
 0x1d3   :  { %9552 = vst [vmem:[#allocation77_spill] sm:$0xff] %v7140_v27  ;;  %1395 = vmatmul.bf16.gmra.mxu0 %v6424_v39 }
 0x1d4   :  { %v984_v49 = vpop.f32.mrf.mxu3  ;;  %5004 = vmatmul.msk.bf16.gmra.mxu2 %vm406_vm1, %v6378_v24 }
 0x1d7   :  { %v848_v18 = vpop.f32.mrf.mxu2 }
 0x1d8   :  { %v7145_v21 = vadd.f32 %v977_v13, %v848_v18  ;;  %v592_v50 = vpop.f32.mrf.mxu0  ;;  %v6003_v18 = vld [vmem:[%s9366_s4 + $0x164] sm:$0xf0] }
 0x1d9   :  { %v7147_v56 = vadd.f32 %v721_v34, %v592_v50  ;;  %4982 = vmatmul.msk.bf16.gmra.mxu3 %vm406_vm1, %v6434_v42  ;;  %v5131_v34 = vld [vmem:[%s9366_s4 + $0x160] sm:$0xf] }
 0x1da   :  { %9553 = vst [vmem:[#allocation78_spill] sm:$0xff] %v7145_v21  ;;  %v729_v60 = vpop.f32.mrf.mxu1 }
 0x1db   :  { %9554 = vst [vmem:[#allocation79_spill] sm:$0xff] %v7147_v56 }
 0x1dc   :  { %v987_v47 = vpop.f32.mrf.mxu3 }
 0x1dd   :  { %1147 = vmatmul.bf16.gmra.mxu1 %v6480_v58 }
 0x1df   :  { %v850_v11 = vpop.f32.mrf.mxu2 }
 0x1e0   :  { %v7152_v33 = vadd.f32 %v979_v4, %v850_v11  ;;  %v595_v39 = vpop.f32.mrf.mxu0  ;;  %v6002_v4 = vld [vmem:[%s9366_s4 + $0x164] sm:$0xf] }
 0x1e1   :  { %v7154_v62 = vadd.f32 %v724_v9, %v595_v39  ;;  %v5132_v9 = vor.u32 %v6003_v18, %v5131_v34  ;;  %v5091_v34 = vld [vmem:[%s9366_s4 + $0x110] sm:$0xf]  ;;  %v5993_v18 = vld [vmem:[%s9366_s4 + $0x114] sm:$0xf0] }
 0x1e2   :  { %9555 = vst [vmem:[#allocation80_spill] sm:$0xff] %v7152_v33  ;;  %v731_v24 = vpop.f32.mrf.mxu1 }
 0x1e3   :  { %9556 = vst [vmem:[#allocation81_spill] sm:$0xff] %v7154_v62  ;;  %1400 = vmatmul.bf16.gmra.mxu0 %v6446_v45  ;;  %v5133_v45 = vld [vmem:[%s9366_s4 + $0x168] sm:$0xf0]  ;;  %2460 = vmatpush.bf16.msra.mxu3 %v5132_v9  ;;  %v5092_v9 = vor.u32 %v5993_v18, %v5091_v34 }
 0x1e4   :  { %v989_v13 = vpop.f32.mrf.mxu3  ;;  %5005 = vmatmul.msk.bf16.gmra.mxu2 %vm406_vm1, %v6412_v36  ;;  %v5136_v50 = vor.u32 %v6002_v4, %v5133_v45 }
 0x1e5   :  { %2408 = vmatpush.bf16.msra.mxu1 %v5092_v9 }
 0x1e6   :  { %2558 = vmatpush.bf16.msra.mxu2 %v5136_v50 }
 0x1e7   :  { %v853_v11 = vpop.f32.mrf.mxu2 }
 0x1e8   :  { %v7171_v36 = vadd.f32 %v982_v25, %v853_v11  ;;  %v597_v39 = vpop.f32.mrf.mxu0  ;;  %v5992_v25 = vld [vmem:[%s9366_s4 + $0x114] sm:$0xf] }
 0x1e9   :  { %v7173_v33 = vadd.f32 %v726_v17, %v597_v39  ;;  %4983 = vmatmul.msk.bf16.gmra.mxu3 %vm406_vm1, %v6456_v48  ;;  %v5093_v17 = vld [vmem:[%s9366_s4 + $0x118] sm:$0xf0] }
 0x1ea   :  { %9557 = vst [vmem:[#allocation82_spill] sm:$0xff] %v7171_v36  ;;  %v734_v4 = vpop.f32.mrf.mxu1  ;;  %v5096_v45 = vor.u32 %v5992_v25, %v5093_v17 }
 0x1eb   :  { %9558 = vst [vmem:[#allocation83_spill] sm:$0xff] %v7173_v33 }
 0x1ec   :  { %v992_v50 = vpop.f32.mrf.mxu3  ;;  %2506 = vmatpush.bf16.msra.mxu0 %v5096_v45 }
 0x1ed   :  { %1152 = vmatmul.bf16.gmra.mxu1 %v6502_v0 }
 0x1ef   :  { %v855_v11 = vpop.f32.mrf.mxu2 }
 0x1f0   :  { %v7190_v39 = vadd.f32 %v984_v49, %v855_v11  ;;  %v600_v36 = vpop.f32.mrf.mxu0 }
 0x1f1   :  { %v7192_v21 = vadd.f32 %v729_v60, %v600_v36 }
 0x1f2   :  { %9559 = vst [vmem:[#allocation84_spill] sm:$0xff] %v7190_v39  ;;  %v736_v33 = vpop.f32.mrf.mxu1 }
 0x1f3   :  { %9560 = vst [vmem:[#allocation85_spill] sm:$0xff] %v7192_v21  ;;  %1405 = vmatmul.bf16.gmra.mxu0 %v6480_v58 }
 0x1f4   :  { %v994_v34 = vpop.f32.mrf.mxu3  ;;  %5006 = vmatmul.msk.bf16.gmra.mxu2 %vm406_vm1, %v6434_v42 }
 0x1f7   :  { %v858_v18 = vpop.f32.mrf.mxu2 }
 0x1f8   :  { %v7197_v25 = vadd.f32 %v987_v47, %v858_v18  ;;  %v602_v9 = vpop.f32.mrf.mxu0 }
 0x1f9   :  { %v7199_v17 = vadd.f32 %v731_v24, %v602_v9  ;;  %4984 = vmatmul.msk.bf16.gmra.mxu3 %vm406_vm1, %v6490_v61 }
 0x1fa   :  { %9561 = vst [vmem:[#allocation86_spill] sm:$0xff] %v7197_v25  ;;  %v739_v49 = vpop.f32.mrf.mxu1 }
 0x1fb   :  { %9562 = vst [vmem:[#allocation87_spill] sm:$0xff] %v7199_v17 }
 0x1fc   :  { %v997_v45 = vpop.f32.mrf.mxu3 }
 0x1fd   :  { %1157 = vmatmul.bf16.gmra.mxu1 %v6524_v8 }
 0x1ff   :  { %v860_v60 = vpop.f32.mrf.mxu2 }
 0x200   :  { %v7204_v36 = vadd.f32 %v989_v13, %v860_v60  ;;  %v605_v58 = vpop.f32.mrf.mxu0 }
 0x201   :  { %v7206_v11 = vadd.f32 %v734_v4, %v605_v58 }
 0x202   :  { %9563 = vst [vmem:[#allocation88_spill] sm:$0xff] %v7204_v36  ;;  %v741_v42 = vpop.f32.mrf.mxu1  ;;  %v5075_v36 = vld [vmem:[%s9366_s4 + $0xf0] sm:$0xf] }
 0x203   :  { %9564 = vst [vmem:[#allocation89_spill] sm:$0xff] %v7206_v11  ;;  %1410 = vmatmul.bf16.gmra.mxu0 %v6502_v0 }
 0x204   :  { %v999_v47 = vpop.f32.mrf.mxu3  ;;  %5007 = vmatmul.msk.bf16.gmra.mxu2 %vm406_vm1, %v6456_v48 }
 0x207   :  { %v863_v24 = vpop.f32.mrf.mxu2 }
 0x208   :  { %v7211_v18 = vadd.f32 %v992_v50, %v863_v24  ;;  %v607_v9 = vpop.f32.mrf.mxu0 }
 0x209   :  { %v7213_v25 = vadd.f32 %v736_v33, %v607_v9  ;;  %4985 = vmatmul.msk.bf16.gmra.mxu3 %vm406_vm1, %v6512_v3 }
 0x20a   :  { %9565 = vst [vmem:[#allocation90_spill] sm:$0xff] %v7211_v18  ;;  %v1123_v13 = vpop.f32.mrf.mxu1 }
 0x20b   :  { %9566 = vst [vmem:[#allocation91_spill] sm:$0xff] %v7213_v25 }
 0x20c   :  { %v1252_v60 = vpop.f32.mrf.mxu3 }
 0x20d   :  { %v7217_v4 = vadd.f32 %v1252_v60, %v1123_v13  ;;  %1162 = vmatmul.bf16.gmra.mxu1 %v6558_v29 }
 0x20f   :  { %v865_v58 = vpop.f32.mrf.mxu2 }
 0x210   :  { %v7222_v48 = vadd.f32 %v994_v34, %v865_v58  ;;  %v610_v50 = vpop.f32.mrf.mxu0 }
 0x211   :  { %v7224_v24 = vadd.f32 %v739_v49, %v610_v50 }
 0x212   :  { %9567 = vst [vmem:[#allocation92_spill] sm:$0xff] %v7222_v48  ;;  %v1125_v33 = vpop.f32.mrf.mxu1 }
 0x213   :  { %9568 = vst [vmem:[#allocation93_spill] sm:$0xff] %v7224_v24  ;;  %1415 = vmatmul.bf16.gmra.mxu0 %v6524_v8 }
 0x214   :  { %v1254_v9 = vpop.f32.mrf.mxu3  ;;  %5008 = vmatmul.msk.bf16.gmra.mxu2 %vm406_vm1, %v6490_v61  ;;  %v5083_v61 = vld [vmem:[%s9366_s4 + $0x100] sm:$0xf] }
 0x215   :  { %v7229_v13 = vadd.f32 %v1254_v9, %v1125_v33 }
 0x217   :  { %v868_v18 = vpop.f32.mrf.mxu2 }
 0x218   :  { %v7233_v0 = vadd.f32 %v997_v45, %v868_v18  ;;  %v612_v34 = vpop.f32.mrf.mxu0  ;;  %v5991_v45 = vld [vmem:[%s9366_s4 + $0x104] sm:$0xf0] }
 0x219   :  { %v7235_v58 = vadd.f32 %v741_v42, %v612_v34  ;;  %4986 = vmatmul.msk.bf16.gmra.mxu3 %vm406_vm1, %v6534_v14  ;;  %v5990_v42 = vld [vmem:[%s9366_s4 + $0x104] sm:$0xf]  ;;  %v5084_v9 = vor.u32 %v5991_v45, %v5083_v61  ;;  %v5085_v34 = vld [vmem:[%s9366_s4 + $0x108] sm:$0xf0] }
 0x21a   :  { %9569 = vst [vmem:[#allocation94_spill] sm:$0xff] %v7233_v0  ;;  %v1128_v49 = vpop.f32.mrf.mxu1  ;;  %v5088_v60 = vor.u32 %v5990_v42, %v5085_v34 }
 0x21b   :  { %9570 = vst [vmem:[#allocation95_spill] sm:$0xff] %v7235_v58  ;;  %2409 = vmatpush.bf16.msra.mxu1 %v5084_v9 }
 0x21c   :  { %v1257_v8 = vpop.f32.mrf.mxu3  ;;  %2507 = vmatpush.bf16.msra.mxu0 %v5088_v60 }
 0x21d   :  { %v7239_v50 = vadd.f32 %v1257_v8, %v1128_v49  ;;  %1167 = vmatmul.bf16.gmra.mxu1 %v6586_v52 }
 0x21f   :  { %v870_v33 = vpop.f32.mrf.mxu2 }
 0x220   :  { %v7256_v49 = vadd.f32 %v999_v47, %v870_v33  ;;  %v1381_v8 = vpop.f32.mrf.mxu0 }
 0x222   :  { %9571 = vst [vmem:[#allocation96_spill] sm:$0xff] %v7256_v49  ;;  %v1130_v0 = vpop.f32.mrf.mxu1 }
 0x223   :  { %1420 = vmatmul.bf16.gmra.mxu0 %v6558_v29 }
 0x224   :  { %v1259_v48 = vpop.f32.mrf.mxu3  ;;  %5009 = vmatmul.msk.bf16.gmra.mxu2 %vm406_vm1, %v6512_v3 }
 0x225   :  { %v7261_v18 = vadd.f32 %v1259_v48, %v1130_v0 }
 0x227   :  { %v1510_v45 = vpop.f32.mrf.mxu2 }
 0x228   :  { %v7265_v58 = vadd.f32 %v1510_v45, %v1381_v8  ;;  %v1383_v47 = vpop.f32.mrf.mxu0 }
 0x229   :  { %4987 = vmatmul.msk.bf16.gmra.mxu3 %vm406_vm1, %v6570_v38 }
 0x22a   :  { %v1133_v29 = vpop.f32.mrf.mxu1 }
 0x22c   :  { %v1262_v42 = vpop.f32.mrf.mxu3 }
 0x22d   :  { %v7271_v33 = vadd.f32 %v1262_v42, %v1133_v29  ;;  %1172 = vmatmul.bf16.gmra.mxu1 %v6616_v12 }
 0x22f   :  { %v1512_v0 = vpop.f32.mrf.mxu2 }
 0x230   :  { %v7276_v48 = vadd.f32 %v1512_v0, %v1383_v47  ;;  %v1386_v9 = vpop.f32.mrf.mxu0 }
 0x232   :  { %v1135_v8 = vpop.f32.mrf.mxu1 }
 0x233   :  { %1425 = vmatmul.bf16.gmra.mxu0 %v6586_v52 }
 0x234   :  { %v1264_v45 = vpop.f32.mrf.mxu3  ;;  %5010 = vmatmul.msk.bf16.gmra.mxu2 %vm406_vm1, %v6534_v14 }
 0x235   :  { %v7283_v29 = vadd.f32 %v1264_v45, %v1135_v8 }
 0x237   :  { %v1515_v3 = vpop.f32.mrf.mxu2 }
 0x238   :  { %v7287_v60 = vadd.f32 %v1515_v3, %v1386_v9  ;;  %v1388_v47 = vpop.f32.mrf.mxu0 }
 0x239   :  { %4988 = vmatmul.msk.bf16.gmra.mxu3 %vm406_vm1, %v6600_v63 }
 0x23a   :  { %v1138_v52 = vpop.f32.mrf.mxu1 }
 0x23c   :  { %v1267_v34 = vpop.f32.mrf.mxu3 }
 0x23d   :  { %v7293_v61 = vadd.f32 %v1267_v34, %v1138_v52  ;;  %1177 = vmatmul.bf16.gmra.mxu1 %v6658_v57 }
 0x23f   :  { %v1517_v8 = vpop.f32.mrf.mxu2 }
 0x240   :  { %v7298_v45 = vadd.f32 %v1517_v8, %v1388_v47  ;;  %v1391_v3 = vpop.f32.mrf.mxu0 }
 0x242   :  { %v1140_v42 = vpop.f32.mrf.mxu1 }
 0x243   :  { %1430 = vmatmul.bf16.gmra.mxu0 %v6616_v12 }
 0x244   :  { %v1269_v0 = vpop.f32.mrf.mxu3  ;;  %5011 = vmatmul.msk.bf16.gmra.mxu2 %vm406_vm1, %v6570_v38  ;;  %v5123_v38 = vld [vmem:[%s9366_s4 + $0x150] sm:$0xf] }
 0x245   :  { %v7305_v34 = vadd.f32 %v1269_v0, %v1140_v42  ;;  %v6001_v42 = vld [vmem:[%s9366_s4 + $0x154] sm:$0xf0] }
 0x246   :  { %v5124_v52 = vor.u32 %v6001_v42, %v5123_v38  ;;  %v5989_v38 = vld [vmem:[%s9366_s4 + $0xf4] sm:$0xf0] }
 0x247   :  { %v1520_v14 = vpop.f32.mrf.mxu2  ;;  %v5076_v25 = vor.u32 %v5989_v38, %v5075_v36 }
 0x248   :  { %v7309_v49 = vadd.f32 %v1520_v14, %v1391_v3  ;;  %v1393_v47 = vpop.f32.mrf.mxu0  ;;  %v6000_v14 = vld [vmem:[%s9366_s4 + $0x154] sm:$0xf]  ;;  %v5125_v3 = vld [vmem:[%s9366_s4 + $0x158] sm:$0xf0]  ;;  %2461 = vmatpush.bf16.msra.mxu3 %v5124_v52 }
 0x249   :  { %4989 = vmatmul.msk.bf16.gmra.mxu3 %vm406_vm1, %v6630_v26  ;;  %v5128_v9 = vor.u32 %v6000_v14, %v5125_v3  ;;  %v5077_v52 = vld [vmem:[%s9366_s4 + $0xf8] sm:$0xf0]  ;;  %2410 = vmatpush.bf16.msra.mxu1 %v5076_v25 }
 0x24a   :  { %v1143_v12 = vpop.f32.mrf.mxu1 }
 0x24b   :  { %2559 = vmatpush.bf16.msra.mxu2 %v5128_v9 }
 0x24c   :  { %v1272_v0 = vpop.f32.mrf.mxu3 }
 0x24d   :  { %v7327_v8 = vadd.f32 %v1272_v0, %v1143_v12  ;;  %1182 = vmatmul.bf16.gmra.mxu1 %v6688_v37  ;;  %v5988_v12 = vld [vmem:[%s9366_s4 + $0xf4] sm:$0xf] }
 0x24e   :  { %v5080_v3 = vor.u32 %v5988_v12, %v5077_v52  ;;  %v9572_v12 = vld [vmem:[#allocation2_spill] sm:$0xff] }
 0x24f   :  { %v1522_v24 = vpop.f32.mrf.mxu2 }
 0x250   :  { %v7344_v0 = vadd.f32 %v1522_v24, %v1393_v47  ;;  %v1396_v14 = vpop.f32.mrf.mxu0  ;;  %2508 = vmatpush.bf16.msra.mxu0 %v5080_v3 }
 0x252   :  { %v1145_v42 = vpop.f32.mrf.mxu1 }
 0x253   :  { %1435 = vmatmul.bf16.gmra.mxu0 %v6658_v57 }
 0x254   :  { %v1274_v36 = vpop.f32.mrf.mxu3  ;;  %5012 = vmatmul.msk.bf16.gmra.mxu2 %vm406_vm1, %v6600_v63  ;;  %v9573_v63 = vld [vmem:[#allocation6_spill] sm:$0xff] }
 0x255   :  { %v7351_v9 = vadd.f32 %v1274_v36, %v1145_v42  ;;  %v9574_v42 = vld [vmem:[#allocation8_spill] sm:$0xff] }
 0x257   :  { %v1525_v47 = vpop.f32.mrf.mxu2 }
 0x258   :  { %v7355_v38 = vadd.f32 %v1525_v47, %v1396_v14  ;;  %v1398_v25 = vpop.f32.mrf.mxu0 }
 0x259   :  { %4990 = vmatmul.msk.bf16.gmra.mxu3 %vm406_vm1, %v6672_v16 }
 0x25a   :  { %v1148_v57 = vpop.f32.mrf.mxu1 }
 0x25c   :  { %v1277_v3 = vpop.f32.mrf.mxu3 }
 0x25d   :  { %v7361_v39 = vadd.f32 %v1277_v3, %v1148_v57  ;;  %1187 = vmatmul.bf16.gmra.mxu1 %v9573_v63 }
 0x25f   :  { %v1527_v24 = vpop.f32.mrf.mxu2 }
 0x260   :  { %v7366_v11 = vadd.f32 %v1527_v24, %v1398_v25  ;;  %v1401_v14 = vpop.f32.mrf.mxu0  ;;  %v9580_v25 = vld [vmem:[#allocation4_spill] sm:$0xff] }
 0x262   :  { %9575 = vst [vmem:[#allocation2_spill] sm:$0xff] %v7366_v11  ;;  %v1150_v21 = vpop.f32.mrf.mxu1 }
 0x263   :  { %1440 = vmatmul.bf16.gmra.mxu0 %v6688_v37 }
 0x264   :  { %v1279_v52 = vpop.f32.mrf.mxu3  ;;  %5013 = vmatmul.msk.bf16.gmra.mxu2 %vm406_vm1, %v6630_v26  ;;  %v9583_v26 = vld [vmem:[#allocation12_spill] sm:$0xff] }
 0x265   :  { %v7373_v57 = vadd.f32 %v1279_v52, %v1150_v21 }
 0x267   :  { %9577 = vst [vmem:[#allocation6_spill] sm:$0xff] %v7373_v57  ;;  %v1530_v36 = vpop.f32.mrf.mxu2 }
 0x268   :  { %v7377_v56 = vadd.f32 %v1530_v36, %v1401_v14  ;;  %v1403_v24 = vpop.f32.mrf.mxu0 }
 0x269   :  { %4991 = vmatmul.msk.bf16.gmra.mxu3 %vm406_vm1, %v9580_v25 }
 0x26a   :  { %9579 = vst [vmem:[#allocation8_spill] sm:$0xff] %v7377_v56  ;;  %v1153_v37 = vpop.f32.mrf.mxu1 }
 0x26c   :  { %v1282_v27 = vpop.f32.mrf.mxu3 }
 0x26d   :  { %v7383_v51 = vadd.f32 %v1282_v27, %v1153_v37  ;;  %1192 = vmatmul.bf16.gmra.mxu1 %v9583_v26 }
 0x26f   :  { %9582 = vst [vmem:[#allocation4_spill] sm:$0xff] %v7383_v51  ;;  %v1532_v62 = vpop.f32.mrf.mxu2 }
 0x270   :  { %v7388_v20 = vadd.f32 %v1532_v62, %v1403_v24  ;;  %v1406_v36 = vpop.f32.mrf.mxu0  ;;  %v9590_v24 = vld [vmem:[#allocation9_spill] sm:$0xff] }
 0x272   :  { %9585 = vst [vmem:[#allocation12_spill] sm:$0xff] %v7388_v20  ;;  %v1155_v3 = vpop.f32.mrf.mxu1 }
 0x273   :  { %1445 = vmatmul.bf16.gmra.mxu0 %v9573_v63 }
 0x274   :  { %v1284_v54 = vpop.f32.mrf.mxu3  ;;  %5014 = vmatmul.msk.bf16.gmra.mxu2 %vm406_vm1, %v6672_v16  ;;  %v9593_v16 = vld [vmem:[#allocation18_spill] sm:$0xff] }
 0x275   :  { %v7395_v27 = vadd.f32 %v1284_v54, %v1155_v3  ;;  %v5067_v54 = vld [vmem:[%s9366_s4 + $0xe0] sm:$0xf]  ;;  %v5987_v3 = vld [vmem:[%s9366_s4 + $0xe4] sm:$0xf0] }
 0x277   :  { %9587 = vst [vmem:[#allocation97_spill] sm:$0xff] %v7395_v27  ;;  %v1535_v52 = vpop.f32.mrf.mxu2  ;;  %v5068_v27 = vor.u32 %v5987_v3, %v5067_v54 }
 0x278   :  { %v7399_v51 = vadd.f32 %v1535_v52, %v1406_v36  ;;  %v1408_v62 = vpop.f32.mrf.mxu0 }
 0x279   :  { %4992 = vmatmul.msk.bf16.gmra.mxu3 %vm406_vm1, %v9590_v24  ;;  %2411 = vmatpush.bf16.msra.mxu1 %v5068_v27 }
 0x27a   :  { %9589 = vst [vmem:[#allocation98_spill] sm:$0xff] %v7399_v51  ;;  %v1158_v63 = vpop.f32.mrf.mxu1 }
 0x27c   :  { %v1287_v14 = vpop.f32.mrf.mxu3 }
 0x27d   :  { %v7405_v21 = vadd.f32 %v1287_v14, %v1158_v63  ;;  %1197 = vmatmul.bf16.gmra.mxu1 %v9593_v16  ;;  %v5986_v14 = vld [vmem:[%s9366_s4 + $0xe4] sm:$0xf]  ;;  %v5069_v63 = vld [vmem:[%s9366_s4 + $0xe8] sm:$0xf0] }
 0x27e   :  { %v5072_v57 = vor.u32 %v5986_v14, %v5069_v63  ;;  %v9600_v14 = vld [vmem:[#allocation15_spill] sm:$0xff] }
 0x27f   :  { %9592 = vst [vmem:[#allocation9_spill] sm:$0xff] %v7405_v21  ;;  %v1537_v56 = vpop.f32.mrf.mxu2 }
 0x280   :  { %v7422_v20 = vadd.f32 %v1537_v56, %v1408_v62  ;;  %v1411_v51 = vpop.f32.mrf.mxu0  ;;  %2509 = vmatpush.bf16.msra.mxu0 %v5072_v57 }
 0x282   :  { %9595 = vst [vmem:[#allocation18_spill] sm:$0xff] %v7422_v20  ;;  %v1160_v11 = vpop.f32.mrf.mxu1 }
 0x283   :  { %1450 = vmatmul.bf16.gmra.mxu0 %v9583_v26 }
 0x284   :  { %v1289_v54 = vpop.f32.mrf.mxu3  ;;  %5015 = vmatmul.msk.bf16.gmra.mxu2 %vm406_vm1, %v9580_v25  ;;  %v9603_v25 = vld [vmem:[#allocation24_spill] sm:$0xff] }
 0x285   :  { %v7429_v3 = vadd.f32 %v1289_v54, %v1160_v11 }
 0x287   :  { %9597 = vst [vmem:[#allocation99_spill] sm:$0xff] %v7429_v3  ;;  %v1540_v62 = vpop.f32.mrf.mxu2 }
 0x288   :  { %v7433_v21 = vadd.f32 %v1540_v62, %v1411_v51  ;;  %v1413_v27 = vpop.f32.mrf.mxu0 }
 0x289   :  { %4993 = vmatmul.msk.bf16.gmra.mxu3 %vm406_vm1, %v9600_v14 }
 0x28a   :  { %9599 = vst [vmem:[#allocation100_spill] sm:$0xff] %v7433_v21  ;;  %v1163_v26 = vpop.f32.mrf.mxu1 }
 0x28c   :  { %v1292_v17 = vpop.f32.mrf.mxu3 }
 0x28d   :  { %v7439_v20 = vadd.f32 %v1292_v17, %v1163_v26  ;;  %1202 = vmatmul.bf16.gmra.mxu1 %v9603_v25 }
 0x28f   :  { %9602 = vst [vmem:[#allocation15_spill] sm:$0xff] %v7439_v20  ;;  %v1542_v56 = vpop.f32.mrf.mxu2 }
 0x290   :  { %v7444_v3 = vadd.f32 %v1542_v56, %v1413_v27  ;;  %v1416_v51 = vpop.f32.mrf.mxu0  ;;  %v9610_v27 = vld [vmem:[#allocation21_spill] sm:$0xff] }
 0x292   :  { %9605 = vst [vmem:[#allocation24_spill] sm:$0xff] %v7444_v3  ;;  %v1165_v37 = vpop.f32.mrf.mxu1 }
 0x293   :  { %1455 = vmatmul.bf16.gmra.mxu0 %v9593_v16 }
 0x294   :  { %v1294_v63 = vpop.f32.mrf.mxu3  ;;  %5016 = vmatmul.msk.bf16.gmra.mxu2 %vm406_vm1, %v9590_v24  ;;  %v9613_v24 = vld [vmem:[#allocation30_spill] sm:$0xff] }
 0x295   :  { %v7451_v17 = vadd.f32 %v1294_v63, %v1165_v37 }
 0x297   :  { %9607 = vst [vmem:[#allocation101_spill] sm:$0xff] %v7451_v17  ;;  %v1545_v54 = vpop.f32.mrf.mxu2 }
 0x298   :  { %v7455_v20 = vadd.f32 %v1545_v54, %v1416_v51  ;;  %v1418_v56 = vpop.f32.mrf.mxu0 }
 0x299   :  { %4994 = vmatmul.msk.bf16.gmra.mxu3 %vm406_vm1, %v9610_v27 }
 0x29a   :  { %9609 = vst [vmem:[#allocation102_spill] sm:$0xff] %v7455_v20  ;;  %v1168_v16 = vpop.f32.mrf.mxu1 }
 0x29c   :  { %v1297_v62 = vpop.f32.mrf.mxu3 }
 0x29d   :  { %v7461_v11 = vadd.f32 %v1297_v62, %v1168_v16  ;;  %1207 = vmatmul.bf16.gmra.mxu1 %v9613_v24 }
 0x29f   :  { %9612 = vst [vmem:[#allocation21_spill] sm:$0xff] %v7461_v11  ;;  %v1547_v21 = vpop.f32.mrf.mxu2 }
 0x2a0   :  { %v7466_v17 = vadd.f32 %v1547_v21, %v1418_v56  ;;  %v1421_v54 = vpop.f32.mrf.mxu0  ;;  %v9620_v56 = vld [vmem:[#allocation27_spill] sm:$0xff] }
 0x2a2   :  { %9615 = vst [vmem:[#allocation30_spill] sm:$0xff] %v7466_v17  ;;  %v1170_v57 = vpop.f32.mrf.mxu1 }
 0x2a3   :  { %1460 = vmatmul.bf16.gmra.mxu0 %v9603_v25 }
 0x2a4   :  { %v1299_v3 = vpop.f32.mrf.mxu3  ;;  %5017 = vmatmul.msk.bf16.gmra.mxu2 %vm406_vm1, %v9600_v14  ;;  %v5115_v14 = vld [vmem:[%s9366_s4 + $0x140] sm:$0xf] }
 0x2a5   :  { %v7473_v62 = vadd.f32 %v1299_v3, %v1170_v57  ;;  %v5999_v3 = vld [vmem:[%s9366_s4 + $0x144] sm:$0xf0] }
 0x2a6   :  { %v5116_v20 = vor.u32 %v5999_v3, %v5115_v14  ;;  %v5985_v14 = vld [vmem:[%s9366_s4 + $0xd4] sm:$0xf0] }
 0x2a7   :  { %9617 = vst [vmem:[#allocation103_spill] sm:$0xff] %v7473_v62  ;;  %v1550_v63 = vpop.f32.mrf.mxu2  ;;  %v5059_v62 = vld [vmem:[%s9366_s4 + $0xd0] sm:$0xf] }
 0x2a8   :  { %v7477_v11 = vadd.f32 %v1550_v63, %v1421_v54  ;;  %v1423_v21 = vpop.f32.mrf.mxu0  ;;  %v5998_v63 = vld [vmem:[%s9366_s4 + $0x144] sm:$0xf]  ;;  %v5117_v54 = vld [vmem:[%s9366_s4 + $0x148] sm:$0xf0]  ;;  %2462 = vmatpush.bf16.msra.mxu3 %v5116_v20  ;;  %v5060_v37 = vor.u32 %v5985_v14, %v5059_v62  ;;  %v5061_v20 = vld [vmem:[%s9366_s4 + $0xd8] sm:$0xf0] }
 0x2a9   :  { %4995 = vmatmul.msk.bf16.gmra.mxu3 %vm406_vm1, %v9620_v56  ;;  %v5120_v26 = vor.u32 %v5998_v63, %v5117_v54 }
 0x2aa   :  { %9619 = vst [vmem:[#allocation104_spill] sm:$0xff] %v7477_v11  ;;  %v1173_v25 = vpop.f32.mrf.mxu1  ;;  %v9623_v11 = vld [vmem:[#allocation36_spill] sm:$0xff]  ;;  %2412 = vmatpush.bf16.msra.mxu1 %v5060_v37 }
 0x2ab   :  { %2560 = vmatpush.bf16.msra.mxu2 %v5120_v26 }
 0x2ac   :  { %v1302_v57 = vpop.f32.mrf.mxu3 }
 0x2ad   :  { %v7495_v17 = vadd.f32 %v1302_v57, %v1173_v25  ;;  %1212 = vmatmul.bf16.gmra.mxu1 %v9623_v11  ;;  %v5984_v25 = vld [vmem:[%s9366_s4 + $0xd4] sm:$0xf] }
 0x2ae   :  { %v5064_v54 = vor.u32 %v5984_v25, %v5061_v20  ;;  %v9630_v25 = vld [vmem:[#allocation33_spill] sm:$0xff] }
 0x2af   :  { %9622 = vst [vmem:[#allocation27_spill] sm:$0xff] %v7495_v17  ;;  %v1552_v51 = vpop.f32.mrf.mxu2 }
 0x2b0   :  { %v7512_v57 = vadd.f32 %v1552_v51, %v1423_v21  ;;  %v1426_v63 = vpop.f32.mrf.mxu0  ;;  %2510 = vmatpush.bf16.msra.mxu0 %v5064_v54 }
 0x2b2   :  { %9625 = vst [vmem:[#allocation36_spill] sm:$0xff] %v7512_v57  ;;  %v1175_v16 = vpop.f32.mrf.mxu1 }
 0x2b3   :  { %1465 = vmatmul.bf16.gmra.mxu0 %v9613_v24 }
 0x2b4   :  { %v1304_v26 = vpop.f32.mrf.mxu3  ;;  %5018 = vmatmul.msk.bf16.gmra.mxu2 %vm406_vm1, %v9610_v27  ;;  %v9633_v27 = vld [vmem:[#allocation42_spill] sm:$0xff] }
 0x2b5   :  { %v7519_v62 = vadd.f32 %v1304_v26, %v1175_v16 }
 0x2b7   :  { %9627 = vst [vmem:[#allocation105_spill] sm:$0xff] %v7519_v62  ;;  %v1555_v21 = vpop.f32.mrf.mxu2 }
 0x2b8   :  { %v7523_v17 = vadd.f32 %v1555_v21, %v1426_v63  ;;  %v1428_v37 = vpop.f32.mrf.mxu0 }
 0x2b9   :  { %4996 = vmatmul.msk.bf16.gmra.mxu3 %vm406_vm1, %v9630_v25 }
 0x2ba   :  { %9629 = vst [vmem:[#allocation106_spill] sm:$0xff] %v7523_v17  ;;  %v1178_v24 = vpop.f32.mrf.mxu1  ;;  %v9642_v17 = vld [vmem:[#allocation48_spill] sm:$0xff] }
 0x2bc   :  { %v1307_v52 = vpop.f32.mrf.mxu3 }
 0x2bd   :  { %v7529_v57 = vadd.f32 %v1307_v52, %v1178_v24  ;;  %1217 = vmatmul.bf16.gmra.mxu1 %v9633_v27 }
 0x2bf   :  { %9632 = vst [vmem:[#allocation33_spill] sm:$0xff] %v7529_v57  ;;  %v1557_v51 = vpop.f32.mrf.mxu2 }
 0x2c0   :  { %v7534_v62 = vadd.f32 %v1557_v51, %v1428_v37  ;;  %v1431_v63 = vpop.f32.mrf.mxu0  ;;  %v1726_v51 = vld [vmem:[%s9367_s3] sm:$0x3] }
 0x2c2   :  { %9635 = vst [vmem:[#allocation42_spill] sm:$0xff] %v7534_v62  ;;  %v1180_v36 = vpop.f32.mrf.mxu1  ;;  %v9640_v62 = vld [vmem:[#allocation39_spill] sm:$0xff] }
 0x2c3   :  { %1470 = vmatmul.bf16.gmra.mxu0 %v9623_v11 }
 0x2c4   :  { %v1309_v54 = vpop.f32.mrf.mxu3  ;;  %5019 = vmatmul.msk.bf16.gmra.mxu2 %vm406_vm1, %v9620_v56 }
 0x2c5   :  { %v7541_v52 = vadd.f32 %v1309_v54, %v1180_v36  ;;  %v7554_v36 = vperm.slane %v1726_v51, 0 }
 0x2c7   :  { %9637 = vst [vmem:[#allocation107_spill] sm:$0xff] %v7541_v52  ;;  %v1560_v26 = vpop.f32.mrf.mxu2  ;;  %v9643_v52 = vmax.f32 %v6560_v31, %v7217_v4 }
 0x2c8   :  { %v7548_v37 = vadd.f32 %v1560_v26, %v1431_v63  ;;  %v1433_v14 = vpop.f32.mrf.mxu0  ;;  %v9644_v63 = vld [vmem:[#allocation50_spill] sm:$0xff] }
 0x2c9   :  { %4997 = vmatmul.msk.bf16.gmra.mxu3 %vm406_vm1, %v9640_v62  ;;  %v1732_v26 = vadd.f32 %v7554_v36, %v9643_v52 }
 0x2ca   :  { %9639 = vst [vmem:[#allocation108_spill] sm:$0xff] %v7548_v37  ;;  %v1183_v56 = vpop.f32.mrf.mxu1  ;;  %v9646_v37 = vld [vmem:[#allocation43_spill] sm:$0xff] }
 0x2cc   :  { %v1312_v54 = vpop.f32.mrf.mxu3 }
 0x2cd   :  { %v1313_v57 = vadd.f32 %v1312_v54, %v1183_v56  ;;  %1222 = vmatmul.bf16.gmra.mxu1 %v9642_v17  ;;  %v1828_v56 = vmax.f32 %v1732_v26, 0.0  ;;  %v9650_v26 = vld [vmem:[#allocation45_spill] sm:$0xff] }
 0x2cf   :  { %v1678_v24 = vmax.f32 %v9644_v63, %v1313_v57  ;;  %v1562_v16 = vpop.f32.mrf.mxu2  ;;  %v9647_v57 = vmax.f32 %v6574_v44, %v7229_v13 }
 0x2d0   :  { %v7562_v20 = vadd.f32 %v1562_v16, %v1433_v14  ;;  %v1436_v3 = vpop.f32.mrf.mxu0  ;;  %v9648_v16 = vld [vmem:[#allocation53_spill] sm:$0xff] }
 0x2d1   :  { %v1780_v21 = vadd.f32 %v7554_v36, %v1678_v24  ;;  %v1734_v14 = vadd.f32 %v7554_v36, %v9647_v57 }
 0x2d2   :  { %9645 = vst [vmem:[#allocation39_spill] sm:$0xff] %v7562_v20  ;;  %v1185_v47 = vpop.f32.mrf.mxu1 }
 0x2d3   :  { %v1876_v54 = vmax.f32 %v1780_v21, 0.0  ;;  %1475 = vmatmul.bf16.gmra.mxu0 %v9633_v27 }
 0x2d4   :  { %v1314_v30 = vpop.f32.mrf.mxu3  ;;  %5020 = vmatmul.msk.bf16.gmra.mxu2 %vm406_vm1, %v9630_v25  ;;  %v9651_v25 = vld [vmem:[#allocation46_spill] sm:$0xff] }
 0x2d5   :  { %v7570_v31 = vmax.f32 %v1828_v56, %v1876_v54  ;;  %v1315_v4 = vadd.f32 %v1314_v30, %v1185_v47  ;;  %v1830_v47 = vmax.f32 %v1734_v14, 0.0 }
 0x2d7   :  { %v1680_v52 = vmax.f32 %v9648_v16, %v1315_v4  ;;  %v1565_v24 = vpop.f32.mrf.mxu2  ;;  %v9652_v4 = vld [vmem:[#allocation54_spill] sm:$0xff] }
 0x2d8   :  { %v7577_v63 = vadd.f32 %v1565_v24, %v1436_v3  ;;  %v1438_v21 = vpop.f32.mrf.mxu0  ;;  %v9653_v3 = vmax.f32 %v6590_v55, %v7239_v50  ;;  %v5051_v55 = vld [vmem:[%s9366_s4 + $0xc0] sm:$0xf]  ;;  %v5983_v50 = vld [vmem:[%s9366_s4 + $0xc4] sm:$0xf0] }
 0x2d9   :  { %v1782_v27 = vadd.f32 %v7554_v36, %v1680_v52  ;;  %4998 = vmatmul.msk.bf16.gmra.mxu3 %vm406_vm1, %v9650_v26  ;;  %v9654_v52 = vld [vmem:[#allocation56_spill] sm:$0xff] }
 0x2da   :  { %9649 = vst [vmem:[#allocation48_spill] sm:$0xff] %v7577_v63  ;;  %v1188_v30 = vpop.f32.mrf.mxu1  ;;  %v1736_v16 = vadd.f32 %v7554_v36, %v9653_v3  ;;  %v7614_v3 = vperm.slane %v1726_v51, 1  ;;  %v9660_v51 = vmax.f32 %v6572_v41, %v7265_v58  ;;  %v9663_v41 = vmax.f32 %v6620_v19, %v7271_v33 }
 0x2db   :  { %v1878_v54 = vmax.f32 %v1782_v27, 0.0  ;;  %v9656_v27 = vld [vmem:[#allocation49_spill] sm:$0xff] }
 0x2dc   :  { %v1317_v44 = vpop.f32.mrf.mxu3  ;;  %v1740_v58 = vadd.f32 %v7554_v36, %v9663_v41 }
 0x2dd   :  { %v7584_v13 = vmax.f32 %v1830_v47, %v1878_v54  ;;  %v1318_v57 = vadd.f32 %v1317_v44, %v1188_v30  ;;  %1227 = vmatmul.bf16.gmra.mxu1 %v9652_v4  ;;  %v1832_v30 = vmax.f32 %v1736_v16, 0.0 }
 0x2de   :  { %v1836_v33 = vmax.f32 %v1740_v58, 0.0  ;;  %v9668_v58 = vld [vmem:[#allocation64_spill] sm:$0xff] }
 0x2df   :  { %v1682_v24 = vmax.f32 %v9654_v52, %v1318_v57  ;;  %v1567_v11 = vpop.f32.mrf.mxu2  ;;  %v9657_v52 = vmax.f32 %v6604_v5, %v7261_v18  ;;  %v9661_v5 = vld [vmem:[#allocation52_spill] sm:$0xff] }
 0x2e0   :  { %v7592_v20 = vadd.f32 %v1567_v11, %v1438_v21  ;;  %v1441_v56 = vpop.f32.mrf.mxu0  ;;  %v5982_v11 = vld [vmem:[%s9366_s4 + $0xc4] sm:$0xf] }
 0x2e1   :  { %v1784_v14 = vadd.f32 %v7554_v36, %v1682_v24  ;;  %v1738_v24 = vadd.f32 %v7554_v36, %v9657_v52 }
 0x2e2   :  { %9655 = vst [vmem:[#allocation50_spill] sm:$0xff] %v7592_v20  ;;  %v1190_v54 = vpop.f32.mrf.mxu1 }
 0x2e3   :  { %v1880_v44 = vmax.f32 %v1784_v14, 0.0  ;;  %1480 = vmatmul.bf16.gmra.mxu0 %v9642_v17  ;;  %v5052_v17 = vor.u32 %v5983_v50, %v5051_v55  ;;  %v9658_v14 = vld [vmem:[#allocation59_spill] sm:$0xff]  ;;  %v1733_v55 = vadd.f32 %v7614_v3, %v9660_v51 }
 0x2e4   :  { %v1319_v63 = vpop.f32.mrf.mxu3  ;;  %5021 = vmatmul.msk.bf16.gmra.mxu2 %vm406_vm1, %v9640_v62  ;;  %v5053_v62 = vld [vmem:[%s9366_s4 + $0xc8] sm:$0xf0] }
 0x2e5   :  { %v7609_v21 = vmax.f32 %v1832_v30, %v1880_v44  ;;  %v1320_v57 = vadd.f32 %v1319_v63, %v1190_v54  ;;  %v5056_v16 = vor.u32 %v5982_v11, %v5053_v62  ;;  %2413 = vmatpush.bf16.msra.mxu1 %v5052_v17  ;;  %v9659_v54 = vld [vmem:[#allocation51_spill] sm:$0xff]  ;;  %v1834_v11 = vmax.f32 %v1738_v24, 0.0 }
 0x2e7   :  { %v1684_v47 = vmax.f32 %v9658_v14, %v1320_v57  ;;  %v1570_v20 = vpop.f32.mrf.mxu2  ;;  %2511 = vmatpush.bf16.msra.mxu0 %v5056_v16  ;;  %v1829_v16 = vmax.f32 %v1733_v55, 0.0  ;;  %v9664_v14 = vld [vmem:[#allocation62_spill] sm:$0xff] }
 0x2e8   :  { %v1571_v30 = vadd.f32 %v1570_v20, %v1441_v56  ;;  %v1443_v44 = vpop.f32.mrf.mxu0 }
 0x2e9   :  { %v1786_v63 = vadd.f32 %v7554_v36, %v1684_v47  ;;  %4999 = vmatmul.msk.bf16.gmra.mxu3 %vm406_vm1, %v9659_v54  ;;  %v9662_v47 = vld [vmem:[#allocation60_spill] sm:$0xff] }
 0x2ea   :  { %v1679_v18 = vmax.f32 %v9661_v5, %v1571_v30  ;;  %v1193_v50 = vpop.f32.mrf.mxu1 }
 0x2eb   :  { %v1882_v57 = vmax.f32 %v1786_v63, 0.0 }
 0x2ec   :  { %v1781_v17 = vadd.f32 %v7614_v3, %v1679_v18  ;;  %v1322_v20 = vpop.f32.mrf.mxu3 }
 0x2ed   :  { %v7630_v56 = vmax.f32 %v1834_v11, %v1882_v57  ;;  %v1323_v62 = vadd.f32 %v1322_v20, %v1193_v50  ;;  %1232 = vmatmul.bf16.gmra.mxu1 %v9662_v47  ;;  %v9665_v50 = vmax.f32 %v6588_v53, %v7276_v48  ;;  %v9666_v57 = vld [vmem:[#allocation55_spill] sm:$0xff] }
 0x2ee   :  { %v1877_v52 = vmax.f32 %v1781_v17, 0.0 }
 0x2ef   :  { %v1686_v30 = vmax.f32 %v9664_v14, %v1323_v62  ;;  %v1572_v51 = vpop.f32.mrf.mxu2  ;;  %v1735_v11 = vadd.f32 %v7614_v3, %v9665_v50 }
 0x2f0   :  { %v2069_v24 = vmax.f32 %v1829_v16, %v1877_v52  ;;  %v1573_v63 = vadd.f32 %v1572_v51, %v1443_v44  ;;  %v1446_v5 = vpop.f32.mrf.mxu0 }
 0x2f1   :  { %v1788_v18 = vadd.f32 %v7554_v36, %v1686_v30  ;;  %v1831_v48 = vmax.f32 %v1735_v11, 0.0 }
 0x2f2   :  { %v2116_v55 = vpack.c.bf16 %v2069_v24, %v7570_v31  ;;  %v1681_v17 = vmax.f32 %v9666_v57, %v1573_v63  ;;  %v1195_v19 = vpop.f32.mrf.mxu1  ;;  %v9667_v31 = vmax.f32 %v6634_v32, %v7283_v29  ;;  %v9671_v29 = vld [vmem:[#allocation58_spill] sm:$0xff] }
 0x2f3   :  { %v1884_v20 = vmax.f32 %v1788_v18, 0.0  ;;  %1485 = vmatmul.bf16.gmra.mxu0 %v9652_v4  ;;  %v9669_v18 = vld [vmem:[#allocation57_spill] sm:$0xff] }
 0x2f4   :  { %v1783_v62 = vadd.f32 %v7614_v3, %v1681_v17  ;;  %v1324_v44 = vpop.f32.mrf.mxu3  ;;  %5022 = vmatmul.msk.bf16.gmra.mxu2 %vm406_vm1, %v9650_v26  ;;  %v1742_v41 = vadd.f32 %v7554_v36, %v9667_v31  ;;  %v9670_v26 = vmax.f32 %v6602_v2, %v7287_v60 }
 0x2f5   :  { %v7649_v16 = vmax.f32 %v1836_v33, %v1884_v20  ;;  %v1325_v53 = vadd.f32 %v1324_v44, %v1195_v19  ;;  %v2604_v19 = vunpack.c.l.b16 %v2116_v55 }
 0x2f6   :  { %v1879_v52 = vmax.f32 %v1783_v62, 0.0  ;;  %v1737_v50 = vadd.f32 %v7614_v3, %v9670_v26  ;;  %v1838_v17 = vmax.f32 %v1742_v41, 0.0  ;;  %v9672_v41 = vmax.f32 %v6662_v1, %v7293_v61 }
 0x2f7   :  { %v1688_v14 = vmax.f32 %v9668_v58, %v1325_v53  ;;  %v1575_v30 = vpop.f32.mrf.mxu2  ;;  %v9673_v26 = vmax.f32 %v6618_v15, %v7298_v45 }
 0x2f8   :  { %v2071_v4 = vmax.f32 %v1831_v48, %v1879_v52  ;;  %v1576_v51 = vadd.f32 %v1575_v30, %v1446_v5  ;;  %v1448_v24 = vpop.f32.mrf.mxu0  ;;  %v2605_v5 = vunpack.c.h.b16 %v2116_v55  ;;  %v1833_v2 = vmax.f32 %v1737_v50, 0.0 }
 0x2f9   :  { %v1790_v63 = vadd.f32 %v7554_v36, %v1688_v14  ;;  %5000 = vmatmul.msk.bf16.gmra.mxu3 %vm406_vm1, %v9669_v18  ;;  %v1744_v55 = vadd.f32 %v7554_v36, %v9672_v41  ;;  %v1739_v50 = vadd.f32 %v7614_v3, %v9673_v26 }
 0x2fa   :  { %v2117_v32 = vpack.c.bf16 %v2071_v4, %v7584_v13  ;;  %v1683_v11 = vmax.f32 %v9671_v29, %v1576_v51  ;;  %v1198_v57 = vpop.f32.mrf.mxu1  ;;  %v9674_v29 = vld [vmem:[#allocation61_spill] sm:$0xff] }
 0x2fb   :  { %v1886_v33 = vmax.f32 %v1790_v63, 0.0  ;;  %v1840_v61 = vmax.f32 %v1744_v55, 0.0  ;;  %v1835_v45 = vmax.f32 %v1739_v50, 0.0 }
 0x2fc   :  { %v2606_v20 = vunpack.c.l.b16 %v2117_v32  ;;  %v2607_v62 = vunpack.c.h.b16 %v2117_v32  ;;  %v1785_v44 = vadd.f32 %v7614_v3, %v1683_v11  ;;  %v1327_v53 = vpop.f32.mrf.mxu3 }
 0x2fd   :  { %v7666_v48 = vmax.f32 %v1838_v17, %v1886_v33  ;;  %v1328_v52 = vadd.f32 %v1327_v53, %v1198_v57  ;;  %1237 = vmatmul.bf16.gmra.mxu1 %v7069_v35 }
 0x2fe   :  { %v7669_v60 = vpack.c.b16 %v2607_v62, %v2605_v5  ;;  %v1881_v13 = vmax.f32 %v1785_v44, 0.0  ;;  %v7671_v31 = vpack.c.b16 %v2606_v20, %v2604_v19 }
 0x2ff   :  { %v1690_v58 = vmax.f32 %v7073_v43, %v1328_v52  ;;  %v1577_v14 = vpop.f32.mrf.mxu2 }
 0x300   :  { %v2073_v30 = vmax.f32 %v1833_v2, %v1881_v13  ;;  %v1578_v4 = vadd.f32 %v1577_v14, %v1448_v24  ;;  %v1451_v51 = vpop.f32.mrf.mxu0  ;;  %v9677_v13 = vld [vmem:[#allocation63_spill] sm:$0xff] }
 0x301   :  { %v1792_v63 = vadd.f32 %v7554_v36, %v1690_v58 }
 0x302   :  { %v2118_v32 = vpack.c.bf16 %v2073_v30, %v7609_v21  ;;  %v1685_v11 = vmax.f32 %v9674_v29, %v1578_v4  ;;  %v1200_v1 = vpop.f32.mrf.mxu1  ;;  %v9675_v21 = vmax.f32 %v6676_v23, %v7305_v34  ;;  %v5251_v29 = vld [vmem:[%s9366_s4 + $0xb0] sm:$0xf] }
 0x303   :  { %v1888_v57 = vmax.f32 %v1792_v63, 0.0  ;;  %1490 = vmatmul.bf16.gmra.mxu0 %v9662_v47 }
 0x304   :  { %v1787_v43 = vadd.f32 %v7614_v3, %v1685_v11  ;;  %v1329_v24 = vpop.f32.mrf.mxu3  ;;  %5023 = vmatmul.msk.bf16.gmra.mxu2 %vm406_vm1, %v9659_v54  ;;  %v1746_v33 = vadd.f32 %v7554_v36, %v9675_v21  ;;  %v9676_v54 = vmax.f32 %v6632_v28, %v7309_v49  ;;  %v2205_v55 = vunpack.c.l.b16 %v2118_v32 }
 0x305   :  { %v7689_v17 = vmax.f32 %v1840_v61, %v1888_v57  ;;  %v1330_v15 = vadd.f32 %v1329_v24, %v1200_v1  ;;  %v9678_v11 = vmax.f32 %v6692_v46, %v7327_v8  ;;  %v5980_v24 = vld [vmem:[%s9366_s4 + $0xb4] sm:$0xf]  ;;  %v9679_v21 = vmax.f32 %v6660_v59, %v7344_v0  ;;  %v5219_v59 = vld [vmem:[%s9366_s4 + $0x70] sm:$0xf] }
 0x306   :  { %v1883_v19 = vmax.f32 %v1787_v43, 0.0  ;;  %v1741_v52 = vadd.f32 %v7614_v3, %v9676_v54  ;;  %v1842_v34 = vmax.f32 %v1746_v33, 0.0  ;;  %v5972_v0 = vld [vmem:[%s9366_s4 + $0x74] sm:$0xf] }
 0x307   :  { %v1692_v5 = vmax.f32 %v7079_v22, %v1330_v15  ;;  %v1580_v20 = vpop.f32.mrf.mxu2  ;;  %v2206_v22 = vunpack.c.h.b16 %v2118_v32  ;;  %v5981_v32 = vld [vmem:[%s9366_s4 + $0xb4] sm:$0xf0]  ;;  %v1748_v1 = vadd.f32 %v7554_v36, %v9678_v11  ;;  %v5253_v15 = vld [vmem:[%s9366_s4 + $0xb8] sm:$0xf0]  ;;  %v1743_v33 = vadd.f32 %v7614_v3, %v9679_v21 }
 0x308   :  { %v2075_v47 = vmax.f32 %v1835_v45, %v1883_v19  ;;  %v1581_v62 = vadd.f32 %v1580_v20, %v1451_v51  ;;  %v1453_v44 = vpop.f32.mrf.mxu0  ;;  %v1837_v28 = vmax.f32 %v1741_v52, 0.0  ;;  %v5252_v43 = vor.u32 %v5981_v32, %v5251_v29 }
 0x309   :  { %v1794_v53 = vadd.f32 %v7554_v36, %v1692_v5  ;;  %v5256_v8 = vor.u32 %v5980_v24, %v5253_v15 }
 0x30a   :  { %v2119_v2 = vpack.c.bf16 %v2075_v47, %v7630_v56  ;;  %v1687_v41 = vmax.f32 %v9677_v13, %v1581_v62  ;;  %v1203_v23 = vpop.f32.mrf.mxu1  ;;  %2787 = vmatpush.bf16.msrb.mxu3 %v5252_v43  ;;  %v1844_v62 = vmax.f32 %v1748_v1, 0.0 }
 0x30b   :  { %v1890_v58 = vmax.f32 %v1794_v53, 0.0  ;;  %2885 = vmatpush.bf16.msrb.mxu2 %v5256_v8  ;;  %v9684_v8 = vld [vmem:[#allocation69_spill] sm:$0xff] }
 0x30c   :  { %v2207_v14 = vunpack.c.l.b16 %v2119_v2  ;;  %v2208_v30 = vunpack.c.h.b16 %v2119_v2  ;;  %v1789_v4 = vadd.f32 %v7614_v3, %v1687_v41  ;;  %v1332_v51 = vpop.f32.mrf.mxu3  ;;  %v1839_v2 = vmax.f32 %v1743_v33, 0.0 }
 0x30d   :  { %v7704_v63 = vmax.f32 %v1842_v34, %v1890_v58  ;;  %v1333_v26 = vadd.f32 %v1332_v51, %v1203_v23  ;;  %v9680_v23 = vmax.f32 %v6706_v10, %v7351_v9  ;;  %v9681_v51 = vmax.f32 %v9572_v12, %v7355_v38  ;;  %v9682_v10 = vld [vmem:[#allocation65_spill] sm:$0xff] }
 0x30e   :  { %v7706_v49 = vpack.c.b16 %v2208_v30, %v2206_v22  ;;  %v1885_v56 = vmax.f32 %v1789_v4, 0.0  ;;  %v7708_v50 = vpack.c.b16 %v2207_v14, %v2205_v55 }
 0x30f   :  { %v1694_v61 = vmax.f32 %v7086_v40, %v1333_v26  ;;  %v1582_v57 = vpop.f32.mrf.mxu2  ;;  %v1750_v34 = vadd.f32 %v7554_v36, %v9680_v23  ;;  %v1745_v26 = vadd.f32 %v7614_v3, %v9681_v51 }
 0x310   :  { %v2077_v45 = vmax.f32 %v1837_v28, %v1885_v56  ;;  %v1583_v19 = vadd.f32 %v1582_v57, %v1453_v44  ;;  %2414 = vmatmul.bf16.vlgmr.msra.gmra.mxu1 %v7708_v50  ;;  %5145 = vmatmul.msk.bf16.vlgmr.msra.gmra.mxu3 %vm2381_vm2, %v7706_v49  ;;  %v1456_v46 = vpop.f32.mrf.mxu0 }
 0x311   :  { %v1796_v40 = vadd.f32 %v7554_v36, %v1694_v61  ;;  %v1846_v29 = vmax.f32 %v1750_v34, 0.0  ;;  %v1841_v38 = vmax.f32 %v1745_v26, 0.0 }
 0x312   :  { %v2120_v5 = vpack.c.bf16 %v2077_v45, %v7649_v16  ;;  %v1689_v20 = vmax.f32 %v7071_v6, %v1583_v19  ;;  %v1205_v47 = vpop.f32.mrf.mxu1  ;;  %v5973_v6 = vld [vmem:[%s9366_s4 + $0x74] sm:$0xf0]  ;;  %v9683_v19 = vmax.f32 %v9574_v42, %v7361_v39 }
 0x313   :  { %v1892_v44 = vmax.f32 %v1796_v40, 0.0  ;;  %1495 = vmatmul.bf16.gmra.mxu0 %v7069_v35  ;;  %v5220_v52 = vor.u32 %v5973_v6, %v5219_v59 }
 0x314   :  { %v1791_v53 = vadd.f32 %v7614_v3, %v1689_v20  ;;  %v1334_v54 = vpop.f32.mrf.mxu3  ;;  %5024 = vmatmul.msk.bf16.gmra.mxu2 %vm406_vm1, %v9669_v18  ;;  %v5221_v18 = vld [vmem:[%s9366_s4 + $0x78] sm:$0xf0]  ;;  %v2210_v11 = vunpack.c.h.b16 %v2120_v5 }
 0x315   :  { %v7750_v16 = vmax.f32 %v1844_v62, %v1892_v44  ;;  %v1335_v35 = vadd.f32 %v1334_v54, %v1205_v47  ;;  %v5224_v41 = vor.u32 %v5972_v0, %v5221_v18  ;;  %2734 = vmatpush.bf16.msrb.mxu1 %v5220_v52  ;;  %v9685_v62 = vld [vmem:[#allocation3_spill] sm:$0xff]  ;;  %v9686_v44 = vld [vmem:[#allocation2_spill] sm:$0xff] }
 0x316   :  { %v1887_v13 = vmax.f32 %v1791_v53, 0.0  ;;  %v9687_v53 = vmax.f32 %v9685_v62, %v9686_v44  ;;  %v9688_v54 = vld [vmem:[#allocation66_spill] sm:$0xff] }
 0x317   :  { %v1696_v55 = vmax.f32 %v7093_v7, %v1335_v35  ;;  %v1585_v58 = vpop.f32.mrf.mxu2  ;;  %2832 = vmatpush.bf16.msrb.mxu0 %v5224_v41  ;;  %v2209_v7 = vunpack.c.l.b16 %v2120_v5 }
 0x318   :  { %v2079_v22 = vmax.f32 %v1839_v2, %v1887_v13  ;;  %v1586_v14 = vadd.f32 %v1585_v58, %v1456_v46  ;;  %v1458_v30 = vpop.f32.mrf.mxu0  ;;  %v1752_v46 = vadd.f32 %v7554_v36, %v9683_v19  ;;  %v1747_v39 = vadd.f32 %v7614_v3, %v9687_v53  ;;  %v5211_v2 = vld [vmem:[%s9366_s4 + $0x60] sm:$0xf]  ;;  %v5970_v13 = vld [vmem:[%s9366_s4 + $0x64] sm:$0xf] }
 0x319   :  { %v1798_v4 = vadd.f32 %v7554_v36, %v1696_v55  ;;  %v5213_v55 = vld [vmem:[%s9366_s4 + $0x68] sm:$0xf0] }
 0x31a   :  { %v2121_v28 = vpack.c.bf16 %v2079_v22, %v7666_v48  ;;  %v1691_v9 = vmax.f32 %v9682_v10, %v1586_v14  ;;  %v1208_v56 = vpop.f32.mrf.mxu1  ;;  %v1848_v0 = vmax.f32 %v1752_v46, 0.0  ;;  %v1843_v58 = vmax.f32 %v1747_v39, 0.0 }
 0x31b   :  { %v1894_v32 = vmax.f32 %v1798_v4, 0.0  ;;  %v5216_v14 = vor.u32 %v5970_v13, %v5213_v55  ;;  %v9690_v4 = vld [vmem:[#allocation6_spill] sm:$0xff] }
 0x31c   :  { %v2211_v1 = vunpack.c.l.b16 %v2121_v28  ;;  %v2212_v61 = vunpack.c.h.b16 %v2121_v28  ;;  %v1793_v57 = vadd.f32 %v7614_v3, %v1691_v9  ;;  %v1337_v43 = vpop.f32.mrf.mxu3  ;;  %v9692_v28 = vld [vmem:[#allocation71_spill] sm:$0xff]  ;;  %v5978_v13 = vld [vmem:[%s9366_s4 + $0xa4] sm:$0xf] }
 0x31d   :  { %v7768_v24 = vmax.f32 %v1846_v29, %v1894_v32  ;;  %v1338_v15 = vadd.f32 %v1337_v43, %v1208_v56  ;;  %2833 = vmatpush.bf16.msrb.mxu0 %v5216_v14 }
 0x31e   :  { %v7770_v12 = vpack.c.b16 %v2211_v1, %v2209_v7  ;;  %v7772_v45 = vpack.c.b16 %v2212_v61, %v2210_v11  ;;  %v1889_v48 = vmax.f32 %v1793_v57, 0.0  ;;  %v9693_v11 = vld [vmem:[#allocation5_spill] sm:$0xff]  ;;  %v9694_v1 = vld [vmem:[#allocation8_spill] sm:$0xff] }
 0x31f   :  { %v1698_v40 = vmax.f32 %v9684_v8, %v1338_v15  ;;  %v1587_v21 = vpop.f32.mrf.mxu2  ;;  %v9695_v61 = vmax.f32 %v9693_v11, %v9694_v1  ;;  %v9696_v15 = vld [vmem:[#allocation67_spill] sm:$0xff]  ;;  %v5203_v1 = vld [vmem:[%s9366_s4 + $0x50] sm:$0xf] }
 0x320   :  { %v2081_v33 = vmax.f32 %v1841_v38, %v1889_v48  ;;  %v1588_v5 = vadd.f32 %v1587_v21, %v1458_v30  ;;  %2419 = vmatmul.bf16.gmra.mxu1 %v7770_v12  ;;  %5146 = vmatmul.msk.bf16.gmra.mxu3 %vm2381_vm2, %v7772_v45  ;;  %v1461_v20 = vpop.f32.mrf.mxu0  ;;  %v9689_v30 = vld [vmem:[#allocation11_spill] sm:$0xff] }
 0x321   :  { %v1800_v47 = vadd.f32 %v7554_v36, %v1698_v40  ;;  %v9691_v51 = vmax.f32 %v9689_v30, %v9690_v4  ;;  %v1749_v57 = vadd.f32 %v7614_v3, %v9695_v61  ;;  %v9701_v30 = vld [vmem:[#allocation7_spill] sm:$0xff]  ;;  %v9702_v4 = vld [vmem:[#allocation12_spill] sm:$0xff] }
 0x322   :  { %v2122_v42 = vpack.c.bf16 %v2081_v33, %v7689_v17  ;;  %v1693_v59 = vmax.f32 %v9688_v54, %v1588_v5  ;;  %v1210_v6 = vpop.f32.mrf.mxu1  ;;  %v5971_v17 = vld [vmem:[%s9366_s4 + $0x64] sm:$0xf0]  ;;  %v5243_v54 = vld [vmem:[%s9366_s4 + $0xa0] sm:$0xf]  ;;  %v5968_v61 = vld [vmem:[%s9366_s4 + $0x54] sm:$0xf] }
 0x323   :  { %v1896_v35 = vmax.f32 %v1800_v47, 0.0  ;;  %2512 = vmatmul.bf16.vlgmr.msra.gmra.mxu0 %v7708_v50  ;;  %v5212_v34 = vor.u32 %v5971_v17, %v5211_v2  ;;  %v1754_v26 = vadd.f32 %v7554_v36, %v9691_v51  ;;  %v1845_v44 = vmax.f32 %v1749_v57, 0.0 }
 0x324   :  { %v1795_v52 = vadd.f32 %v7614_v3, %v1693_v59  ;;  %v1339_v18 = vpop.f32.mrf.mxu3  ;;  %5153 = vmatmul.msk.bf16.vlgmr.msra.gmra.mxu2 %vm2381_vm2, %v7706_v49  ;;  %v2213_v46 = vunpack.c.l.b16 %v2122_v42  ;;  %v2214_v40 = vunpack.c.h.b16 %v2122_v42  ;;  %v5979_v42 = vld [vmem:[%s9366_s4 + $0xa4] sm:$0xf0]  ;;  %v9697_v59 = vld [vmem:[#allocation14_spill] sm:$0xff]  ;;  %v9703_v51 = vmax.f32 %v9701_v30, %v9702_v4 }
 0x325   :  { %v7802_v41 = vmax.f32 %v1848_v0, %v1896_v35  ;;  %v1340_v23 = vadd.f32 %v1339_v18, %v1210_v6  ;;  %2735 = vmatpush.bf16.msrb.mxu1 %v5212_v34  ;;  %v1850_v19 = vmax.f32 %v1754_v26, 0.0  ;;  %v9698_v6 = vld [vmem:[#allocation4_spill] sm:$0xff]  ;;  %v5244_v17 = vor.u32 %v5979_v42, %v5243_v54 }
 0x326   :  { %v1891_v22 = vmax.f32 %v1795_v52, 0.0  ;;  %v9699_v0 = vmax.f32 %v9697_v59, %v9698_v6  ;;  %v9700_v52 = vld [vmem:[#allocation73_spill] sm:$0xff]  ;;  %v1751_v26 = vadd.f32 %v7614_v3, %v9703_v51  ;;  %v9709_v59 = vld [vmem:[#allocation10_spill] sm:$0xff] }
 0x327   :  { %v1700_v10 = vmax.f32 %v9692_v28, %v1340_v23  ;;  %v1590_v9 = vpop.f32.mrf.mxu2  ;;  %v5245_v23 = vld [vmem:[%s9366_s4 + $0xa8] sm:$0xf0]  ;;  %2788 = vmatpush.bf16.msrb.mxu3 %v5244_v17  ;;  %v9710_v6 = vld [vmem:[#allocation98_spill] sm:$0xff] }
 0x328   :  { %v2083_v56 = vmax.f32 %v1843_v58, %v1891_v22  ;;  %v1591_v29 = vadd.f32 %v1590_v9, %v1461_v20  ;;  %v1463_v7 = vpop.f32.mrf.mxu0  ;;  %v1756_v35 = vadd.f32 %v7554_v36, %v9699_v0  ;;  %v5248_v22 = vor.u32 %v5978_v13, %v5245_v23 }
 0x329   :  { %v1802_v32 = vadd.f32 %v7554_v36, %v1700_v10  ;;  %v9704_v10 = vld [vmem:[#allocation68_spill] sm:$0xff]  ;;  %v9711_v0 = vmax.f32 %v9709_v59, %v9710_v6 }
 0x32a   :  { %v2123_v43 = vpack.c.bf16 %v2083_v56, %v7704_v63  ;;  %v1695_v38 = vmax.f32 %v9696_v15, %v1591_v29  ;;  %v1213_v48 = vpop.f32.mrf.mxu1  ;;  %2886 = vmatpush.bf16.msrb.mxu2 %v5248_v22  ;;  %v1852_v29 = vmax.f32 %v1756_v35, 0.0 }
 0x32b   :  { %v1898_v8 = vmax.f32 %v1802_v32, 0.0  ;;  %v1753_v35 = vadd.f32 %v7614_v3, %v9711_v0  ;;  %v5197_v0 = vld [vmem:[%s9366_s4 + $0x48] sm:$0xf0] }
 0x32c   :  { %v2215_v21 = vunpack.c.l.b16 %v2123_v43  ;;  %v2216_v33 = vunpack.c.h.b16 %v2123_v43  ;;  %v1797_v5 = vadd.f32 %v7614_v3, %v1695_v38  ;;  %v1342_v20 = vpop.f32.mrf.mxu3  ;;  %v5205_v38 = vld [vmem:[%s9366_s4 + $0x58] sm:$0xf0] }
 0x32d   :  { %v7820_v47 = vmax.f32 %v1850_v19, %v1898_v8  ;;  %v1343_v62 = vadd.f32 %v1342_v20, %v1213_v48  ;;  %v1847_v48 = vmax.f32 %v1751_v26, 0.0  ;;  %v9705_v8 = vld [vmem:[#allocation17_spill] sm:$0xff]  ;;  %v1849_v26 = vmax.f32 %v1753_v35, 0.0 }
 0x32e   :  { %v7822_v53 = vpack.c.b16 %v2215_v21, %v2213_v46  ;;  %v7824_v39 = vpack.c.b16 %v2216_v33, %v2214_v40  ;;  %v1893_v63 = vmax.f32 %v1797_v5, 0.0  ;;  %v5208_v46 = vor.u32 %v5968_v61, %v5205_v38  ;;  %v9706_v40 = vld [vmem:[#allocation97_spill] sm:$0xff]  ;;  %v9708_v5 = vld [vmem:[#allocation75_spill] sm:$0xff] }
 0x32f   :  { %v1702_v18 = vmax.f32 %v9700_v52, %v1343_v62  ;;  %v1592_v2 = vpop.f32.mrf.mxu2  ;;  %v9707_v21 = vmax.f32 %v9705_v8, %v9706_v40  ;;  %v9717_v38 = vld [vmem:[#allocation13_spill] sm:$0xff]  ;;  %v9720_v40 = vld [vmem:[#allocation72_spill] sm:$0xff] }
 0x330   :  { %v2085_v34 = vmax.f32 %v1845_v44, %v1893_v63  ;;  %v1593_v55 = vadd.f32 %v1592_v2, %v1463_v7  ;;  %2424 = vmatmul.bf16.gmra.mxu1 %v7822_v53  ;;  %5147 = vmatmul.msk.bf16.gmra.mxu3 %vm2381_vm2, %v7824_v39  ;;  %v1466_v58 = vpop.f32.mrf.mxu0 }
 0x331   :  { %v1804_v14 = vadd.f32 %v7554_v36, %v1702_v18  ;;  %v1758_v33 = vadd.f32 %v7554_v36, %v9707_v21  ;;  %2834 = vmatpush.bf16.msrb.mxu0 %v5208_v46  ;;  %v9712_v18 = vld [vmem:[#allocation70_spill] sm:$0xff] }
 0x332   :  { %v2124_v28 = vpack.c.bf16 %v2085_v34, %v7750_v16  ;;  %v1697_v9 = vmax.f32 %v9704_v10, %v1593_v55  ;;  %v1215_v56 = vpop.f32.mrf.mxu1  ;;  %v5969_v16 = vld [vmem:[%s9366_s4 + $0x54] sm:$0xf0] }
 0x333   :  { %v1900_v7 = vmax.f32 %v1804_v14, 0.0  ;;  %2517 = vmatmul.bf16.gmra.mxu0 %v7770_v12  ;;  %v5204_v15 = vor.u32 %v5969_v16, %v5203_v1  ;;  %v1854_v13 = vmax.f32 %v1758_v33, 0.0 }
 0x334   :  { %v1799_v32 = vadd.f32 %v7614_v3, %v1697_v9  ;;  %v1344_v11 = vpop.f32.mrf.mxu3  ;;  %5154 = vmatmul.msk.bf16.gmra.mxu2 %vm2381_vm2, %v7772_v45  ;;  %v2217_v23 = vunpack.c.l.b16 %v2124_v28  ;;  %v2218_v55 = vunpack.c.h.b16 %v2124_v28  ;;  %v9716_v28 = vld [vmem:[#allocation77_spill] sm:$0xff] }
 0x335   :  { %v7866_v57 = vmax.f32 %v1852_v29, %v1900_v7  ;;  %v1345_v43 = vadd.f32 %v1344_v11, %v1215_v56  ;;  %2736 = vmatpush.bf16.msrb.mxu1 %v5204_v15  ;;  %v9713_v56 = vld [vmem:[#allocation20_spill] sm:$0xff]  ;;  %v9714_v29 = vld [vmem:[#allocation9_spill] sm:$0xff] }
 0x336   :  { %v1895_v19 = vmax.f32 %v1799_v32, 0.0  ;;  %v9715_v7 = vmax.f32 %v9713_v56, %v9714_v29 }
 0x337   :  { %v1704_v20 = vmax.f32 %v9708_v5, %v1345_v43  ;;  %v1595_v62 = vpop.f32.mrf.mxu2 }
 0x338   :  { %v2087_v44 = vmax.f32 %v1847_v48, %v1895_v19  ;;  %v1596_v63 = vadd.f32 %v1595_v62, %v1466_v58  ;;  %v1468_v54 = vpop.f32.mrf.mxu0  ;;  %v1760_v32 = vadd.f32 %v7554_v36, %v9715_v7  ;;  %v9718_v48 = vld [vmem:[#allocation18_spill] sm:$0xff] }
 0x339   :  { %v1806_v42 = vadd.f32 %v7554_v36, %v1704_v20  ;;  %v9719_v19 = vmax.f32 %v9717_v38, %v9718_v48 }
 0x33a   :  { %v2125_v52 = vpack.c.bf16 %v2087_v44, %v7768_v24  ;;  %v1699_v2 = vmax.f32 %v9712_v18, %v1596_v63  ;;  %v1218_v17 = vpop.f32.mrf.mxu1  ;;  %v1856_v5 = vmax.f32 %v1760_v32, 0.0  ;;  %v5195_v63 = vld [vmem:[%s9366_s4 + $0x40] sm:$0xf] }
 0x33b   :  { %v1902_v34 = vmax.f32 %v1806_v42, 0.0  ;;  %v1755_v46 = vadd.f32 %v7614_v3, %v9719_v19  ;;  %v9728_v32 = vld [vmem:[#allocation74_spill] sm:$0xff] }
 0x33c   :  { %v2219_v22 = vunpack.c.l.b16 %v2125_v52  ;;  %v2220_v58 = vunpack.c.h.b16 %v2125_v52  ;;  %v1801_v14 = vadd.f32 %v7614_v3, %v1699_v2  ;;  %v1347_v30 = vpop.f32.mrf.mxu3  ;;  %v9721_v2 = vld [vmem:[#allocation23_spill] sm:$0xff] }
 0x33d   :  { %v7884_v4 = vmax.f32 %v1854_v13, %v1902_v34  ;;  %v1348_v51 = vadd.f32 %v1347_v30, %v1218_v17  ;;  %v1851_v35 = vmax.f32 %v1755_v46, 0.0  ;;  %v9722_v17 = vld [vmem:[#allocation99_spill] sm:$0xff] }
 0x33e   :  { %v7886_v10 = vpack.c.b16 %v2219_v22, %v2217_v23  ;;  %v7888_v9 = vpack.c.b16 %v2220_v58, %v2218_v55  ;;  %v1897_v24 = vmax.f32 %v1801_v14, 0.0  ;;  %v9723_v13 = vmax.f32 %v9721_v2, %v9722_v17  ;;  %v9724_v34 = vld [vmem:[#allocation79_spill] sm:$0xff] }
 0x33f   :  { %v1706_v11 = vmax.f32 %v9716_v28, %v1348_v51  ;;  %v1597_v1 = vpop.f32.mrf.mxu2 }
 0x340   :  { %v2089_v16 = vmax.f32 %v1849_v26, %v1897_v24  ;;  %v1598_v61 = vadd.f32 %v1597_v1, %v1468_v54  ;;  %2429 = vmatmul.bf16.gmra.mxu1 %v7886_v10  ;;  %5148 = vmatmul.msk.bf16.gmra.mxu3 %vm2381_vm2, %v7888_v9  ;;  %v1471_v43 = vpop.f32.mrf.mxu0  ;;  %v5966_v54 = vld [vmem:[%s9366_s4 + $0x44] sm:$0xf]  ;;  %v1762_v23 = vadd.f32 %v7554_v36, %v9723_v13  ;;  %v9725_v26 = vld [vmem:[#allocation16_spill] sm:$0xff] }
 0x341   :  { %v1808_v15 = vadd.f32 %v7554_v36, %v1706_v11  ;;  %v5200_v18 = vor.u32 %v5966_v54, %v5197_v0  ;;  %v9726_v24 = vld [vmem:[#allocation100_spill] sm:$0xff]  ;;  %v9732_v54 = vld [vmem:[#allocation81_spill] sm:$0xff] }
 0x342   :  { %v2126_v8 = vpack.c.bf16 %v2089_v16, %v7802_v41  ;;  %v1701_v21 = vmax.f32 %v9720_v40, %v1598_v61  ;;  %v1220_v33 = vpop.f32.mrf.mxu1  ;;  %v5967_v41 = vld [vmem:[%s9366_s4 + $0x44] sm:$0xf0]  ;;  %v9727_v56 = vmax.f32 %v9725_v26, %v9726_v24  ;;  %v1858_v1 = vmax.f32 %v1762_v23, 0.0 }
 0x343   :  { %v1904_v20 = vmax.f32 %v1808_v15, 0.0  ;;  %2522 = vmatmul.bf16.gmra.mxu0 %v7822_v53  ;;  %v5196_v6 = vor.u32 %v5967_v41, %v5195_v63 }
 0x344   :  { %v1803_v62 = vadd.f32 %v7614_v3, %v1701_v21  ;;  %v1349_v44 = vpop.f32.mrf.mxu3  ;;  %5155 = vmatmul.msk.bf16.gmra.mxu2 %vm2381_vm2, %v7824_v39  ;;  %2835 = vmatpush.bf16.msrb.mxu0 %v5200_v18  ;;  %v1757_v29 = vadd.f32 %v7614_v3, %v9727_v56  ;;  %v2221_v16 = vunpack.c.l.b16 %v2126_v8  ;;  %v2222_v15 = vunpack.c.h.b16 %v2126_v8  ;;  %v5977_v8 = vld [vmem:[%s9366_s4 + $0x94] sm:$0xf0] }
 0x345   :  { %v7918_v42 = vmax.f32 %v1856_v5, %v1904_v20  ;;  %v1350_v59 = vadd.f32 %v1349_v44, %v1220_v33  ;;  %2737 = vmatpush.bf16.msrb.mxu1 %v5196_v6  ;;  %v5235_v20 = vld [vmem:[%s9366_s4 + $0x90] sm:$0xf]  ;;  %v9730_v44 = vld [vmem:[#allocation15_spill] sm:$0xff] }
 0x346   :  { %v1899_v52 = vmax.f32 %v1803_v62, 0.0  ;;  %v1853_v21 = vmax.f32 %v1757_v29, 0.0  ;;  %v9729_v62 = vld [vmem:[#allocation26_spill] sm:$0xff]  ;;  %v5236_v0 = vor.u32 %v5977_v8, %v5235_v20 }
 0x347   :  { %v1708_v55 = vmax.f32 %v9724_v34, %v1350_v59  ;;  %v1600_v22 = vpop.f32.mrf.mxu2  ;;  %v9731_v63 = vmax.f32 %v9729_v62, %v9730_v44  ;;  %v9733_v34 = vld [vmem:[#allocation19_spill] sm:$0xff] }
 0x348   :  { %v2091_v58 = vmax.f32 %v1851_v35, %v1899_v52  ;;  %v1601_v14 = vadd.f32 %v1600_v22, %v1471_v43  ;;  %v1473_v30 = vpop.f32.mrf.mxu0  ;;  %v5976_v35 = vld [vmem:[%s9366_s4 + $0x94] sm:$0xf]  ;;  %v5237_v52 = vld [vmem:[%s9366_s4 + $0x98] sm:$0xf0]  ;;  %2789 = vmatpush.bf16.msrb.mxu3 %v5236_v0 }
 0x349   :  { %v1810_v51 = vadd.f32 %v7554_v36, %v1708_v55  ;;  %v1764_v41 = vadd.f32 %v7554_v36, %v9731_v63  ;;  %v5240_v13 = vor.u32 %v5976_v35, %v5237_v52  ;;  %v9734_v55 = vld [vmem:[#allocation24_spill] sm:$0xff]  ;;  %v9744_v52 = vld [vmem:[#allocation78_spill] sm:$0xff] }
 0x34a   :  { %v2127_v7 = vpack.c.bf16 %v2091_v58, %v7820_v47  ;;  %v1703_v28 = vmax.f32 %v9728_v32, %v1601_v14  ;;  %v1223_v11 = vpop.f32.mrf.mxu1  ;;  %v9735_v22 = vmax.f32 %v9733_v34, %v9734_v55  ;;  %v5187_v32 = vld [vmem:[%s9366_s4 + $0x30] sm:$0xf] }
 0x34b   :  { %v1906_v61 = vmax.f32 %v1810_v51, 0.0  ;;  %v9736_v51 = vld [vmem:[#allocation76_spill] sm:$0xff]  ;;  %2887 = vmatpush.bf16.msrb.mxu2 %v5240_v13  ;;  %v1860_v24 = vmax.f32 %v1764_v41, 0.0 }
 0x34c   :  { %v2223_v38 = vunpack.c.l.b16 %v2127_v7  ;;  %v2224_v43 = vunpack.c.h.b16 %v2127_v7  ;;  %v1805_v48 = vadd.f32 %v7614_v3, %v1703_v28  ;;  %v1352_v19 = vpop.f32.mrf.mxu3  ;;  %v1759_v58 = vadd.f32 %v7614_v3, %v9735_v22  ;;  %v5964_v28 = vld [vmem:[%s9366_s4 + $0x34] sm:$0xf] }
 0x34d   :  { %v7936_v46 = vmax.f32 %v1858_v1, %v1906_v61  ;;  %v1353_v40 = vadd.f32 %v1352_v19, %v1223_v11  ;;  %v5189_v61 = vld [vmem:[%s9366_s4 + $0x38] sm:$0xf0] }
 0x34e   :  { %v7938_v33 = vpack.c.b16 %v2223_v38, %v2221_v16  ;;  %v7940_v5 = vpack.c.b16 %v2224_v43, %v2222_v15  ;;  %v1901_v47 = vmax.f32 %v1805_v48, 0.0  ;;  %v1855_v15 = vmax.f32 %v1759_v58, 0.0  ;;  %v9737_v48 = vld [vmem:[#allocation29_spill] sm:$0xff] }
 0x34f   :  { %v1710_v59 = vmax.f32 %v9732_v54, %v1353_v40  ;;  %v1602_v6 = vpop.f32.mrf.mxu2  ;;  %v5192_v43 = vor.u32 %v5964_v28, %v5189_v61  ;;  %v9738_v19 = vld [vmem:[#allocation101_spill] sm:$0xff]  ;;  %v9741_v54 = vld [vmem:[#allocation22_spill] sm:$0xff] }
 0x350   :  { %v2093_v18 = vmax.f32 %v1853_v21, %v1901_v47  ;;  %v1603_v2 = vadd.f32 %v1602_v6, %v1473_v30  ;;  %2434 = vmatmul.bf16.gmra.mxu1 %v7938_v33  ;;  %5149 = vmatmul.msk.bf16.gmra.mxu3 %vm2381_vm2, %v7940_v5  ;;  %v1476_v17 = vpop.f32.mrf.mxu0  ;;  %v9739_v40 = vmax.f32 %v9737_v48, %v9738_v19  ;;  %v9740_v47 = vld [vmem:[#allocation83_spill] sm:$0xff]  ;;  %v9749_v48 = vld [vmem:[#allocation25_spill] sm:$0xff]  ;;  %v9750_v19 = vld [vmem:[#allocation30_spill] sm:$0xff] }
 0x351   :  { %v1812_v23 = vadd.f32 %v7554_v36, %v1710_v59  ;;  %2836 = vmatpush.bf16.msrb.mxu0 %v5192_v43  ;;  %v9742_v59 = vld [vmem:[#allocation102_spill] sm:$0xff] }
 0x352   :  { %v2128_v14 = vpack.c.bf16 %v2093_v18, %v7866_v57  ;;  %v1705_v26 = vmax.f32 %v9736_v51, %v1603_v2  ;;  %v1225_v30 = vpop.f32.mrf.mxu1  ;;  %v5965_v57 = vld [vmem:[%s9366_s4 + $0x34] sm:$0xf0]  ;;  %v1766_v21 = vadd.f32 %v7554_v36, %v9739_v40  ;;  %v9743_v6 = vmax.f32 %v9741_v54, %v9742_v59 }
 0x353   :  { %v1908_v56 = vmax.f32 %v1812_v23, 0.0  ;;  %2527 = vmatmul.bf16.gmra.mxu0 %v7886_v10  ;;  %v5188_v16 = vor.u32 %v5965_v57, %v5187_v32  ;;  %v9746_v32 = vld [vmem:[#allocation21_spill] sm:$0xff]  ;;  %v9751_v40 = vmax.f32 %v9749_v48, %v9750_v19  ;;  %v9760_v19 = vld [vmem:[#allocation82_spill] sm:$0xff] }
 0x354   :  { %v1807_v29 = vadd.f32 %v7614_v3, %v1705_v26  ;;  %v1354_v7 = vpop.f32.mrf.mxu3  ;;  %5156 = vmatmul.msk.bf16.gmra.mxu2 %vm2381_vm2, %v7888_v9  ;;  %v1761_v0 = vadd.f32 %v7614_v3, %v9743_v6  ;;  %v1862_v13 = vmax.f32 %v1766_v21, 0.0  ;;  %v2225_v23 = vunpack.c.l.b16 %v2128_v14 }
 0x355   :  { %v7982_v11 = vmax.f32 %v1860_v24, %v1908_v56  ;;  %v1355_v1 = vadd.f32 %v1354_v7, %v1225_v30  ;;  %2738 = vmatpush.bf16.msrb.mxu1 %v5188_v16  ;;  %v2226_v55 = vunpack.c.h.b16 %v2128_v14  ;;  %v9745_v7 = vld [vmem:[#allocation32_spill] sm:$0xff]  ;;  %v9748_v14 = vld [vmem:[#allocation85_spill] sm:$0xff]  ;;  %v1763_v21 = vadd.f32 %v7614_v3, %v9751_v40 }
 0x356   :  { %v1903_v38 = vmax.f32 %v1807_v29, 0.0  ;;  %v1857_v24 = vmax.f32 %v1761_v0, 0.0  ;;  %v9747_v57 = vmax.f32 %v9745_v7, %v9746_v32 }
 0x357   :  { %v1712_v20 = vmax.f32 %v9740_v47, %v1355_v1  ;;  %v1605_v8 = vpop.f32.mrf.mxu2 }
 0x358   :  { %v2095_v62 = vmax.f32 %v1855_v15, %v1903_v38  ;;  %v1606_v44 = vadd.f32 %v1605_v8, %v1476_v17  ;;  %v1478_v63 = vpop.f32.mrf.mxu0  ;;  %v1768_v28 = vadd.f32 %v7554_v36, %v9747_v57 }
 0x359   :  { %v1814_v41 = vadd.f32 %v7554_v36, %v1712_v20  ;;  %v9752_v20 = vld [vmem:[#allocation80_spill] sm:$0xff] }
 0x35a   :  { %v2129_v35 = vpack.c.bf16 %v2095_v62, %v7884_v4  ;;  %v1707_v18 = vmax.f32 %v9744_v52, %v1606_v44  ;;  %v1228_v2 = vpop.f32.mrf.mxu1  ;;  %v5179_v44 = vld [vmem:[%s9366_s4 + $0x20] sm:$0xf]  ;;  %v9753_v52 = vld [vmem:[#allocation35_spill] sm:$0xff] }
 0x35b   :  { %v1910_v34 = vmax.f32 %v1814_v41, 0.0  ;;  %v1864_v41 = vmax.f32 %v1768_v28, 0.0 }
 0x35c   :  { %v2227_v22 = vunpack.c.l.b16 %v2129_v35  ;;  %v2228_v17 = vunpack.c.h.b16 %v2129_v35  ;;  %v1809_v58 = vadd.f32 %v7614_v3, %v1707_v18  ;;  %v1357_v51 = vpop.f32.mrf.mxu3  ;;  %v5181_v35 = vld [vmem:[%s9366_s4 + $0x28] sm:$0xf0] }
 0x35d   :  { %v8000_v26 = vmax.f32 %v1862_v13, %v1910_v34  ;;  %v1358_v30 = vadd.f32 %v1357_v51, %v1228_v2  ;;  %v9754_v18 = vld [vmem:[#allocation103_spill] sm:$0xff]  ;;  %v5961_v51 = vld [vmem:[%s9366_s4 + $0x14] sm:$0xf0] }
 0x35e   :  { %v8002_v56 = vpack.c.b16 %v2227_v22, %v2225_v23  ;;  %v8004_v29 = vpack.c.b16 %v2228_v17, %v2226_v55  ;;  %v1905_v4 = vmax.f32 %v1809_v58, 0.0  ;;  %v9755_v2 = vmax.f32 %v9753_v52, %v9754_v18  ;;  %v5171_v58 = vld [vmem:[%s9366_s4 + $0x10] sm:$0xf] }
 0x35f   :  { %v1714_v1 = vmax.f32 %v9748_v14, %v1358_v30  ;;  %v1607_v16 = vpop.f32.mrf.mxu2  ;;  %v1859_v22 = vmax.f32 %v1763_v21, 0.0  ;;  %v9756_v30 = vld [vmem:[#allocation87_spill] sm:$0xff]  ;;  %v5172_v7 = vor.u32 %v5961_v51, %v5171_v58 }
 0x360   :  { %v2097_v61 = vmax.f32 %v1857_v24, %v1905_v4  ;;  %v1608_v15 = vadd.f32 %v1607_v16, %v1478_v63  ;;  %2439 = vmatmul.bf16.gmra.mxu1 %v8002_v56  ;;  %5150 = vmatmul.msk.bf16.gmra.mxu3 %vm2381_vm2, %v8004_v29  ;;  %v1481_v38 = vpop.f32.mrf.mxu0  ;;  %v5963_v63 = vld [vmem:[%s9366_s4 + $0x24] sm:$0xf0]  ;;  %v1770_v13 = vadd.f32 %v7554_v36, %v9755_v2  ;;  %v9757_v16 = vld [vmem:[#allocation28_spill] sm:$0xff] }
 0x361   :  { %v1816_v43 = vadd.f32 %v7554_v36, %v1714_v1  ;;  %v5180_v59 = vor.u32 %v5963_v63, %v5179_v44 }
 0x362   :  { %v2130_v47 = vpack.c.bf16 %v2097_v61, %v7918_v42  ;;  %v1709_v8 = vmax.f32 %v9752_v20, %v1608_v15  ;;  %v1230_v62 = vpop.f32.mrf.mxu1  ;;  %v5962_v42 = vld [vmem:[%s9366_s4 + $0x24] sm:$0xf]  ;;  %v1866_v14 = vmax.f32 %v1770_v13, 0.0  ;;  %v9758_v61 = vld [vmem:[#allocation104_spill] sm:$0xff]  ;;  %v5227_v20 = vld [vmem:[%s9366_s4 + $0x80] sm:$0xf] }
 0x363   :  { %v1912_v54 = vmax.f32 %v1816_v43, 0.0  ;;  %2532 = vmatmul.bf16.gmra.mxu0 %v7938_v33  ;;  %2739 = vmatpush.bf16.msrb.mxu1 %v5180_v59  ;;  %v5184_v55 = vor.u32 %v5962_v42, %v5181_v35  ;;  %v9759_v15 = vmax.f32 %v9757_v16, %v9758_v61  ;;  %v9765_v16 = vld [vmem:[#allocation31_spill] sm:$0xff]  ;;  %v9766_v61 = vld [vmem:[#allocation36_spill] sm:$0xff] }
 0x364   :  { %v1811_v6 = vadd.f32 %v7614_v3, %v1709_v8  ;;  %v1359_v0 = vpop.f32.mrf.mxu3  ;;  %5157 = vmatmul.msk.bf16.gmra.mxu2 %vm2381_vm2, %v7940_v5  ;;  %v5163_v8 = vld [vmem:[%s9366_s4] sm:$0xf]  ;;  %v2230_v44 = vunpack.c.h.b16 %v2130_v47 }
 0x365   :  { %v8041_v23 = vmax.f32 %v1864_v41, %v1912_v54  ;;  %v1360_v34 = vadd.f32 %v1359_v0, %v1230_v62  ;;  %2837 = vmatpush.bf16.msrb.mxu0 %v5184_v55  ;;  %v1765_v43 = vadd.f32 %v7614_v3, %v9759_v15  ;;  %v2229_v62 = vunpack.c.l.b16 %v2130_v47  ;;  %v5229_v55 = vld [vmem:[%s9366_s4 + $0x88] sm:$0xf0] }
 0x366   :  { %v1907_v17 = vmax.f32 %v1811_v6, 0.0  ;;  %v9767_v15 = vmax.f32 %v9765_v16, %v9766_v61 }
 0x367   :  { %v1716_v24 = vmax.f32 %v9756_v30, %v1360_v34  ;;  %v1610_v4 = vpop.f32.mrf.mxu2  ;;  %2740 = vmatpush.bf16.msrb.mxu1 %v5172_v7  ;;  %v1861_v18 = vmax.f32 %v1765_v43, 0.0  ;;  %v5974_v34 = vld [vmem:[%s9366_s4 + $0x84] sm:$0xf]  ;;  %v9764_v30 = vld [vmem:[#allocation89_spill] sm:$0xff] }
 0x368   :  { %v2099_v32 = vmax.f32 %v1859_v22, %v1907_v17  ;;  %v1611_v57 = vadd.f32 %v1610_v4, %v1481_v38  ;;  %v1483_v28 = vpop.f32.mrf.mxu0  ;;  %v5975_v38 = vld [vmem:[%s9366_s4 + $0x84] sm:$0xf0]  ;;  %v9761_v22 = vld [vmem:[#allocation38_spill] sm:$0xff]  ;;  %v5232_v7 = vor.u32 %v5974_v34, %v5229_v55  ;;  %v1767_v43 = vadd.f32 %v7614_v3, %v9767_v15 }
 0x369   :  { %v1818_v1 = vadd.f32 %v7554_v36, %v1716_v24  ;;  %v5228_v41 = vor.u32 %v5975_v38, %v5227_v20  ;;  %v9762_v17 = vld [vmem:[#allocation27_spill] sm:$0xff]  ;;  %v5173_v20 = vld [vmem:[%s9366_s4 + $0x18] sm:$0xf0] }
 0x36a   :  { %v2131_v48 = vpack.c.bf16 %v2099_v32, %v7936_v46  ;;  %v1711_v40 = vmax.f32 %v9760_v19, %v1611_v57  ;;  %v1233_v21 = vpop.f32.mrf.mxu1  ;;  %v5959_v46 = vld [vmem:[%s9366_s4 + $0x4] sm:$0xf0]  ;;  %v9763_v58 = vmax.f32 %v9761_v22, %v9762_v17  ;;  %2888 = vmatpush.bf16.msrb.mxu2 %v5232_v7  ;;  %v9768_v19 = vld [vmem:[#allocation84_spill] sm:$0xff]  ;;  %v9776_v7 = vld [vmem:[#allocation86_spill] sm:$0xff] }
 0x36b   :  { %v1914_v63 = vmax.f32 %v1818_v1, 0.0  ;;  %v5164_v42 = vor.u32 %v5959_v46, %v5163_v8  ;;  %2790 = vmatpush.bf16.msrb.mxu3 %v5228_v41  ;;  %v1863_v46 = vmax.f32 %v1767_v43, 0.0 }
 0x36c   :  { %v2231_v54 = vunpack.c.l.b16 %v2131_v48  ;;  %v2232_v59 = vunpack.c.h.b16 %v2131_v48  ;;  %v1813_v6 = vadd.f32 %v7614_v3, %v1711_v40  ;;  %v1362_v0 = vpop.f32.mrf.mxu3  ;;  %v1772_v51 = vadd.f32 %v7554_v36, %v9763_v58  ;;  %v9773_v58 = vld [vmem:[#allocation34_spill] sm:$0xff] }
 0x36d   :  { %v8070_v35 = vmax.f32 %v1866_v14, %v1914_v63  ;;  %v1363_v52 = vadd.f32 %v1362_v0, %v1233_v21  ;;  %2741 = vmatpush.bf16.msrb.mxu1 %v5164_v42 }
 0x36e   :  { %v8072_v2 = vpack.c.b16 %v2231_v54, %v2229_v62  ;;  %v8074_v47 = vpack.c.b16 %v2232_v59, %v2230_v44  ;;  %v1909_v13 = vmax.f32 %v1813_v6, 0.0  ;;  %v1868_v38 = vmax.f32 %v1772_v51, 0.0  ;;  %v9769_v59 = vld [vmem:[#allocation41_spill] sm:$0xff]  ;;  %v9774_v51 = vld [vmem:[#allocation106_spill] sm:$0xff] }
 0x36f   :  { %v1718_v24 = vmax.f32 %v9764_v30, %v1363_v52  ;;  %v1612_v4 = vpop.f32.mrf.mxu2  ;;  %v9770_v6 = vld [vmem:[#allocation105_spill] sm:$0xff]  ;;  %v9772_v52 = vld [vmem:[#allocation91_spill] sm:$0xff]  ;;  %v9775_v30 = vmax.f32 %v9773_v58, %v9774_v51 }
 0x370   :  { %v2101_v32 = vmax.f32 %v1861_v18, %v1909_v13  ;;  %v1613_v57 = vadd.f32 %v1612_v4, %v1483_v28  ;;  %2444 = vmatmul.bf16.gmra.mxu1 %v8072_v2  ;;  %5151 = vmatmul.msk.bf16.gmra.mxu3 %vm2381_vm2, %v8074_v47  ;;  %v1486_v14 = vpop.f32.mrf.mxu0  ;;  %v5960_v28 = vld [vmem:[%s9366_s4 + $0x14] sm:$0xf]  ;;  %v9771_v0 = vmax.f32 %v9769_v59, %v9770_v6 }
 0x371   :  { %v1820_v1 = vadd.f32 %v7554_v36, %v1718_v24  ;;  %v5176_v62 = vor.u32 %v5960_v28, %v5173_v20  ;;  %v1769_v24 = vadd.f32 %v7614_v3, %v9775_v30  ;;  %v9784_v30 = vld [vmem:[#allocation88_spill] sm:$0xff] }
 0x372   :  { %v2132_v48 = vpack.c.bf16 %v2101_v32, %v7982_v11  ;;  %v1713_v40 = vmax.f32 %v9768_v19, %v1613_v57  ;;  %v1235_v21 = vpop.f32.mrf.mxu1  ;;  %v1774_v42 = vadd.f32 %v7554_v36, %v9771_v0 }
 0x373   :  { %v1916_v8 = vmax.f32 %v1820_v1, 0.0  ;;  %2537 = vmatmul.bf16.gmra.mxu0 %v8002_v56  ;;  %v1865_v20 = vmax.f32 %v1769_v24, 0.0 }
 0x374   :  { %v1815_v44 = vadd.f32 %v7614_v3, %v1713_v40  ;;  %v1364_v63 = vpop.f32.mrf.mxu3  ;;  %5158 = vmatmul.msk.bf16.gmra.mxu2 %vm2381_vm2, %v8004_v29  ;;  %2838 = vmatpush.bf16.msrb.mxu0 %v5176_v62  ;;  %v1870_v1 = vmax.f32 %v1774_v42, 0.0  ;;  %v2233_v16 = vunpack.c.l.b16 %v2132_v48  ;;  %v2234_v15 = vunpack.c.h.b16 %v2132_v48  ;;  %v5958_v62 = vld [vmem:[%s9366_s4 + $0x4] sm:$0xf]  ;;  %v5165_v48 = vld [vmem:[%s9366_s4 + $0x8] sm:$0xf0] }
 0x375   :  { %v8107_v11 = vmax.f32 %v1868_v38, %v1916_v8  ;;  %v1365_v41 = vadd.f32 %v1364_v63, %v1235_v21  ;;  %v9778_v63 = vld [vmem:[#allocation33_spill] sm:$0xff]  ;;  %v5168_v0 = vor.u32 %v5958_v62, %v5165_v48 }
 0x376   :  { %v1911_v54 = vmax.f32 %v1815_v44, 0.0  ;;  %v9777_v44 = vld [vmem:[#allocation44_spill] sm:$0xff] }
 0x377   :  { %v1720_v18 = vmax.f32 %v9772_v52, %v1365_v41  ;;  %v1615_v13 = vpop.f32.mrf.mxu2  ;;  %v9779_v41 = vmax.f32 %v9777_v44, %v9778_v63  ;;  %v5387_v44 = vld [vmem:[%s9366_s4 + $0x230] sm:$0xf]  ;;  %v6029_v63 = vld [vmem:[%s9366_s4 + $0x234] sm:$0xf0] }
 0x378   :  { %v2103_v34 = vmax.f32 %v1863_v46, %v1911_v54  ;;  %v1616_v55 = vadd.f32 %v1615_v13, %v1486_v14  ;;  %v1488_v22 = vpop.f32.mrf.mxu0  ;;  %v9780_v54 = vld [vmem:[#allocation93_spill] sm:$0xff]  ;;  %2839 = vmatpush.bf16.msrb.mxu0 %v5168_v0 }
 0x379   :  { %v1822_v17 = vadd.f32 %v7554_v36, %v1720_v18  ;;  %v1776_v46 = vadd.f32 %v7554_v36, %v9779_v41  ;;  %v6028_v41 = vld [vmem:[%s9366_s4 + $0x234] sm:$0xf] }
 0x37a   :  { %v2133_v4 = vpack.c.bf16 %v2103_v34, %v8000_v26  ;;  %v1715_v32 = vmax.f32 %v9776_v7, %v1616_v55  ;;  %v1238_v57 = vpop.f32.mrf.mxu1  ;;  %v9781_v34 = vld [vmem:[#allocation37_spill] sm:$0xff]  ;;  %v9782_v55 = vld [vmem:[#allocation42_spill] sm:$0xff] }
 0x37b   :  { %v1918_v61 = vmax.f32 %v1822_v17, 0.0  ;;  %v9783_v17 = vmax.f32 %v9781_v34, %v9782_v55  ;;  %v9792_v55 = vld [vmem:[#allocation90_spill] sm:$0xff] }
 0x37c   :  { %v2235_v43 = vunpack.c.l.b16 %v2133_v4  ;;  %v2236_v19 = vunpack.c.h.b16 %v2133_v4  ;;  %v1817_v14 = vadd.f32 %v7614_v3, %v1715_v32  ;;  %v1367_v40 = vpop.f32.mrf.mxu3 }
 0x37d   :  { %v8122_v21 = vmax.f32 %v1870_v1, %v1918_v61  ;;  %v1368_v28 = vadd.f32 %v1367_v40, %v1238_v57  ;;  %v1771_v58 = vadd.f32 %v7614_v3, %v9783_v17  ;;  %v9788_v40 = vld [vmem:[#allocation95_spill] sm:$0xff] }
 0x37e   :  { %v8124_v38 = vpack.c.b16 %v2235_v43, %v2233_v16  ;;  %v8126_v8 = vpack.c.b16 %v2236_v19, %v2234_v15  ;;  %v1913_v26 = vmax.f32 %v1817_v14, 0.0  ;;  %v9785_v43 = vld [vmem:[#allocation47_spill] sm:$0xff] }
 0x37f   :  { %v1722_v59 = vmax.f32 %v9780_v54, %v1368_v28  ;;  %v1617_v6 = vpop.f32.mrf.mxu2  ;;  %v1867_v61 = vmax.f32 %v1771_v58, 0.0  ;;  %v9790_v54 = vld [vmem:[#allocation108_spill] sm:$0xff] }
 0x380   :  { %v2105_v42 = vmax.f32 %v1865_v20, %v1913_v26  ;;  %v1618_v52 = vadd.f32 %v1617_v6, %v1488_v22  ;;  %2449 = vmatmul.bf16.gmra.mxu1 %v8124_v38  ;;  %5152 = vmatmul.msk.bf16.gmra.mxu3 %vm2381_vm2, %v8126_v8  ;;  %v1491_v18 = vpop.f32.mrf.mxu0  ;;  %v1872_v22 = vmax.f32 %v1776_v46, 0.0  ;;  %v9789_v46 = vld [vmem:[#allocation40_spill] sm:$0xff] }
 0x381   :  { %v1824_v13 = vadd.f32 %v7554_v36, %v1722_v59  ;;  %v9791_v59 = vmax.f32 %v9789_v46, %v9790_v54  ;;  %v9795_v46 = vld [vmem:[#allocation92_spill] sm:$0xff] }
 0x382   :  { %v2134_v51 = vpack.c.bf16 %v2105_v42, %v8041_v23  ;;  %v1717_v24 = vmax.f32 %v9784_v30, %v1618_v52  ;;  %v1240_v4 = vpop.f32.mrf.mxu1  ;;  %v9786_v23 = vld [vmem:[#allocation107_spill] sm:$0xff]  ;;  %v5388_v42 = vor.u32 %v6029_v63, %v5387_v44  ;;  %v5389_v52 = vld [vmem:[%s9366_s4 + $0x238] sm:$0xf0] }
 0x383   :  { %v1920_v7 = vmax.f32 %v1824_v13, 0.0  ;;  %2542 = vmatmul.bf16.gmra.mxu0 %v8072_v2  ;;  %v9787_v19 = vmax.f32 %v9785_v43, %v9786_v23  ;;  %v1773_v6 = vadd.f32 %v7614_v3, %v9791_v59  ;;  %v6021_v13 = vld [vmem:[%s9366_s4 + $0x1f4] sm:$0xf0]  ;;  %v5392_v58 = vor.u32 %v6028_v41, %v5389_v52 }
 0x384   :  { %v1819_v32 = vadd.f32 %v7614_v3, %v1717_v24  ;;  %v1369_v57 = vpop.f32.mrf.mxu3  ;;  %5159 = vmatmul.msk.bf16.gmra.mxu2 %vm2381_vm2, %v8074_v47  ;;  %v5357_v24 = vld [vmem:[%s9366_s4 + $0x1f8] sm:$0xf0]  ;;  %3140 = vmatpush.bf16.msra.mxu3 %v5388_v42 }
 0x385   :  { %v8153_v1 = vmax.f32 %v1872_v22, %v1920_v7  ;;  %v1370_v16 = vadd.f32 %v1369_v57, %v1240_v4  ;;  %v1778_v14 = vadd.f32 %v7554_v36, %v9787_v19  ;;  %v2957_v22 = vunpack.c.l.b16 %v2134_v51  ;;  %3238 = vmatpush.bf16.msra.mxu2 %v5392_v58 }
 0x386   :  { %v1915_v15 = vmax.f32 %v1819_v32, 0.0  ;;  %v2958_v57 = vunpack.c.h.b16 %v2134_v51  ;;  %v1869_v23 = vmax.f32 %v1773_v6, 0.0 }
 0x387   :  { %v1724_v28 = vmax.f32 %v9788_v40, %v1370_v16  ;;  %v1620_v20 = vpop.f32.mrf.mxu2  ;;  %v1874_v4 = vmax.f32 %v1778_v14, 0.0 }
 0x388   :  { %v2107_v26 = vmax.f32 %v1867_v61, %v1915_v15  ;;  %v1621_v62 = vadd.f32 %v1620_v20, %v1491_v18  ;;  %v1493_v48 = vpop.f32.mrf.mxu0  ;;  %v5355_v18 = vld [vmem:[%s9366_s4 + $0x1f0] sm:$0xf] }
 0x389   :  { %v1826_v0 = vadd.f32 %v7554_v36, %v1724_v28  ;;  %v5356_v30 = vor.u32 %v6021_v13, %v5355_v18  ;;  %v6020_v36 = vld [vmem:[%s9366_s4 + $0x1f4] sm:$0xf] }
 0x38a   :  { %v2135_v34 = vpack.c.bf16 %v2107_v26, %v8070_v35  ;;  %v1719_v17 = vmax.f32 %v9792_v55, %v1621_v62  ;;  %v5360_v32 = vor.u32 %v6020_v36, %v5357_v24  ;;  %v9793_v62 = vld [vmem:[#allocation39_spill] sm:$0xff]  ;;  %v9796_v36 = vld [vmem:[#allocation48_spill] sm:$0xff] }
 0x38b   :  { %v1922_v7 = vmax.f32 %v1826_v0, 0.0  ;;  %3087 = vmatpush.bf16.msra.mxu1 %v5356_v30  ;;  %v9794_v44 = vmax.f32 %v9646_v37, %v9793_v62  ;;  %v6019_v55 = vld [vmem:[%s9366_s4 + $0x1e4] sm:$0xf0]  ;;  %v5349_v30 = vld [vmem:[%s9366_s4 + $0x1e8] sm:$0xf0]  ;;  %v9797_v24 = vmax.f32 %v9651_v25, %v9796_v36 }
 0x38c   :  { %v2959_v16 = vunpack.c.l.b16 %v2135_v34  ;;  %v2960_v35 = vunpack.c.h.b16 %v2135_v34  ;;  %v1821_v61 = vadd.f32 %v7614_v3, %v1719_v17  ;;  %3185 = vmatpush.bf16.msra.mxu0 %v5360_v32  ;;  %v6018_v17 = vld [vmem:[%s9366_s4 + $0x1e4] sm:$0xf] }
 0x38d   :  { %v8192_v15 = vmax.f32 %v1874_v4, %v1922_v7  ;;  %v2415_v43 = vpop.f32.mrf.mxu1  ;;  %v1775_v63 = vadd.f32 %v7614_v3, %v9794_v44  ;;  %v1777_v4 = vadd.f32 %v7614_v3, %v9797_v24  ;;  %v9798_v7 = vld [vmem:[#allocation94_spill] sm:$0xff]  ;;  %v5339_v24 = vld [vmem:[%s9366_s4 + $0x1d0] sm:$0xf] }
 0x38e   :  { %v8194_v19 = vpack.c.b16 %v2959_v16, %v2957_v22  ;;  %v8196_v40 = vpack.c.b16 %v2960_v35, %v2958_v57  ;;  %v1917_v14 = vmax.f32 %v1821_v61, 0.0  ;;  %v5352_v57 = vor.u32 %v6018_v17, %v5349_v30 }
 0x38f   :  { %v1622_v28 = vpop.f32.mrf.mxu2  ;;  %v1871_v42 = vmax.f32 %v1775_v63, 0.0  ;;  %v1873_v25 = vmax.f32 %v1777_v4, 0.0  ;;  %v6017_v4 = vld [vmem:[%s9366_s4 + $0x1d4] sm:$0xf0] }
 0x390   :  { %v2109_v20 = vmax.f32 %v1869_v23, %v1917_v14  ;;  %v1623_v26 = vadd.f32 %v1622_v28, %v1493_v48  ;;  %2742 = vmatmul.bf16.vlgmr.msrb.gmra.mxu1 %v7671_v31  ;;  %5257 = vmatmul.msk.bf16.vlgmr.msrb.gmra.mxu3 %vm2381_vm2, %v7669_v60  ;;  %v1496_v51 = vpop.f32.mrf.mxu0 }
 0x391   :  { %3186 = vmatpush.bf16.msra.mxu0 %v5352_v57 }
 0x392   :  { %v2136_v41 = vpack.c.bf16 %v2109_v20, %v8107_v11  ;;  %v1721_v54 = vmax.f32 %v9795_v46, %v1623_v26  ;;  %v5347_v11 = vld [vmem:[%s9366_s4 + $0x1e0] sm:$0xf] }
 0x393   :  { %v2464_v59 = vpop.f32.mrf.mxu3  ;;  %2547 = vmatmul.bf16.gmra.mxu0 %v8124_v38  ;;  %v5348_v58 = vor.u32 %v6019_v55, %v5347_v11  ;;  %v9799_v46 = vld [vmem:[#allocation50_spill] sm:$0xff] }
 0x394   :  { %v1823_v48 = vadd.f32 %v7614_v3, %v1721_v54  ;;  %v8209_v6 = vadd.f32 %v2464_v59, %v2415_v43  ;;  %5160 = vmatmul.msk.bf16.gmra.mxu2 %vm2381_vm2, %v8126_v8  ;;  %v3342_v35 = vunpack.c.l.b16 %v2136_v41  ;;  %v3343_v61 = vunpack.c.h.b16 %v2136_v41 }
 0x395   :  { %v2417_v0 = vpop.f32.mrf.mxu1  ;;  %3088 = vmatpush.bf16.msra.mxu1 %v5348_v58  ;;  %v9800_v54 = vmax.f32 %v9656_v27, %v9799_v46  ;;  %v5379_v27 = vld [vmem:[%s9366_s4 + $0x220] sm:$0xf] }
 0x396   :  { %v1919_v52 = vmax.f32 %v1823_v48, 0.0  ;;  %v9801_v48 = vld [vmem:[#allocation96_spill] sm:$0xff] }
 0x397   :  { %v1625_v37 = vpop.f32.mrf.mxu2  ;;  %v1779_v59 = vadd.f32 %v7614_v3, %v9800_v54 }
 0x398   :  { %v2111_v18 = vmax.f32 %v1871_v42, %v1919_v52  ;;  %v1626_v13 = vadd.f32 %v1625_v37, %v1496_v51  ;;  %v1498_v34 = vpop.f32.mrf.mxu0 }
 0x399   :  { %v1875_v11 = vmax.f32 %v1779_v59, 0.0 }
 0x39a   :  { %v2137_v22 = vpack.c.bf16 %v2111_v18, %v8122_v21  ;;  %v1723_v32 = vmax.f32 %v9798_v7, %v1626_v13  ;;  %v6027_v13 = vld [vmem:[%s9366_s4 + $0x224] sm:$0xf0]  ;;  %v5340_v7 = vor.u32 %v6017_v4, %v5339_v24 }
 0x39b   :  { %v2466_v16 = vpop.f32.mrf.mxu3 }
 0x39c   :  { %v1825_v43 = vadd.f32 %v7614_v3, %v1723_v32  ;;  %v8232_v23 = vadd.f32 %v2466_v16, %v2417_v0  ;;  %v3344_v14 = vunpack.c.l.b16 %v2137_v22  ;;  %v3345_v28 = vunpack.c.h.b16 %v2137_v22  ;;  %v6016_v22 = vld [vmem:[%s9366_s4 + $0x1d4] sm:$0xf]  ;;  %v5341_v32 = vld [vmem:[%s9366_s4 + $0x1d8] sm:$0xf0]  ;;  %3089 = vmatpush.bf16.msra.mxu1 %v5340_v7 }
 0x39d   :  { %v2420_v20 = vpop.f32.mrf.mxu1  ;;  %v5344_v57 = vor.u32 %v6016_v22, %v5341_v32  ;;  %v5373_v22 = vld [vmem:[%s9366_s4 + $0x218] sm:$0xf0] }
 0x39e   :  { %v1921_v26 = vmax.f32 %v1825_v43, 0.0  ;;  %v8234_v51 = vpack.c.b16 %v3344_v14, %v3342_v35  ;;  %v8236_v21 = vpack.c.b16 %v3345_v28, %v3343_v61 }
 0x39f   :  { %v1627_v62 = vpop.f32.mrf.mxu2  ;;  %3187 = vmatpush.bf16.msra.mxu0 %v5344_v57 }
 0x3a0   :  { %v2113_v44 = vmax.f32 %v1873_v25, %v1921_v26  ;;  %v1628_v63 = vadd.f32 %v1627_v62, %v1498_v34  ;;  %2747 = vmatmul.bf16.gmra.mxu1 %v7708_v50  ;;  %5258 = vmatmul.msk.bf16.gmra.mxu3 %vm2381_vm2, %v7706_v49  ;;  %v2513_v41 = vpop.f32.mrf.mxu0  ;;  %v5380_v34 = vor.u32 %v6027_v13, %v5379_v27 }
 0x3a2   :  { %v1725_v0 = vmax.f32 %v9801_v48, %v1628_v63  ;;  %v2138_v42 = vpack.c.bf16 %v2113_v44, %v8153_v1  ;;  %v6026_v1 = vld [vmem:[%s9366_s4 + $0x224] sm:$0xf]  ;;  %3141 = vmatpush.bf16.msra.mxu3 %v5380_v34 }
 0x3a3   :  { %v2469_v52 = vpop.f32.mrf.mxu3  ;;  %2840 = vmatmul.bf16.vlgmr.msrb.gmra.mxu0 %v7671_v31 }
 0x3a4   :  { %v1827_v37 = vadd.f32 %v7614_v3, %v1725_v0  ;;  %v8249_v18 = vadd.f32 %v2469_v52, %v2420_v20  ;;  %5265 = vmatmul.msk.bf16.vlgmr.msrb.gmra.mxu2 %vm2381_vm2, %v7669_v60  ;;  %v5381_v3 = vld [vmem:[%s9366_s4 + $0x228] sm:$0xf0]  ;;  %v3727_v61 = vunpack.c.l.b16 %v2138_v42  ;;  %v3728_v28 = vunpack.c.h.b16 %v2138_v42  ;;  %v5331_v42 = vld [vmem:[%s9366_s4 + $0x1c0] sm:$0xf]  ;;  %v6015_v52 = vld [vmem:[%s9366_s4 + $0x1c4] sm:$0xf0] }
 0x3a5   :  { %v2422_v31 = vpop.f32.mrf.mxu1  ;;  %v5384_v55 = vor.u32 %v6026_v1, %v5381_v3 }
 0x3a6   :  { %v1923_v60 = vmax.f32 %v1827_v37, 0.0  ;;  %v5332_v37 = vor.u32 %v6015_v52, %v5331_v42 }
 0x3a7   :  { %v2562_v17 = vpop.f32.mrf.mxu2  ;;  %3239 = vmatpush.bf16.msra.mxu2 %v5384_v55 }
 0x3a8   :  { %v2115_v58 = vmax.f32 %v1875_v11, %v1923_v60  ;;  %v8265_v30 = vadd.f32 %v2562_v17, %v2513_v41  ;;  %v2515_v36 = vpop.f32.mrf.mxu0  ;;  %3090 = vmatpush.bf16.msra.mxu1 %v5332_v37  ;;  %v5371_v17 = vld [vmem:[%s9366_s4 + $0x210] sm:$0xf] }
 0x3aa   :  { %v2139_v16 = vpack.c.bf16 %v2115_v58, %v8192_v15  ;;  %v6025_v58 = vld [vmem:[%s9366_s4 + $0x214] sm:$0xf0] }
 0x3ab   :  { %v2471_v35 = vpop.f32.mrf.mxu3  ;;  %v5372_v4 = vor.u32 %v6025_v58, %v5371_v17 }
 0x3ac   :  { %v8280_v43 = vadd.f32 %v2471_v35, %v2422_v31  ;;  %v3729_v14 = vunpack.c.l.b16 %v2139_v16  ;;  %v3730_v20 = vunpack.c.h.b16 %v2139_v16  ;;  %v5323_v35 = vld [vmem:[%s9366_s4 + $0x1b0] sm:$0xf] }
 0x3ad   :  { %v2425_v25 = vpop.f32.mrf.mxu1  ;;  %3142 = vmatpush.bf16.msra.mxu3 %v5372_v4 }
 0x3ae   :  { %v8282_v26 = vpack.c.b16 %v3729_v14, %v3727_v61  ;;  %v8284_v62 = vpack.c.b16 %v3730_v20, %v3728_v28  ;;  %v6013_v61 = vld [vmem:[%s9366_s4 + $0x1b4] sm:$0xf0]  ;;  %v6012_v14 = vld [vmem:[%s9366_s4 + $0x1b4] sm:$0xf]  ;;  %v5325_v20 = vld [vmem:[%s9366_s4 + $0x1b8] sm:$0xf0] }
 0x3af   :  { %v2564_v44 = vpop.f32.mrf.mxu2  ;;  %v5324_v28 = vor.u32 %v6013_v61, %v5323_v35  ;;  %v5363_v35 = vld [vmem:[%s9366_s4 + $0x200] sm:$0xf]  ;;  %v6023_v61 = vld [vmem:[%s9366_s4 + $0x204] sm:$0xf0] }
 0x3b0   :  { %9802 = vst [vmem:[#allocation43_spill] sm:$0xff] %v8284_v62  ;;  %v8286_v63 = vadd.f32 %v2564_v44, %v2515_v36  ;;  %2752 = vmatmul.bf16.gmra.mxu1 %v7770_v12  ;;  %5259 = vmatmul.msk.bf16.gmra.mxu3 %vm2381_vm2, %v7772_v45  ;;  %v2518_v15 = vpop.f32.mrf.mxu0  ;;  %v6024_v36 = vld [vmem:[%s9366_s4 + $0x214] sm:$0xf] }
 0x3b1   :  { %v5376_v7 = vor.u32 %v6024_v36, %v5373_v22  ;;  %3091 = vmatpush.bf16.msra.mxu1 %v5324_v28 }
 0x3b3   :  { %v2474_v41 = vpop.f32.mrf.mxu3  ;;  %2845 = vmatmul.bf16.gmra.mxu0 %v7708_v50  ;;  %v6014_v50 = vld [vmem:[%s9366_s4 + $0x1c4] sm:$0xf]  ;;  %3240 = vmatpush.bf16.msra.mxu2 %v5376_v7 }
 0x3b4   :  { %v8292_v46 = vadd.f32 %v2474_v41, %v2425_v25  ;;  %5266 = vmatmul.msk.bf16.gmra.mxu2 %vm2381_vm2, %v7706_v49  ;;  %v5333_v49 = vld [vmem:[%s9366_s4 + $0x1c8] sm:$0xf0]  ;;  %v5328_v25 = vor.u32 %v6012_v14, %v5325_v20  ;;  %v6022_v14 = vld [vmem:[%s9366_s4 + $0x204] sm:$0xf]  ;;  %v5364_v20 = vor.u32 %v6023_v61, %v5363_v35 }
 0x3b5   :  { %v2427_v54 = vpop.f32.mrf.mxu1  ;;  %v5336_v27 = vor.u32 %v6014_v50, %v5333_v49 }
 0x3b6   :  { %3143 = vmatpush.bf16.msra.mxu3 %v5364_v20 }
 0x3b7   :  { %v2567_v59 = vpop.f32.mrf.mxu2  ;;  %3188 = vmatpush.bf16.msra.mxu0 %v5336_v27 }
 0x3b8   :  { %v8296_v48 = vadd.f32 %v2567_v59, %v2518_v15  ;;  %v2520_v0 = vpop.f32.mrf.mxu0 }
 0x3bb   :  { %v2476_v13 = vpop.f32.mrf.mxu3  ;;  %3189 = vmatpush.bf16.msra.mxu0 %v5328_v25  ;;  %v5365_v25 = vld [vmem:[%s9366_s4 + $0x208] sm:$0xf0] }
 0x3bc   :  { %v8310_v1 = vadd.f32 %v2476_v13, %v2427_v54  ;;  %v5315_v13 = vld [vmem:[%s9366_s4 + $0x1a0] sm:$0xf] }
 0x3bd   :  { %v2430_v31 = vpop.f32.mrf.mxu1 }
 0x3bf   :  { %v2569_v34 = vpop.f32.mrf.mxu2 }
 0x3c0   :  { %v8312_v3 = vadd.f32 %v2569_v34, %v2520_v0  ;;  %2757 = vmatmul.bf16.gmra.mxu1 %v7822_v53  ;;  %5260 = vmatmul.msk.bf16.gmra.mxu3 %vm2381_vm2, %v7824_v39  ;;  %v2523_v11 = vpop.f32.mrf.mxu0  ;;  %v6010_v34 = vld [vmem:[%s9366_s4 + $0x1a4] sm:$0xf] }
 0x3c3   :  { %v2479_v60 = vpop.f32.mrf.mxu3  ;;  %2850 = vmatmul.bf16.gmra.mxu0 %v7770_v12 }
 0x3c4   :  { %v8318_v55 = vadd.f32 %v2479_v60, %v2430_v31  ;;  %5267 = vmatmul.msk.bf16.gmra.mxu2 %vm2381_vm2, %v7772_v45  ;;  %v6011_v31 = vld [vmem:[%s9366_s4 + $0x1a4] sm:$0xf0]  ;;  %v5317_v60 = vld [vmem:[%s9366_s4 + $0x1a8] sm:$0xf0] }
 0x3c5   :  { %v2432_v24 = vpop.f32.mrf.mxu1  ;;  %v5320_v17 = vor.u32 %v6010_v34, %v5317_v60  ;;  %v5299_v34 = vld [vmem:[%s9366_s4 + $0x180] sm:$0xf] }
 0x3c7   :  { %v2572_v32 = vpop.f32.mrf.mxu2  ;;  %3190 = vmatpush.bf16.msra.mxu0 %v5320_v17 }
 0x3c8   :  { %v8334_v57 = vadd.f32 %v2572_v32, %v2523_v11  ;;  %v2525_v16 = vpop.f32.mrf.mxu0  ;;  %v5316_v11 = vor.u32 %v6011_v31, %v5315_v13  ;;  %v5309_v13 = vld [vmem:[%s9366_s4 + $0x198] sm:$0xf0] }
 0x3ca   :  { %3092 = vmatpush.bf16.msra.mxu1 %v5316_v11  ;;  %v6007_v11 = vld [vmem:[%s9366_s4 + $0x184] sm:$0xf0] }
 0x3cb   :  { %v2481_v44 = vpop.f32.mrf.mxu3  ;;  %v5300_v17 = vor.u32 %v6007_v11, %v5299_v34 }
 0x3cc   :  { %v8348_v15 = vadd.f32 %v2481_v44, %v2432_v24  ;;  %v5368_v44 = vor.u32 %v6022_v14, %v5365_v25 }
 0x3cd   :  { %v2435_v41 = vpop.f32.mrf.mxu1 }
 0x3ce   :  { %3241 = vmatpush.bf16.msra.mxu2 %v5368_v44  ;;  %v6006_v44 = vld [vmem:[%s9366_s4 + $0x184] sm:$0xf] }
 0x3cf   :  { %v2574_v54 = vpop.f32.mrf.mxu2 }
 0x3d0   :  { %v8350_v59 = vadd.f32 %v2574_v54, %v2525_v16  ;;  %2762 = vmatmul.bf16.gmra.mxu1 %v7886_v10  ;;  %5261 = vmatmul.msk.bf16.gmra.mxu3 %vm2381_vm2, %v7888_v9  ;;  %v2528_v0 = vpop.f32.mrf.mxu0  ;;  %v6009_v54 = vld [vmem:[%s9366_s4 + $0x194] sm:$0xf0] }
 0x3d3   :  { %v2484_v42 = vpop.f32.mrf.mxu3  ;;  %2855 = vmatmul.bf16.gmra.mxu0 %v7822_v53 }
 0x3d4   :  { %v8356_v52 = vadd.f32 %v2484_v42, %v2435_v41  ;;  %5268 = vmatmul.msk.bf16.gmra.mxu2 %vm2381_vm2, %v7824_v39  ;;  %v5307_v41 = vld [vmem:[%s9366_s4 + $0x190] sm:$0xf] }
 0x3d5   :  { %v2437_v50 = vpop.f32.mrf.mxu1  ;;  %v5308_v42 = vor.u32 %v6009_v54, %v5307_v41  ;;  %v5301_v41 = vld [vmem:[%s9366_s4 + $0x188] sm:$0xf0] }
 0x3d6   :  { %v5304_v54 = vor.u32 %v6006_v44, %v5301_v41  ;;  %v5491_v41 = vld [vmem:[%s9366_s4 + $0x2b0] sm:$0xf] }
 0x3d7   :  { %v2577_v37 = vpop.f32.mrf.mxu2  ;;  %3093 = vmatpush.bf16.msra.mxu1 %v5308_v42 }
 0x3d8   :  { %v8360_v49 = vadd.f32 %v2577_v37, %v2528_v0  ;;  %v2530_v27 = vpop.f32.mrf.mxu0 }
 0x3db   :  { %v2486_v58 = vpop.f32.mrf.mxu3  ;;  %3094 = vmatpush.bf16.msra.mxu1 %v5300_v17  ;;  %v6053_v17 = vld [vmem:[%s9366_s4 + $0x2f4] sm:$0xf0] }
 0x3dc   :  { %v8374_v36 = vadd.f32 %v2486_v58, %v2437_v50 }
 0x3dd   :  { %v2440_v24 = vpop.f32.mrf.mxu1 }
 0x3df   :  { %v2579_v4 = vpop.f32.mrf.mxu2 }
 0x3e0   :  { %v8376_v22 = vadd.f32 %v2579_v4, %v2530_v27  ;;  %2767 = vmatmul.bf16.gmra.mxu1 %v7938_v33  ;;  %5262 = vmatmul.msk.bf16.gmra.mxu3 %vm2381_vm2, %v7940_v5  ;;  %v2533_v7 = vpop.f32.mrf.mxu0  ;;  %v6008_v27 = vld [vmem:[%s9366_s4 + $0x194] sm:$0xf] }
 0x3e1   :  { %v5312_v31 = vor.u32 %v6008_v27, %v5309_v13 }
 0x3e3   :  { %v2489_v32 = vpop.f32.mrf.mxu3  ;;  %2860 = vmatmul.bf16.gmra.mxu0 %v7886_v10 }
 0x3e4   :  { %v8382_v16 = vadd.f32 %v2489_v32, %v2440_v24  ;;  %5269 = vmatmul.msk.bf16.gmra.mxu2 %vm2381_vm2, %v7888_v9  ;;  %3191 = vmatpush.bf16.msra.mxu0 %v5312_v31 }
 0x3e5   :  { %v2442_v28 = vpop.f32.mrf.mxu1 }
 0x3e7   :  { %v2582_v0 = vpop.f32.mrf.mxu2 }
 0x3e8   :  { %v8404_v50 = vadd.f32 %v2582_v0, %v2533_v7  ;;  %v2535_v37 = vpop.f32.mrf.mxu0  ;;  %3192 = vmatpush.bf16.msra.mxu0 %v5304_v54  ;;  %v6045_v54 = vld [vmem:[%s9366_s4 + $0x2b4] sm:$0xf0] }
 0x3eb   :  { %v2491_v60 = vpop.f32.mrf.mxu3 }
 0x3ec   :  { %v8418_v58 = vadd.f32 %v2491_v60, %v2442_v28  ;;  %v5523_v60 = vld [vmem:[%s9366_s4 + $0x2f0] sm:$0xf] }
 0x3ed   :  { %v2445_v24 = vpop.f32.mrf.mxu1 }
 0x3ef   :  { %v2584_v4 = vpop.f32.mrf.mxu2 }
 0x3f0   :  { %v8420_v7 = vadd.f32 %v2584_v4, %v2535_v37  ;;  %2772 = vmatmul.bf16.gmra.mxu1 %v8002_v56  ;;  %5263 = vmatmul.msk.bf16.gmra.mxu3 %vm2381_vm2, %v8004_v29  ;;  %v2538_v32 = vpop.f32.mrf.mxu0 }
 0x3f3   :  { %v2494_v35 = vpop.f32.mrf.mxu3  ;;  %2865 = vmatmul.bf16.gmra.mxu0 %v7938_v33 }
 0x3f4   :  { %v8426_v61 = vadd.f32 %v2494_v35, %v2445_v24  ;;  %5270 = vmatmul.msk.bf16.gmra.mxu2 %vm2381_vm2, %v7940_v5  ;;  %v6052_v24 = vld [vmem:[%s9366_s4 + $0x2f4] sm:$0xf]  ;;  %v5525_v35 = vld [vmem:[%s9366_s4 + $0x2f8] sm:$0xf0] }
 0x3f5   :  { %v2447_v14 = vpop.f32.mrf.mxu1 }
 0x3f7   :  { %v2587_v28 = vpop.f32.mrf.mxu2 }
 0x3f8   :  { %v8430_v20 = vadd.f32 %v2587_v28, %v2538_v32  ;;  %v2540_v25 = vpop.f32.mrf.mxu0  ;;  %v5524_v32 = vor.u32 %v6053_v17, %v5523_v60 }
 0x3fa   :  { %3525 = vmatpush.bf16.msrb.mxu3 %v5524_v32 }
 0x3fb   :  { %v2496_v0 = vpop.f32.mrf.mxu3 }
 0x3fc   :  { %v8438_v42 = vadd.f32 %v2496_v0, %v2447_v14  ;;  %v5528_v14 = vor.u32 %v6052_v24, %v5525_v35  ;;  %v6044_v0 = vld [vmem:[%s9366_s4 + $0x2b4] sm:$0xf] }
 0x3fd   :  { %v2450_v37 = vpop.f32.mrf.mxu1 }
 0x3fe   :  { %3623 = vmatpush.bf16.msrb.mxu2 %v5528_v14 }
 0x3ff   :  { %v2589_v27 = vpop.f32.mrf.mxu2 }
 0x400   :  { %v8440_v13 = vadd.f32 %v2589_v27, %v2540_v25  ;;  %2777 = vmatmul.bf16.gmra.mxu1 %v8072_v2  ;;  %5264 = vmatmul.msk.bf16.gmra.mxu3 %vm2381_vm2, %v8074_v47  ;;  %v2543_v31 = vpop.f32.mrf.mxu0  ;;  %v5493_v27 = vld [vmem:[%s9366_s4 + $0x2b8] sm:$0xf0] }
 0x403   :  { %v2499_v34 = vpop.f32.mrf.mxu3  ;;  %2870 = vmatmul.bf16.gmra.mxu0 %v8002_v56 }
 0x404   :  { %v8446_v11 = vadd.f32 %v2499_v34, %v2450_v37  ;;  %5271 = vmatmul.msk.bf16.gmra.mxu2 %vm2381_vm2, %v8004_v29  ;;  %v5492_v37 = vor.u32 %v6045_v54, %v5491_v41  ;;  %v5496_v34 = vor.u32 %v6044_v0, %v5493_v27  ;;  %v6043_v27 = vld [vmem:[%s9366_s4 + $0x2a4] sm:$0xf0] }
 0x405   :  { %v2452_v4 = vpop.f32.mrf.mxu1 }
 0x406   :  { %3472 = vmatpush.bf16.msrb.mxu1 %v5492_v37  ;;  %3570 = vmatpush.bf16.msrb.mxu0 %v5496_v34  ;;  %v5483_v37 = vld [vmem:[%s9366_s4 + $0x2a0] sm:$0xf] }
 0x407   :  { %v2592_v28 = vpop.f32.mrf.mxu2  ;;  %v5484_v34 = vor.u32 %v6043_v27, %v5483_v37 }
 0x408   :  { %v8462_v25 = vadd.f32 %v2592_v28, %v2543_v31  ;;  %v2545_v44 = vpop.f32.mrf.mxu0 }
 0x40a   :  { %3473 = vmatpush.bf16.msrb.mxu1 %v5484_v34 }
 0x40b   :  { %v2501_v31 = vpop.f32.mrf.mxu3 }
 0x40c   :  { %v8476_v60 = vadd.f32 %v2501_v31, %v2452_v4  ;;  %v6042_v31 = vld [vmem:[%s9366_s4 + $0x2a4] sm:$0xf] }
 0x40d   :  { %v2743_v17 = vpop.f32.mrf.mxu1 }
 0x40e   :  { %v2744_v24 = vadd.f32 %v2743_v17, %v8209_v6 }
 0x40f   :  { %v2594_v32 = vpop.f32.mrf.mxu2 }
 0x410   :  { %v8479_v35 = vadd.f32 %v2594_v32, %v2545_v44  ;;  %3095 = vmatmul.bf16.vlgmr.msra.gmra.mxu1 %v7770_v12  ;;  %5393 = vmatmul.msk.bf16.vlgmr.msra.gmra.mxu3 %vm2381_vm2, %v7772_v45  ;;  %v2548_v14 = vpop.f32.mrf.mxu0 }
 0x413   :  { %v2792_v28 = vpop.f32.mrf.mxu3  ;;  %2875 = vmatmul.bf16.gmra.mxu0 %v8072_v2 }
 0x414   :  { %v8485_v41 = vadd.f32 %v2792_v28, %v2744_v24  ;;  %5272 = vmatmul.msk.bf16.gmra.mxu2 %vm2381_vm2, %v8074_v47 }
 0x415   :  { %v2745_v4 = vpop.f32.mrf.mxu1 }
 0x416   :  { %v2746_v6 = vadd.f32 %v2745_v4, %v8232_v23  ;;  %v5485_v23 = vld [vmem:[%s9366_s4 + $0x2a8] sm:$0xf0] }
 0x417   :  { %v2597_v54 = vpop.f32.mrf.mxu2  ;;  %v5488_v24 = vor.u32 %v6042_v31, %v5485_v23 }
 0x418   :  { %v8490_v44 = vadd.f32 %v2597_v54, %v2548_v14  ;;  %v2550_v0 = vpop.f32.mrf.mxu0 }
 0x419   :  { %3571 = vmatpush.bf16.msrb.mxu0 %v5488_v24 }
 0x41b   :  { %v2794_v17 = vpop.f32.mrf.mxu3 }
 0x41c   :  { %v8504_v32 = vadd.f32 %v2794_v17, %v2746_v6 }
 0x41d   :  { %v2748_v14 = vpop.f32.mrf.mxu1 }
 0x41e   :  { %v2749_v28 = vadd.f32 %v2748_v14, %v8249_v18  ;;  %v5515_v18 = vld [vmem:[%s9366_s4 + $0x2e0] sm:$0xf] }
 0x41f   :  { %v2599_v4 = vpop.f32.mrf.mxu2 }
 0x420   :  { %v8507_v54 = vadd.f32 %v2599_v4, %v2550_v0  ;;  %3100 = vmatmul.bf16.gmra.mxu1 %v7822_v53  ;;  %5394 = vmatmul.msk.bf16.gmra.mxu3 %vm2381_vm2, %v7824_v39  ;;  %v2841_v37 = vpop.f32.mrf.mxu0  ;;  %v6051_v0 = vld [vmem:[%s9366_s4 + $0x2e4] sm:$0xf0]  ;;  %v6041_v4 = vld [vmem:[%s9366_s4 + $0x294] sm:$0xf0] }
 0x421   :  { %v2842_v27 = vadd.f32 %v2841_v37, %v8265_v30  ;;  %v6050_v30 = vld [vmem:[%s9366_s4 + $0x2e4] sm:$0xf]  ;;  %v5516_v34 = vor.u32 %v6051_v0, %v5515_v18 }
 0x423   :  { %v2797_v62 = vpop.f32.mrf.mxu3  ;;  %3193 = vmatmul.bf16.vlgmr.msra.gmra.mxu0 %v7770_v12  ;;  %v5517_v12 = vld [vmem:[%s9366_s4 + $0x2e8] sm:$0xf0]  ;;  %3526 = vmatpush.bf16.msrb.mxu3 %v5516_v34 }
 0x424   :  { %v8514_v6 = vadd.f32 %v2797_v62, %v2749_v28  ;;  %5401 = vmatmul.msk.bf16.vlgmr.msra.gmra.mxu2 %vm2381_vm2, %v7772_v45  ;;  %v5520_v62 = vor.u32 %v6050_v30, %v5517_v12  ;;  %v5475_v28 = vld [vmem:[%s9366_s4 + $0x290] sm:$0xf] }
 0x425   :  { %v2750_v31 = vpop.f32.mrf.mxu1  ;;  %v5476_v37 = vor.u32 %v6041_v4, %v5475_v28 }
 0x426   :  { %v2751_v45 = vadd.f32 %v2750_v31, %v8280_v43  ;;  %3624 = vmatpush.bf16.msrb.mxu2 %v5520_v62  ;;  %v6040_v43 = vld [vmem:[%s9366_s4 + $0x294] sm:$0xf] }
 0x427   :  { %v2890_v23 = vpop.f32.mrf.mxu2  ;;  %3474 = vmatpush.bf16.msrb.mxu1 %v5476_v37 }
 0x428   :  { %v8531_v17 = vadd.f32 %v2890_v23, %v2842_v27  ;;  %v2843_v24 = vpop.f32.mrf.mxu0  ;;  %v5477_v27 = vld [vmem:[%s9366_s4 + $0x298] sm:$0xf0] }
 0x429   :  { %v2844_v14 = vadd.f32 %v2843_v24, %v8286_v63  ;;  %v5480_v0 = vor.u32 %v6040_v43, %v5477_v27  ;;  %v6039_v27 = vld [vmem:[%s9366_s4 + $0x284] sm:$0xf0] }
 0x42b   :  { %v2799_v18 = vpop.f32.mrf.mxu3  ;;  %3572 = vmatpush.bf16.msrb.mxu0 %v5480_v0 }
 0x42c   :  { %v8546_v63 = vadd.f32 %v2799_v18, %v2751_v45  ;;  %v6038_v18 = vld [vmem:[%s9366_s4 + $0x284] sm:$0xf] }
 0x42d   :  { %v2753_v30 = vpop.f32.mrf.mxu1 }
 0x42e   :  { %v2754_v31 = vadd.f32 %v2753_v30, %v8292_v46 }
 0x42f   :  { %v2892_v34 = vpop.f32.mrf.mxu2 }
 0x430   :  { %v8549_v12 = vadd.f32 %v2892_v34, %v2844_v14  ;;  %3105 = vmatmul.bf16.gmra.mxu1 %v7886_v10  ;;  %5395 = vmatmul.msk.bf16.gmra.mxu3 %vm2381_vm2, %v7888_v9  ;;  %v2846_v62 = vpop.f32.mrf.mxu0 }
 0x431   :  { %v2847_v23 = vadd.f32 %v2846_v62, %v8296_v48  ;;  %v5467_v48 = vld [vmem:[%s9366_s4 + $0x280] sm:$0xf] }
 0x432   :  { %v5468_v0 = vor.u32 %v6039_v27, %v5467_v48 }
 0x433   :  { %v2802_v24 = vpop.f32.mrf.mxu3  ;;  %3198 = vmatmul.bf16.gmra.mxu0 %v7822_v53 }
 0x434   :  { %v8556_v45 = vadd.f32 %v2802_v24, %v2754_v31  ;;  %5402 = vmatmul.msk.bf16.gmra.mxu2 %vm2381_vm2, %v7824_v39  ;;  %3475 = vmatpush.bf16.msrb.mxu1 %v5468_v0 }
 0x435   :  { %v2755_v46 = vpop.f32.mrf.mxu1 }
 0x436   :  { %v2756_v14 = vadd.f32 %v2755_v46, %v8310_v1  ;;  %v5469_v1 = vld [vmem:[%s9366_s4 + $0x288] sm:$0xf0] }
 0x437   :  { %v2895_v28 = vpop.f32.mrf.mxu2  ;;  %v5472_v31 = vor.u32 %v6038_v18, %v5469_v1  ;;  %v5509_v18 = vld [vmem:[%s9366_s4 + $0x2d8] sm:$0xf0] }
 0x438   :  { %v8561_v4 = vadd.f32 %v2895_v28, %v2847_v23  ;;  %v2848_v43 = vpop.f32.mrf.mxu0 }
 0x439   :  { %v2849_v37 = vadd.f32 %v2848_v43, %v8312_v3  ;;  %3573 = vmatpush.bf16.msrb.mxu0 %v5472_v31 }
 0x43b   :  { %v2804_v30 = vpop.f32.mrf.mxu3 }
 0x43c   :  { %v8576_v3 = vadd.f32 %v2804_v30, %v2756_v14 }
 0x43d   :  { %v2758_v34 = vpop.f32.mrf.mxu1 }
 0x43e   :  { %v2759_v62 = vadd.f32 %v2758_v34, %v8318_v55  ;;  %v5507_v55 = vld [vmem:[%s9366_s4 + $0x2d0] sm:$0xf] }
 0x43f   :  { %v2897_v23 = vpop.f32.mrf.mxu2 }
 0x440   :  { %v8579_v24 = vadd.f32 %v2897_v23, %v2849_v37  ;;  %3110 = vmatmul.bf16.gmra.mxu1 %v7938_v33  ;;  %5396 = vmatmul.msk.bf16.gmra.mxu3 %vm2381_vm2, %v7940_v5  ;;  %v2851_v46 = vpop.f32.mrf.mxu0  ;;  %v6049_v37 = vld [vmem:[%s9366_s4 + $0x2d4] sm:$0xf0]  ;;  %v5459_v23 = vld [vmem:[%s9366_s4 + $0x270] sm:$0xf] }
 0x441   :  { %v2852_v28 = vadd.f32 %v2851_v46, %v8334_v57  ;;  %v6048_v57 = vld [vmem:[%s9366_s4 + $0x2d4] sm:$0xf]  ;;  %v5508_v27 = vor.u32 %v6049_v37, %v5507_v55  ;;  %v6037_v46 = vld [vmem:[%s9366_s4 + $0x274] sm:$0xf0] }
 0x442   :  { %v5512_v1 = vor.u32 %v6048_v57, %v5509_v18 }
 0x443   :  { %v2807_v43 = vpop.f32.mrf.mxu3  ;;  %3203 = vmatmul.bf16.gmra.mxu0 %v7886_v10  ;;  %3527 = vmatpush.bf16.msrb.mxu3 %v5508_v27 }
 0x444   :  { %v8586_v14 = vadd.f32 %v2807_v43, %v2759_v62  ;;  %5403 = vmatmul.msk.bf16.gmra.mxu2 %vm2381_vm2, %v7888_v9  ;;  %v5460_v43 = vor.u32 %v6037_v46, %v5459_v23 }
 0x445   :  { %v2760_v48 = vpop.f32.mrf.mxu1  ;;  %3625 = vmatpush.bf16.msrb.mxu2 %v5512_v1 }
 0x446   :  { %v2761_v0 = vadd.f32 %v2760_v48, %v8348_v15  ;;  %v6036_v15 = vld [vmem:[%s9366_s4 + $0x274] sm:$0xf]  ;;  %3476 = vmatpush.bf16.msrb.mxu1 %v5460_v43 }
 0x447   :  { %v2900_v30 = vpop.f32.mrf.mxu2 }
 0x448   :  { %v8603_v31 = vadd.f32 %v2900_v30, %v2852_v28  ;;  %v2853_v34 = vpop.f32.mrf.mxu0  ;;  %v5461_v28 = vld [vmem:[%s9366_s4 + $0x278] sm:$0xf0] }
 0x449   :  { %v2854_v62 = vadd.f32 %v2853_v34, %v8350_v59  ;;  %v5464_v37 = vor.u32 %v6036_v15, %v5461_v28  ;;  %v6035_v28 = vld [vmem:[%s9366_s4 + $0x264] sm:$0xf0] }
 0x44b   :  { %v2809_v55 = vpop.f32.mrf.mxu3  ;;  %3574 = vmatpush.bf16.msrb.mxu0 %v5464_v37 }
 0x44c   :  { %v8618_v59 = vadd.f32 %v2809_v55, %v2761_v0  ;;  %v6034_v55 = vld [vmem:[%s9366_s4 + $0x264] sm:$0xf] }
 0x44d   :  { %v2763_v57 = vpop.f32.mrf.mxu1 }
 0x44e   :  { %v2764_v48 = vadd.f32 %v2763_v57, %v8356_v52 }
 0x44f   :  { %v2902_v27 = vpop.f32.mrf.mxu2 }
 0x450   :  { %v8621_v18 = vadd.f32 %v2902_v27, %v2854_v62  ;;  %3115 = vmatmul.bf16.gmra.mxu1 %v8002_v56  ;;  %5397 = vmatmul.msk.bf16.gmra.mxu3 %vm2381_vm2, %v8004_v29  ;;  %v2856_v1 = vpop.f32.mrf.mxu0 }
 0x451   :  { %v2857_v30 = vadd.f32 %v2856_v1, %v8360_v49  ;;  %v5451_v49 = vld [vmem:[%s9366_s4 + $0x260] sm:$0xf] }
 0x452   :  { %v5452_v37 = vor.u32 %v6035_v28, %v5451_v49 }
 0x453   :  { %v2812_v34 = vpop.f32.mrf.mxu3  ;;  %3208 = vmatmul.bf16.gmra.mxu0 %v7938_v33 }
 0x454   :  { %v8628_v0 = vadd.f32 %v2812_v34, %v2764_v48  ;;  %5404 = vmatmul.msk.bf16.gmra.mxu2 %vm2381_vm2, %v7940_v5  ;;  %3477 = vmatpush.bf16.msrb.mxu1 %v5452_v37 }
 0x455   :  { %v2765_v52 = vpop.f32.mrf.mxu1 }
 0x456   :  { %v2766_v62 = vadd.f32 %v2765_v52, %v8374_v36  ;;  %v5453_v36 = vld [vmem:[%s9366_s4 + $0x268] sm:$0xf0] }
 0x457   :  { %v2905_v23 = vpop.f32.mrf.mxu2  ;;  %v5456_v48 = vor.u32 %v6034_v55, %v5453_v36  ;;  %v5501_v55 = vld [vmem:[%s9366_s4 + $0x2c8] sm:$0xf0] }
 0x458   :  { %v8633_v46 = vadd.f32 %v2905_v23, %v2857_v30  ;;  %v2858_v15 = vpop.f32.mrf.mxu0 }
 0x459   :  { %v2859_v43 = vadd.f32 %v2858_v15, %v8376_v22  ;;  %3575 = vmatpush.bf16.msrb.mxu0 %v5456_v48  ;;  %v6033_v48 = vld [vmem:[%s9366_s4 + $0x254] sm:$0xf0] }
 0x45b   :  { %v2814_v57 = vpop.f32.mrf.mxu3 }
 0x45c   :  { %v8648_v22 = vadd.f32 %v2814_v57, %v2766_v62  ;;  %v5443_v57 = vld [vmem:[%s9366_s4 + $0x250] sm:$0xf] }
 0x45d   :  { %v2768_v27 = vpop.f32.mrf.mxu1 }
 0x45e   :  { %v2769_v1 = vadd.f32 %v2768_v27, %v8382_v16  ;;  %v5499_v16 = vld [vmem:[%s9366_s4 + $0x2c0] sm:$0xf] }
 0x45f   :  { %v2907_v30 = vpop.f32.mrf.mxu2 }
 0x460   :  { %v8651_v34 = vadd.f32 %v2907_v30, %v2859_v43  ;;  %3120 = vmatmul.bf16.gmra.mxu1 %v8072_v2  ;;  %5398 = vmatmul.msk.bf16.gmra.mxu3 %vm2381_vm2, %v8074_v47  ;;  %v2861_v52 = vpop.f32.mrf.mxu0  ;;  %v6047_v43 = vld [vmem:[%s9366_s4 + $0x2c4] sm:$0xf0] }
 0x461   :  { %v2862_v23 = vadd.f32 %v2861_v52, %v8404_v50  ;;  %v6046_v50 = vld [vmem:[%s9366_s4 + $0x2c4] sm:$0xf]  ;;  %v5500_v28 = vor.u32 %v6047_v43, %v5499_v16  ;;  %v5445_v16 = vld [vmem:[%s9366_s4 + $0x258] sm:$0xf0] }
 0x462   :  { %v5504_v36 = vor.u32 %v6046_v50, %v5501_v55  ;;  %v5435_v50 = vld [vmem:[%s9366_s4 + $0x240] sm:$0xf] }
 0x463   :  { %v2817_v15 = vpop.f32.mrf.mxu3  ;;  %3213 = vmatmul.bf16.gmra.mxu0 %v8002_v56  ;;  %3528 = vmatpush.bf16.msrb.mxu3 %v5500_v28 }
 0x464   :  { %v8658_v62 = vadd.f32 %v2817_v15, %v2769_v1  ;;  %5405 = vmatmul.msk.bf16.gmra.mxu2 %vm2381_vm2, %v8004_v29  ;;  %v5444_v1 = vor.u32 %v6033_v48, %v5443_v57 }
 0x465   :  { %v2770_v49 = vpop.f32.mrf.mxu1  ;;  %3626 = vmatpush.bf16.msrb.mxu2 %v5504_v36 }
 0x466   :  { %v2771_v37 = vadd.f32 %v2770_v49, %v8418_v58  ;;  %3478 = vmatpush.bf16.msrb.mxu1 %v5444_v1  ;;  %v6032_v58 = vld [vmem:[%s9366_s4 + $0x254] sm:$0xf] }
 0x467   :  { %v2910_v27 = vpop.f32.mrf.mxu2  ;;  %v5448_v43 = vor.u32 %v6032_v58, %v5445_v16 }
 0x468   :  { %v8681_v30 = vadd.f32 %v2910_v27, %v2862_v23  ;;  %v2863_v52 = vpop.f32.mrf.mxu0  ;;  %v6031_v23 = vld [vmem:[%s9366_s4 + $0x244] sm:$0xf0] }
 0x469   :  { %v2864_v15 = vadd.f32 %v2863_v52, %v8420_v7  ;;  %v5436_v7 = vor.u32 %v6031_v23, %v5435_v50  ;;  %3576 = vmatpush.bf16.msrb.mxu0 %v5448_v43  ;;  %v5437_v23 = vld [vmem:[%s9366_s4 + $0x248] sm:$0xf0] }
 0x46b   :  { %v2819_v49 = vpop.f32.mrf.mxu3  ;;  %3479 = vmatpush.bf16.msrb.mxu1 %v5436_v7 }
 0x46c   :  { %v8696_v28 = vadd.f32 %v2819_v49, %v2771_v37 }
 0x46d   :  { %v2773_v55 = vpop.f32.mrf.mxu1 }
 0x46e   :  { %v2774_v36 = vadd.f32 %v2773_v55, %v8426_v61 }
 0x46f   :  { %v2912_v57 = vpop.f32.mrf.mxu2 }
 0x470   :  { %v8699_v48 = vadd.f32 %v2912_v57, %v2864_v15  ;;  %3125 = vmatmul.bf16.gmra.mxu1 %v8124_v38  ;;  %5399 = vmatmul.msk.bf16.gmra.mxu3 %vm2381_vm2, %v8126_v8  ;;  %v2866_v27 = vpop.f32.mrf.mxu0 }
 0x471   :  { %v2867_v1 = vadd.f32 %v2866_v27, %v8430_v20  ;;  %v6030_v20 = vld [vmem:[%s9366_s4 + $0x244] sm:$0xf] }
 0x472   :  { %v5440_v49 = vor.u32 %v6030_v20, %v5437_v23  ;;  %v5661_v23 = vld [vmem:[%s9366_s4 + $0x3b8] sm:$0xf0] }
 0x473   :  { %v2822_v52 = vpop.f32.mrf.mxu3  ;;  %3218 = vmatmul.bf16.gmra.mxu0 %v8072_v2 }
 0x474   :  { %v8706_v37 = vadd.f32 %v2822_v52, %v2774_v36  ;;  %5406 = vmatmul.msk.bf16.gmra.mxu2 %vm2381_vm2, %v8074_v47  ;;  %3577 = vmatpush.bf16.msrb.mxu0 %v5440_v49 }
 0x475   :  { %v2775_v61 = vpop.f32.mrf.mxu1 }
 0x476   :  { %v2776_v15 = vadd.f32 %v2775_v61, %v8438_v42 }
 0x477   :  { %v2915_v58 = vpop.f32.mrf.mxu2 }
 0x478   :  { %v8711_v16 = vadd.f32 %v2915_v58, %v2867_v1  ;;  %v2868_v43 = vpop.f32.mrf.mxu0  ;;  %v5659_v58 = vld [vmem:[%s9366_s4 + $0x3b0] sm:$0xf] }
 0x479   :  { %v2869_v50 = vadd.f32 %v2868_v43, %v8440_v13  ;;  %v6077_v43 = vld [vmem:[%s9366_s4 + $0x3b4] sm:$0xf0] }
 0x47a   :  { %v5660_v20 = vor.u32 %v6077_v43, %v5659_v58 }
 0x47b   :  { %v2824_v7 = vpop.f32.mrf.mxu3 }
 0x47c   :  { %v8720_v55 = vadd.f32 %v2824_v7, %v2776_v15  ;;  %3910 = vmatpush.bf16.msra.mxu3 %v5660_v20 }
 0x47d   :  { %v2778_v42 = vpop.f32.mrf.mxu1 }
 0x47e   :  { %v2779_v36 = vadd.f32 %v2778_v42, %v8446_v11 }
 0x47f   :  { %v2917_v57 = vpop.f32.mrf.mxu2 }
 0x480   :  { %v8723_v27 = vadd.f32 %v2917_v57, %v2869_v50  ;;  %3130 = vmatmul.bf16.gmra.mxu1 %v8194_v19  ;;  %5400 = vmatmul.msk.bf16.gmra.mxu3 %vm2381_vm2, %v8196_v40  ;;  %v2871_v13 = vpop.f32.mrf.mxu0  ;;  %v6069_v57 = vld [vmem:[%s9366_s4 + $0x374] sm:$0xf0] }
 0x481   :  { %v2872_v1 = vadd.f32 %v2871_v13, %v8462_v25  ;;  %v6076_v25 = vld [vmem:[%s9366_s4 + $0x3b4] sm:$0xf] }
 0x482   :  { %v5664_v7 = vor.u32 %v6076_v25, %v5661_v23  ;;  %v6068_v13 = vld [vmem:[%s9366_s4 + $0x374] sm:$0xf] }
 0x483   :  { %v2827_v52 = vpop.f32.mrf.mxu3  ;;  %3223 = vmatmul.bf16.gmra.mxu0 %v8124_v38 }
 0x484   :  { %v8730_v61 = vadd.f32 %v2827_v52, %v2779_v36  ;;  %5407 = vmatmul.msk.bf16.gmra.mxu2 %vm2381_vm2, %v8126_v8  ;;  %v5627_v36 = vld [vmem:[%s9366_s4 + $0x370] sm:$0xf] }
 0x485   :  { %v2780_v11 = vpop.f32.mrf.mxu1  ;;  %4008 = vmatpush.bf16.msra.mxu2 %v5664_v7  ;;  %v5628_v52 = vor.u32 %v6069_v57, %v5627_v36 }
 0x486   :  { %v2781_v15 = vadd.f32 %v2780_v11, %v8476_v60 }
 0x487   :  { %v2920_v50 = vpop.f32.mrf.mxu2  ;;  %3857 = vmatpush.bf16.msra.mxu1 %v5628_v52  ;;  %v6067_v52 = vld [vmem:[%s9366_s4 + $0x364] sm:$0xf0] }
 0x488   :  { %v8747_v49 = vadd.f32 %v2920_v50, %v2872_v1  ;;  %v2873_v60 = vpop.f32.mrf.mxu0 }
 0x489   :  { %v2874_v42 = vadd.f32 %v2873_v60, %v8479_v35  ;;  %v5629_v35 = vld [vmem:[%s9366_s4 + $0x378] sm:$0xf0] }
 0x48a   :  { %v5632_v58 = vor.u32 %v6068_v13, %v5629_v35  ;;  %v6066_v35 = vld [vmem:[%s9366_s4 + $0x364] sm:$0xf] }
 0x48b   :  { %v2829_v1 = vpop.f32.mrf.mxu3 }
 0x48c   :  { %v8762_v11 = vadd.f32 %v2829_v1, %v2781_v15  ;;  %3955 = vmatpush.bf16.msra.mxu0 %v5632_v58 }
 0x48d   :  { %v3096_v43 = vpop.f32.mrf.mxu1 }
 0x48f   :  { %v2922_v25 = vpop.f32.mrf.mxu2 }
 0x490   :  { %v8764_v50 = vadd.f32 %v2922_v25, %v2874_v42  ;;  %3480 = vmatmul.bf16.vlgmr.msrb.gmra.mxu1 %v7822_v53  ;;  %5529 = vmatmul.msk.bf16.vlgmr.msrb.gmra.mxu3 %vm2381_vm2, %v7824_v39  ;;  %v2876_v20 = vpop.f32.mrf.mxu0 }
 0x491   :  { %v2877_v23 = vadd.f32 %v2876_v20, %v8490_v44  ;;  %v5619_v44 = vld [vmem:[%s9366_s4 + $0x360] sm:$0xf] }
 0x492   :  { %v5620_v58 = vor.u32 %v6067_v52, %v5619_v44  ;;  %v6075_v52 = vld [vmem:[%s9366_s4 + $0x3a4] sm:$0xf0] }
 0x493   :  { %v3145_v60 = vpop.f32.mrf.mxu3  ;;  %3228 = vmatmul.bf16.gmra.mxu0 %v8194_v19 }
 0x494   :  { %v3146_v15 = vadd.f32 %v3145_v60, %v3096_v43  ;;  %5408 = vmatmul.msk.bf16.gmra.mxu2 %vm2381_vm2, %v8196_v40  ;;  %v5621_v43 = vld [vmem:[%s9366_s4 + $0x368] sm:$0xf0]  ;;  %3858 = vmatpush.bf16.msra.mxu1 %v5620_v58 }
 0x495   :  { %v3098_v7 = vpop.f32.mrf.mxu1 }
 0x496   :  { %v8774_v36 = vadd.f32 %v3146_v15, %v8485_v41 }
 0x497   :  { %v2925_v42 = vpop.f32.mrf.mxu2 }
 0x498   :  { %v8776_v57 = vadd.f32 %v2925_v42, %v2877_v23  ;;  %v2878_v13 = vpop.f32.mrf.mxu0 }
 0x499   :  { %v2879_v1 = vadd.f32 %v2878_v13, %v8507_v54  ;;  %v5624_v54 = vor.u32 %v6066_v35, %v5621_v43 }
 0x49b   :  { %v3147_v41 = vpop.f32.mrf.mxu3  ;;  %3956 = vmatpush.bf16.msra.mxu0 %v5624_v54  ;;  %v5611_v54 = vld [vmem:[%s9366_s4 + $0x350] sm:$0xf] }
 0x49c   :  { %v3148_v25 = vadd.f32 %v3147_v41, %v3098_v7 }
 0x49d   :  { %v3101_v20 = vpop.f32.mrf.mxu1 }
 0x49e   :  { %v8792_v23 = vadd.f32 %v3148_v25, %v8504_v32 }
 0x49f   :  { %v2927_v60 = vpop.f32.mrf.mxu2 }
 0x4a0   :  { %v8794_v15 = vadd.f32 %v2927_v60, %v2879_v1  ;;  %3485 = vmatmul.bf16.gmra.mxu1 %v7886_v10  ;;  %5530 = vmatmul.msk.bf16.gmra.mxu3 %vm2381_vm2, %v7888_v9  ;;  %v3194_v42 = vpop.f32.mrf.mxu0  ;;  %v5651_v1 = vld [vmem:[%s9366_s4 + $0x3a0] sm:$0xf]  ;;  %v6064_v60 = vld [vmem:[%s9366_s4 + $0x354] sm:$0xf] }
 0x4a1   :  { %v5652_v41 = vor.u32 %v6075_v52, %v5651_v1 }
 0x4a3   :  { %v3150_v13 = vpop.f32.mrf.mxu3  ;;  %3578 = vmatmul.bf16.vlgmr.msrb.gmra.mxu0 %v7822_v53  ;;  %v6074_v53 = vld [vmem:[%s9366_s4 + $0x3a4] sm:$0xf]  ;;  %3911 = vmatpush.bf16.msra.mxu3 %v5652_v41 }
 0x4a4   :  { %v3151_v7 = vadd.f32 %v3150_v13, %v3101_v20  ;;  %5537 = vmatmul.msk.bf16.vlgmr.msrb.gmra.mxu2 %vm2381_vm2, %v7824_v39  ;;  %v5653_v39 = vld [vmem:[%s9366_s4 + $0x3a8] sm:$0xf0]  ;;  %v6065_v20 = vld [vmem:[%s9366_s4 + $0x354] sm:$0xf0] }
 0x4a5   :  { %v3103_v44 = vpop.f32.mrf.mxu1  ;;  %v5656_v43 = vor.u32 %v6074_v53, %v5653_v39  ;;  %v5612_v13 = vor.u32 %v6065_v20, %v5611_v54 }
 0x4a6   :  { %v8803_v32 = vadd.f32 %v3151_v7, %v8514_v6 }
 0x4a7   :  { %v3243_v35 = vpop.f32.mrf.mxu2  ;;  %4009 = vmatpush.bf16.msra.mxu2 %v5656_v43  ;;  %3859 = vmatpush.bf16.msra.mxu1 %v5612_v13  ;;  %v6063_v13 = vld [vmem:[%s9366_s4 + $0x344] sm:$0xf0] }
 0x4a8   :  { %v3244_v6 = vadd.f32 %v3243_v35, %v3194_v42  ;;  %v3196_v58 = vpop.f32.mrf.mxu0 }
 0x4aa   :  { %v8818_v25 = vadd.f32 %v3244_v6, %v8531_v17  ;;  %v5613_v17 = vld [vmem:[%s9366_s4 + $0x358] sm:$0xf0] }
 0x4ab   :  { %v3152_v42 = vpop.f32.mrf.mxu3  ;;  %v5616_v1 = vor.u32 %v6064_v60, %v5613_v17  ;;  %v6062_v17 = vld [vmem:[%s9366_s4 + $0x344] sm:$0xf] }
 0x4ac   :  { %v3153_v7 = vadd.f32 %v3152_v42, %v3103_v44 }
 0x4ad   :  { %v3106_v52 = vpop.f32.mrf.mxu1  ;;  %3957 = vmatpush.bf16.msra.mxu0 %v5616_v1  ;;  %v5605_v1 = vld [vmem:[%s9366_s4 + $0x348] sm:$0xf0] }
 0x4ae   :  { %v8833_v53 = vadd.f32 %v3153_v7, %v8546_v63 }
 0x4af   :  { %v3245_v35 = vpop.f32.mrf.mxu2 }
 0x4b0   :  { %v3246_v41 = vadd.f32 %v3245_v35, %v3196_v58  ;;  %3490 = vmatmul.bf16.gmra.mxu1 %v7938_v33  ;;  %5531 = vmatmul.msk.bf16.gmra.mxu3 %vm2381_vm2, %v7940_v5  ;;  %v3199_v39 = vpop.f32.mrf.mxu0 }
 0x4b2   :  { %v8839_v6 = vadd.f32 %v3246_v41, %v8549_v12  ;;  %v5603_v12 = vld [vmem:[%s9366_s4 + $0x340] sm:$0xf] }
 0x4b3   :  { %v3155_v43 = vpop.f32.mrf.mxu3  ;;  %3583 = vmatmul.bf16.gmra.mxu0 %v7886_v10  ;;  %v5604_v7 = vor.u32 %v6063_v13, %v5603_v12  ;;  %v6072_v13 = vld [vmem:[%s9366_s4 + $0x394] sm:$0xf] }
 0x4b4   :  { %v3156_v44 = vadd.f32 %v3155_v43, %v3106_v52  ;;  %5538 = vmatmul.msk.bf16.gmra.mxu2 %vm2381_vm2, %v7888_v9  ;;  %v5608_v52 = vor.u32 %v6062_v17, %v5605_v1 }
 0x4b5   :  { %v3108_v63 = vpop.f32.mrf.mxu1  ;;  %3860 = vmatpush.bf16.msra.mxu1 %v5604_v7  ;;  %v5645_v7 = vld [vmem:[%s9366_s4 + $0x398] sm:$0xf0] }
 0x4b6   :  { %v8845_v54 = vadd.f32 %v3156_v44, %v8556_v45  ;;  %3958 = vmatpush.bf16.msra.mxu0 %v5608_v52 }
 0x4b7   :  { %v3248_v58 = vpop.f32.mrf.mxu2 }
 0x4b8   :  { %v3249_v20 = vadd.f32 %v3248_v58, %v3199_v39  ;;  %v3201_v60 = vpop.f32.mrf.mxu0 }
 0x4ba   :  { %v8848_v42 = vadd.f32 %v3249_v20, %v8561_v4 }
 0x4bb   :  { %v3157_v45 = vpop.f32.mrf.mxu3 }
 0x4bc   :  { %v3158_v4 = vadd.f32 %v3157_v45, %v3108_v63 }
 0x4bd   :  { %v3111_v35 = vpop.f32.mrf.mxu1 }
 0x4be   :  { %v8863_v41 = vadd.f32 %v3158_v4, %v8576_v3  ;;  %v5648_v4 = vor.u32 %v6072_v13, %v5645_v7 }
 0x4bf   :  { %v3250_v39 = vpop.f32.mrf.mxu2 }
 0x4c0   :  { %v3251_v43 = vadd.f32 %v3250_v39, %v3201_v60  ;;  %3495 = vmatmul.bf16.gmra.mxu1 %v8002_v56  ;;  %5532 = vmatmul.msk.bf16.gmra.mxu3 %vm2381_vm2, %v8004_v29  ;;  %v3204_v44 = vpop.f32.mrf.mxu0  ;;  %v5643_v60 = vld [vmem:[%s9366_s4 + $0x390] sm:$0xf]  ;;  %v6061_v39 = vld [vmem:[%s9366_s4 + $0x334] sm:$0xf0] }
 0x4c1   :  { %4010 = vmatpush.bf16.msra.mxu2 %v5648_v4 }
 0x4c2   :  { %v8869_v58 = vadd.f32 %v3251_v43, %v8579_v24  ;;  %v6073_v24 = vld [vmem:[%s9366_s4 + $0x394] sm:$0xf0]  ;;  %v6060_v43 = vld [vmem:[%s9366_s4 + $0x334] sm:$0xf] }
 0x4c3   :  { %v3160_v20 = vpop.f32.mrf.mxu3  ;;  %3588 = vmatmul.bf16.gmra.mxu0 %v7938_v33  ;;  %v5644_v45 = vor.u32 %v6073_v24, %v5643_v60 }
 0x4c4   :  { %v3161_v63 = vadd.f32 %v3160_v20, %v3111_v35  ;;  %5539 = vmatmul.msk.bf16.gmra.mxu2 %vm2381_vm2, %v7940_v5  ;;  %v5595_v35 = vld [vmem:[%s9366_s4 + $0x330] sm:$0xf] }
 0x4c5   :  { %v3113_v3 = vpop.f32.mrf.mxu1  ;;  %3912 = vmatpush.bf16.msra.mxu3 %v5644_v45  ;;  %v5596_v20 = vor.u32 %v6061_v39, %v5595_v35 }
 0x4c6   :  { %v8875_v12 = vadd.f32 %v3161_v63, %v8586_v14 }
 0x4c7   :  { %v3253_v17 = vpop.f32.mrf.mxu2  ;;  %3861 = vmatpush.bf16.msra.mxu1 %v5596_v20  ;;  %v6059_v20 = vld [vmem:[%s9366_s4 + $0x324] sm:$0xf0] }
 0x4c8   :  { %v3254_v14 = vadd.f32 %v3253_v17, %v3204_v44  ;;  %v3206_v1 = vpop.f32.mrf.mxu0 }
 0x4ca   :  { %v8890_v52 = vadd.f32 %v3254_v14, %v8603_v31  ;;  %v5597_v31 = vld [vmem:[%s9366_s4 + $0x338] sm:$0xf0] }
 0x4cb   :  { %v3162_v44 = vpop.f32.mrf.mxu3  ;;  %v5600_v60 = vor.u32 %v6060_v43, %v5597_v31  ;;  %v6058_v31 = vld [vmem:[%s9366_s4 + $0x324] sm:$0xf] }
 0x4cc   :  { %v3163_v63 = vadd.f32 %v3162_v44, %v3113_v3 }
 0x4cd   :  { %v3116_v24 = vpop.f32.mrf.mxu1  ;;  %3959 = vmatpush.bf16.msra.mxu0 %v5600_v60  ;;  %v5589_v60 = vld [vmem:[%s9366_s4 + $0x328] sm:$0xf0] }
 0x4ce   :  { %v8905_v13 = vadd.f32 %v3163_v63, %v8618_v59 }
 0x4cf   :  { %v3255_v17 = vpop.f32.mrf.mxu2 }
 0x4d0   :  { %v3256_v45 = vadd.f32 %v3255_v17, %v3206_v1  ;;  %3500 = vmatmul.bf16.gmra.mxu1 %v8072_v2  ;;  %5533 = vmatmul.msk.bf16.gmra.mxu3 %vm2381_vm2, %v8074_v47  ;;  %v3209_v7 = vpop.f32.mrf.mxu0 }
 0x4d2   :  { %v8911_v14 = vadd.f32 %v3256_v45, %v8621_v18  ;;  %v5587_v18 = vld [vmem:[%s9366_s4 + $0x320] sm:$0xf] }
 0x4d3   :  { %v3165_v4 = vpop.f32.mrf.mxu3  ;;  %3593 = vmatmul.bf16.gmra.mxu0 %v8002_v56  ;;  %v5588_v63 = vor.u32 %v6059_v20, %v5587_v18  ;;  %v6070_v20 = vld [vmem:[%s9366_s4 + $0x384] sm:$0xf] }
 0x4d4   :  { %v3166_v3 = vadd.f32 %v3165_v4, %v3116_v24  ;;  %5540 = vmatmul.msk.bf16.gmra.mxu2 %vm2381_vm2, %v8004_v29  ;;  %v5592_v24 = vor.u32 %v6058_v31, %v5589_v60  ;;  %v6057_v60 = vld [vmem:[%s9366_s4 + $0x314] sm:$0xf0] }
 0x4d5   :  { %v3118_v59 = vpop.f32.mrf.mxu1  ;;  %3862 = vmatpush.bf16.msra.mxu1 %v5588_v63  ;;  %v5637_v63 = vld [vmem:[%s9366_s4 + $0x388] sm:$0xf0] }
 0x4d6   :  { %v8917_v35 = vadd.f32 %v3166_v3, %v8628_v0  ;;  %3960 = vmatpush.bf16.msra.mxu0 %v5592_v24 }
 0x4d7   :  { %v3258_v1 = vpop.f32.mrf.mxu2 }
 0x4d8   :  { %v3259_v39 = vadd.f32 %v3258_v1, %v3209_v7  ;;  %v3211_v43 = vpop.f32.mrf.mxu0 }
 0x4da   :  { %v8920_v44 = vadd.f32 %v3259_v39, %v8633_v46 }
 0x4db   :  { %v3167_v0 = vpop.f32.mrf.mxu3 }
 0x4dc   :  { %v3168_v46 = vadd.f32 %v3167_v0, %v3118_v59 }
 0x4dd   :  { %v3121_v17 = vpop.f32.mrf.mxu1 }
 0x4de   :  { %v8935_v45 = vadd.f32 %v3168_v46, %v8648_v22 }
 0x4df   :  { %v3260_v7 = vpop.f32.mrf.mxu2 }
 0x4e0   :  { %v3261_v4 = vadd.f32 %v3260_v7, %v3211_v43  ;;  %3505 = vmatmul.bf16.gmra.mxu1 %v8124_v38  ;;  %5534 = vmatmul.msk.bf16.gmra.mxu3 %vm2381_vm2, %v8126_v8  ;;  %v3214_v3 = vpop.f32.mrf.mxu0  ;;  %v5635_v43 = vld [vmem:[%s9366_s4 + $0x380] sm:$0xf] }
 0x4e2   :  { %v8941_v1 = vadd.f32 %v3261_v4, %v8651_v34  ;;  %v6071_v34 = vld [vmem:[%s9366_s4 + $0x384] sm:$0xf0] }
 0x4e3   :  { %v3170_v39 = vpop.f32.mrf.mxu3  ;;  %3598 = vmatmul.bf16.gmra.mxu0 %v8072_v2  ;;  %v5636_v0 = vor.u32 %v6071_v34, %v5635_v43 }
 0x4e4   :  { %v3171_v59 = vadd.f32 %v3170_v39, %v3121_v17  ;;  %5541 = vmatmul.msk.bf16.gmra.mxu2 %vm2381_vm2, %v8074_v47  ;;  %v5640_v17 = vor.u32 %v6070_v20, %v5637_v63  ;;  %v6056_v39 = vld [vmem:[%s9366_s4 + $0x314] sm:$0xf] }
 0x4e5   :  { %v3123_v22 = vpop.f32.mrf.mxu1  ;;  %3913 = vmatpush.bf16.msra.mxu3 %v5636_v0 }
 0x4e6   :  { %v8947_v18 = vadd.f32 %v3171_v59, %v8658_v62  ;;  %v5579_v62 = vld [vmem:[%s9366_s4 + $0x310] sm:$0xf]  ;;  %4011 = vmatpush.bf16.msra.mxu2 %v5640_v17  ;;  %v5581_v59 = vld [vmem:[%s9366_s4 + $0x318] sm:$0xf0] }
 0x4e7   :  { %v3263_v31 = vpop.f32.mrf.mxu2  ;;  %v5580_v7 = vor.u32 %v6057_v60, %v5579_v62  ;;  %v5584_v34 = vor.u32 %v6056_v39, %v5581_v59 }
 0x4e8   :  { %v3264_v46 = vadd.f32 %v3263_v31, %v3214_v3  ;;  %v3216_v24 = vpop.f32.mrf.mxu0  ;;  %v5571_v3 = vld [vmem:[%s9366_s4 + $0x300] sm:$0xf] }
 0x4e9   :  { %3863 = vmatpush.bf16.msra.mxu1 %v5580_v7  ;;  %3961 = vmatpush.bf16.msra.mxu0 %v5584_v34  ;;  %v5573_v34 = vld [vmem:[%s9366_s4 + $0x308] sm:$0xf0] }
 0x4ea   :  { %v8968_v4 = vadd.f32 %v3264_v46, %v8681_v30  ;;  %v6055_v30 = vld [vmem:[%s9366_s4 + $0x304] sm:$0xf0] }
 0x4eb   :  { %v3172_v43 = vpop.f32.mrf.mxu3  ;;  %v5572_v31 = vor.u32 %v6055_v30, %v5571_v3 }
 0x4ec   :  { %v3173_v20 = vadd.f32 %v3172_v43, %v3123_v22 }
 0x4ed   :  { %v3126_v0 = vpop.f32.mrf.mxu1  ;;  %3864 = vmatpush.bf16.msra.mxu1 %v5572_v31 }
 0x4ee   :  { %v8983_v63 = vadd.f32 %v3173_v20, %v8696_v28 }
 0x4ef   :  { %v3265_v62 = vpop.f32.mrf.mxu2 }
 0x4f0   :  { %v3266_v60 = vadd.f32 %v3265_v62, %v3216_v24  ;;  %3510 = vmatmul.bf16.gmra.mxu1 %v8194_v19  ;;  %5535 = vmatmul.msk.bf16.gmra.mxu3 %vm2381_vm2, %v8196_v40  ;;  %v3219_v46 = vpop.f32.mrf.mxu0 }
 0x4f2   :  { %v8989_v17 = vadd.f32 %v3266_v60, %v8699_v48  ;;  %v6054_v48 = vld [vmem:[%s9366_s4 + $0x304] sm:$0xf] }
 0x4f3   :  { %v3175_v7 = vpop.f32.mrf.mxu3  ;;  %3603 = vmatmul.bf16.gmra.mxu0 %v8124_v38  ;;  %v5576_v20 = vor.u32 %v6054_v48, %v5573_v34 }
 0x4f4   :  { %v3176_v22 = vadd.f32 %v3175_v7, %v3126_v0  ;;  %5542 = vmatmul.msk.bf16.gmra.mxu2 %vm2381_vm2, %v8126_v8 }
 0x4f5   :  { %v3128_v28 = vpop.f32.mrf.mxu1  ;;  %3962 = vmatpush.bf16.msra.mxu0 %v5576_v20 }
 0x4f6   :  { %v8995_v39 = vadd.f32 %v3176_v22, %v8706_v37 }
 0x4f7   :  { %v3268_v24 = vpop.f32.mrf.mxu2 }
 0x4f8   :  { %v3269_v59 = vadd.f32 %v3268_v24, %v3219_v46  ;;  %v3221_v3 = vpop.f32.mrf.mxu0 }
 0x4fa   :  { %v8998_v43 = vadd.f32 %v3269_v59, %v8711_v16 }
 0x4fb   :  { %v3177_v30 = vpop.f32.mrf.mxu3 }
 0x4fc   :  { %v3178_v31 = vadd.f32 %v3177_v30, %v3128_v28 }
 0x4fd   :  { %v3131_v0 = vpop.f32.mrf.mxu1 }
 0x4fe   :  { %v9007_v37 = vadd.f32 %v3178_v31, %v8720_v55 }
 0x4ff   :  { %v3270_v62 = vpop.f32.mrf.mxu2 }
 0x500   :  { %v3271_v60 = vadd.f32 %v3270_v62, %v3221_v3  ;;  %3515 = vmatmul.bf16.gmra.mxu1 %v8234_v51  ;;  %5536 = vmatmul.msk.bf16.gmra.mxu3 %vm2381_vm2, %v8236_v21  ;;  %v3224_v16 = vpop.f32.mrf.mxu0 }
 0x502   :  { %v9013_v46 = vadd.f32 %v3271_v60, %v8723_v27 }
 0x503   :  { %v3180_v7 = vpop.f32.mrf.mxu3  ;;  %3608 = vmatmul.bf16.gmra.mxu0 %v8194_v19 }
 0x504   :  { %v3181_v22 = vadd.f32 %v3180_v7, %v3131_v0  ;;  %5543 = vmatmul.msk.bf16.gmra.mxu2 %vm2381_vm2, %v8196_v40 }
 0x505   :  { %v3133_v55 = vpop.f32.mrf.mxu1 }
 0x506   :  { %v9019_v28 = vadd.f32 %v3181_v22, %v8730_v61 }
 0x507   :  { %v3273_v24 = vpop.f32.mrf.mxu2 }
 0x508   :  { %v3274_v59 = vadd.f32 %v3273_v24, %v3224_v16  ;;  %v3226_v3 = vpop.f32.mrf.mxu0 }
 0x50a   :  { %v9022_v48 = vadd.f32 %v3274_v59, %v8747_v49 }
 0x50b   :  { %v3182_v34 = vpop.f32.mrf.mxu3 }
 0x50c   :  { %v3183_v27 = vadd.f32 %v3182_v34, %v3133_v55 }
 0x50d   :  { %v3481_v30 = vpop.f32.mrf.mxu1 }
 0x50e   :  { %v9025_v20 = vadd.f32 %v3183_v27, %v8762_v11 }
 0x50f   :  { %v3275_v31 = vpop.f32.mrf.mxu2 }
 0x510   :  { %v3276_v0 = vadd.f32 %v3275_v31, %v3226_v3  ;;  %3865 = vmatmul.bf16.vlgmr.msra.gmra.mxu1 %v7886_v10  ;;  %5665 = vmatmul.msk.bf16.vlgmr.msra.gmra.mxu3 %vm2381_vm2, %v7888_v9  ;;  %v3229_v61 = vpop.f32.mrf.mxu0 }
 0x512   :  { %v9031_v62 = vadd.f32 %v3276_v0, %v8764_v50 }
 0x513   :  { %v3530_v60 = vpop.f32.mrf.mxu3  ;;  %3613 = vmatmul.bf16.gmra.mxu0 %v8234_v51 }
 0x514   :  { %v3531_v49 = vadd.f32 %v3530_v60, %v3481_v30  ;;  %5544 = vmatmul.msk.bf16.gmra.mxu2 %vm2381_vm2, %v8236_v21 }
 0x515   :  { %v3483_v11 = vpop.f32.mrf.mxu1 }
 0x516   :  { %v9037_v16 = vadd.f32 %v3531_v49, %v8774_v36 }
 0x517   :  { %v3278_v7 = vpop.f32.mrf.mxu2 }
 0x518   :  { %v3279_v22 = vadd.f32 %v3278_v7, %v3229_v61  ;;  %v3231_v55 = vpop.f32.mrf.mxu0 }
 0x51a   :  { %v9040_v24 = vadd.f32 %v3279_v22, %v8776_v57 }
 0x51b   :  { %v3532_v59 = vpop.f32.mrf.mxu3 }
 0x51c   :  { %v3533_v50 = vadd.f32 %v3532_v59, %v3483_v11 }
 0x51d   :  { %v3486_v3 = vpop.f32.mrf.mxu1 }
 0x51e   :  { %v9043_v34 = vadd.f32 %v3533_v50, %v8792_v23 }
 0x51f   :  { %v3280_v27 = vpop.f32.mrf.mxu2 }
 0x520   :  { %v3281_v30 = vadd.f32 %v3280_v27, %v3231_v55  ;;  %3870 = vmatmul.bf16.gmra.mxu1 %v7938_v33  ;;  %5666 = vmatmul.msk.bf16.gmra.mxu3 %vm2381_vm2, %v7940_v5  ;;  %v3579_v36 = vpop.f32.mrf.mxu0 }
 0x522   :  { %v9049_v31 = vadd.f32 %v3281_v30, %v8794_v15 }
 0x523   :  { %v3535_v0 = vpop.f32.mrf.mxu3  ;;  %3963 = vmatmul.bf16.vlgmr.msra.gmra.mxu0 %v7886_v10 }
 0x524   :  { %v3536_v57 = vadd.f32 %v3535_v0, %v3486_v3  ;;  %5673 = vmatmul.msk.bf16.vlgmr.msra.gmra.mxu2 %vm2381_vm2, %v7888_v9 }
 0x525   :  { %v3488_v23 = vpop.f32.mrf.mxu1 }
 0x526   :  { %v9055_v61 = vadd.f32 %v3536_v57, %v8803_v32 }
 0x527   :  { %v3628_v60 = vpop.f32.mrf.mxu2 }
 0x528   :  { %v3629_v49 = vadd.f32 %v3628_v60, %v3579_v36  ;;  %v3581_v11 = vpop.f32.mrf.mxu0 }
 0x52a   :  { %v9058_v7 = vadd.f32 %v3629_v49, %v8818_v25 }
 0x52b   :  { %v3537_v22 = vpop.f32.mrf.mxu3 }
 0x52c   :  { %v3538_v15 = vadd.f32 %v3537_v22, %v3488_v23 }
 0x52d   :  { %v3491_v55 = vpop.f32.mrf.mxu1 }
 0x52e   :  { %v9061_v59 = vadd.f32 %v3538_v15, %v8833_v53 }
 0x52f   :  { %v3630_v10 = vpop.f32.mrf.mxu2 }
 0x530   :  { %v3631_v50 = vadd.f32 %v3630_v10, %v3581_v11  ;;  %3875 = vmatmul.bf16.gmra.mxu1 %v8002_v56  ;;  %5667 = vmatmul.msk.bf16.gmra.mxu3 %vm2381_vm2, %v8004_v29  ;;  %v3584_v9 = vpop.f32.mrf.mxu0 }
 0x532   :  { %v9067_v32 = vadd.f32 %v3631_v50, %v8839_v6 }
 0x533   :  { %v3540_v3 = vpop.f32.mrf.mxu3  ;;  %3968 = vmatmul.bf16.gmra.mxu0 %v7938_v33 }
 0x534   :  { %v3541_v25 = vadd.f32 %v3540_v3, %v3491_v55  ;;  %5674 = vmatmul.msk.bf16.gmra.mxu2 %vm2381_vm2, %v7940_v5 }
 0x535   :  { %v3493_v53 = vpop.f32.mrf.mxu1 }
 0x536   :  { %v9073_v27 = vadd.f32 %v3541_v25, %v8845_v54 }
 0x537   :  { %v3633_v30 = vpop.f32.mrf.mxu2 }
 0x538   :  { %v3634_v36 = vadd.f32 %v3633_v30, %v3584_v9  ;;  %v3586_v0 = vpop.f32.mrf.mxu0 }
 0x53a   :  { %v9076_v57 = vadd.f32 %v3634_v36, %v8848_v42 }
 0x53b   :  { %v3542_v23 = vpop.f32.mrf.mxu3 }
 0x53c   :  { %v3543_v6 = vadd.f32 %v3542_v23, %v3493_v53 }
 0x53d   :  { %v3496_v60 = vpop.f32.mrf.mxu1 }
 0x53e   :  { %v9079_v49 = vadd.f32 %v3543_v6, %v8863_v41 }
 0x53f   :  { %v3635_v33 = vpop.f32.mrf.mxu2 }
 0x540   :  { %v3636_v11 = vadd.f32 %v3635_v33, %v3586_v0  ;;  %3880 = vmatmul.bf16.gmra.mxu1 %v8072_v2  ;;  %5668 = vmatmul.msk.bf16.gmra.mxu3 %vm2381_vm2, %v8074_v47  ;;  %v3589_v5 = vpop.f32.mrf.mxu0 }
 0x542   :  { %v9085_v54 = vadd.f32 %v3636_v11, %v8869_v58 }
 0x543   :  { %v3545_v22 = vpop.f32.mrf.mxu3  ;;  %3973 = vmatmul.bf16.gmra.mxu0 %v8002_v56 }
 0x544   :  { %v3546_v42 = vadd.f32 %v3545_v22, %v3496_v60  ;;  %5675 = vmatmul.msk.bf16.gmra.mxu2 %vm2381_vm2, %v8004_v29 }
 0x545   :  { %v3498_v41 = vpop.f32.mrf.mxu1 }
 0x546   :  { %v9091_v15 = vadd.f32 %v3546_v42, %v8875_v12 }
 0x547   :  { %v3638_v55 = vpop.f32.mrf.mxu2 }
 0x548   :  { %v3639_v10 = vadd.f32 %v3638_v55, %v3589_v5  ;;  %v3591_v50 = vpop.f32.mrf.mxu0 }
 0x54a   :  { %v9094_v9 = vadd.f32 %v3639_v10, %v8890_v52 }
 0x54b   :  { %v3547_v3 = vpop.f32.mrf.mxu3 }
 0x54c   :  { %v3548_v58 = vadd.f32 %v3547_v3, %v3498_v41 }
 0x54d   :  { %v3501_v25 = vpop.f32.mrf.mxu1 }
 0x54e   :  { %v9097_v53 = vadd.f32 %v3548_v58, %v8905_v13 }
 0x54f   :  { %v3640_v56 = vpop.f32.mrf.mxu2 }
 0x550   :  { %v3641_v30 = vadd.f32 %v3640_v56, %v3591_v50  ;;  %3885 = vmatmul.bf16.gmra.mxu1 %v8124_v38  ;;  %5669 = vmatmul.msk.bf16.gmra.mxu3 %vm2381_vm2, %v8126_v8  ;;  %v3594_v29 = vpop.f32.mrf.mxu0 }
 0x552   :  { %v9103_v12 = vadd.f32 %v3641_v30, %v8911_v14 }
 0x553   :  { %v3550_v36 = vpop.f32.mrf.mxu3  ;;  %3978 = vmatmul.bf16.gmra.mxu0 %v8072_v2 }
 0x554   :  { %v3551_v52 = vadd.f32 %v3550_v36, %v3501_v25  ;;  %5676 = vmatmul.msk.bf16.gmra.mxu2 %vm2381_vm2, %v8074_v47 }
 0x555   :  { %v9108_v13 = vpop.f32.mrf.mxu1 }
 0x556   :  { %v9111_v0 = vadd.f32 %v3551_v52, %v8917_v35 }
 0x557   :  { %v3643_v23 = vpop.f32.mrf.mxu2 }
 0x558   :  { %v3644_v6 = vadd.f32 %v3643_v23, %v3594_v29  ;;  %v3596_v60 = vpop.f32.mrf.mxu0 }
 0x55a   :  { %v9114_v33 = vadd.f32 %v3644_v6, %v8920_v44 }
 0x55b   :  { %v9116_v14 = vpop.f32.mrf.mxu3 }
 0x55d   :  { %v3506_v11 = vpop.f32.mrf.mxu1 }
 0x55f   :  { %v3645_v5 = vpop.f32.mrf.mxu2 }
 0x560   :  { %v3646_v2 = vadd.f32 %v3645_v5, %v3596_v60  ;;  %3890 = vmatmul.bf16.gmra.mxu1 %v8194_v19  ;;  %5670 = vmatmul.msk.bf16.gmra.mxu3 %vm2381_vm2, %v8196_v40  ;;  %v3599_v47 = vpop.f32.mrf.mxu0 }
 0x562   :  { %v9122_v35 = vadd.f32 %v3646_v2, %v8941_v1 }
 0x563   :  { %v3555_v22 = vpop.f32.mrf.mxu3  ;;  %3983 = vmatmul.bf16.gmra.mxu0 %v8124_v38 }
 0x564   :  { %v3556_v42 = vadd.f32 %v3555_v22, %v3506_v11  ;;  %5677 = vmatmul.msk.bf16.gmra.mxu2 %vm2381_vm2, %v8126_v8 }
 0x565   :  { %v3508_v44 = vpop.f32.mrf.mxu1 }
 0x566   :  { %v9128_v41 = vadd.f32 %v3556_v42, %v8947_v18 }
 0x567   :  { %v3648_v55 = vpop.f32.mrf.mxu2 }
 0x568   :  { %v3649_v10 = vadd.f32 %v3648_v55, %v3599_v47  ;;  %v9130_v50 = vpop.f32.mrf.mxu0 }
 0x56a   :  { %v9133_v3 = vadd.f32 %v3649_v10, %v8968_v4 }
 0x56b   :  { %v3557_v1 = vpop.f32.mrf.mxu3 }
 0x56c   :  { %v3558_v58 = vadd.f32 %v3557_v1, %v3508_v44 }
 0x56d   :  { %v3511_v25 = vpop.f32.mrf.mxu1 }
 0x56e   :  { %v9136_v38 = vadd.f32 %v3558_v58, %v8983_v63 }
 0x56f   :  { %v9138_v56 = vpop.f32.mrf.mxu2 }
 0x570   :  { %3895 = vmatmul.bf16.gmra.mxu1 %v8234_v51  ;;  %5671 = vmatmul.msk.bf16.gmra.mxu3 %vm2381_vm2, %v8236_v21  ;;  %v3604_v8 = vpop.f32.mrf.mxu0 }
 0x573   :  { %v3560_v18 = vpop.f32.mrf.mxu3  ;;  %3988 = vmatmul.bf16.gmra.mxu0 %v8194_v19 }
 0x574   :  { %v3561_v30 = vadd.f32 %v3560_v18, %v3511_v25  ;;  %5678 = vmatmul.msk.bf16.gmra.mxu2 %vm2381_vm2, %v8196_v40  ;;  %v9803_v40 = vld [vmem:[#allocation43_spill] sm:$0xff] }
 0x575   :  { %v3513_v4 = vpop.f32.mrf.mxu1 }
 0x576   :  { %v9147_v29 = vadd.f32 %v3561_v30, %v8995_v39  ;;  %v6109_v30 = vld [vmem:[%s9369_s6 + $0xf8] sm:$0xff] }
 0x577   :  { %v3653_v63 = vpop.f32.mrf.mxu2  ;;  %4484 = vmatpush.bf16.msrb.mxu2 %v6109_v30 }
 0x578   :  { %v3654_v36 = vadd.f32 %v3653_v63, %v3604_v8  ;;  %v3606_v52 = vpop.f32.mrf.mxu0 }
 0x57a   :  { %v9150_v23 = vadd.f32 %v3654_v36, %v8998_v43  ;;  %v6083_v36 = vld [vmem:[%s9369_s6 + $0x28] sm:$0xff] }
 0x57b   :  { %v3562_v6 = vpop.f32.mrf.mxu3 }
 0x57c   :  { %v3563_v60 = vadd.f32 %v3562_v6, %v3513_v4 }
 0x57d   :  { %v3516_v11 = vpop.f32.mrf.mxu1 }
 0x57e   :  { %v9153_v5 = vadd.f32 %v3563_v60, %v9007_v37 }
 0x57f   :  { %v3655_v19 = vpop.f32.mrf.mxu2 }
 0x580   :  { %v3656_v2 = vadd.f32 %v3655_v19, %v3606_v52  ;;  %3900 = vmatmul.bf16.gmra.mxu1 %v8282_v26  ;;  %5672 = vmatmul.msk.bf16.gmra.mxu3 %vm2381_vm2, %v9803_v40  ;;  %v3609_v39 = vpop.f32.mrf.mxu0 }
 0x582   :  { %v9159_v47 = vadd.f32 %v3656_v2, %v9013_v46 }
 0x583   :  { %v3565_v22 = vpop.f32.mrf.mxu3  ;;  %3993 = vmatmul.bf16.gmra.mxu0 %v8234_v51  ;;  %v6085_v51 = vld [vmem:[%s9369_s6 + $0x38] sm:$0xff] }
 0x584   :  { %v3566_v43 = vadd.f32 %v3565_v22, %v3516_v11  ;;  %5679 = vmatmul.msk.bf16.gmra.mxu2 %vm2381_vm2, %v8236_v21  ;;  %4310 = vmatpush.bf16.msrb.mxu3 %v6085_v51  ;;  %v6082_v11 = vld [vmem:[%s9369_s6 + $0x20] sm:$0xff] }
 0x585   :  { %v3518_v37 = vpop.f32.mrf.mxu1 }
 0x586   :  { %v9165_v42 = vadd.f32 %v3566_v43, %v9019_v28 }
 0x587   :  { %v3658_v44 = vpop.f32.mrf.mxu2 }
 0x588   :  { %v3659_v55 = vadd.f32 %v3658_v44, %v3609_v39  ;;  %v3611_v10 = vpop.f32.mrf.mxu0  ;;  %v6081_v39 = vld [vmem:[%s9369_s6 + $0x18] sm:$0xff]  ;;  %v6080_v44 = vld [vmem:[%s9369_s6 + $0x10] sm:$0xff] }
 0x58a   :  { %v9168_v1 = vadd.f32 %v3659_v55, %v9022_v48  ;;  %v6084_v48 = vld [vmem:[%s9369_s6 + $0x30] sm:$0xff] }
 0x58b   :  { %v3567_v58 = vpop.f32.mrf.mxu3  ;;  %4311 = vmatpush.bf16.msrb.mxu3 %v6084_v48  ;;  %v6108_v55 = vld [vmem:[%s9369_s6 + $0xf0] sm:$0xff] }
 0x58c   :  { %v3568_v46 = vadd.f32 %v3567_v58, %v3518_v37  ;;  %4485 = vmatpush.bf16.msrb.mxu2 %v6108_v55 }
 0x58d   :  { %v3866_v25 = vpop.f32.mrf.mxu1 }
 0x58e   :  { %v9174_v8 = vadd.f32 %v3568_v46, %v9025_v20  ;;  %v6079_v46 = vld [vmem:[%s9369_s6 + $0x8] sm:$0xff] }
 0x58f   :  { %v3660_v21 = vpop.f32.mrf.mxu2  ;;  %4312 = vmatpush.bf16.msrb.mxu3 %v6083_v36 }
 0x590   :  { %v3661_v28 = vadd.f32 %v3660_v21, %v3611_v10  ;;  %v3614_v18 = vpop.f32.mrf.mxu0 }
 0x592   :  { %v9183_v4 = vadd.f32 %v3661_v28, %v9031_v62  ;;  %v6093_v62 = vld [vmem:[%s9369_s6 + $0x78] sm:$0xff] }
 0x593   :  { %v3915_v63 = vpop.f32.mrf.mxu3  ;;  %3998 = vmatmul.bf16.gmra.mxu0 %v8282_v26  ;;  %v6101_v26 = vld [vmem:[%s9369_s6 + $0xb8] sm:$0xff]  ;;  %4248 = vmatpush.bf16.msrb.mxu1 %v6093_v62 }
 0x594   :  { %5680 = vmatmul.msk.bf16.gmra.mxu2 %vm2381_vm2, %v9803_v40  ;;  %4396 = vmatpush.bf16.msrb.mxu0 %v6101_v26  ;;  %v3916_v51 = vadd.f32 %v3915_v63, %v3866_v25  ;;  %v6100_v25 = vld [vmem:[%s9369_s6 + $0xb0] sm:$0xff] }
 0x595   :  { %v3868_v20 = vpop.f32.mrf.mxu1  ;;  %4313 = vmatpush.bf16.msrb.mxu3 %v6082_v11 }
 0x596   :  { %v4053_v30 = vadd.f32 %v3916_v51, %v9037_v16  ;;  %v6090_v51 = vld [vmem:[%s9369_s6 + $0x60] sm:$0xff] }
 0x597   :  { %v3663_v52 = vpop.f32.mrf.mxu2 }
 0x598   :  { %v3664_v6 = vadd.f32 %v3663_v52, %v3614_v18  ;;  %v3616_v60 = vpop.f32.mrf.mxu0  ;;  %4397 = vmatpush.bf16.msrb.mxu0 %v6100_v25 }
 0x599   :  { %4314 = vmatpush.bf16.msrb.mxu3 %v6081_v39 }
 0x59a   :  { %v9201_v19 = vadd.f32 %v3664_v6, %v9040_v24  ;;  %v6092_v6 = vld [vmem:[%s9369_s6 + $0x70] sm:$0xff] }
 0x59b   :  { %v3917_v2 = vpop.f32.mrf.mxu3  ;;  %4249 = vmatpush.bf16.msrb.mxu1 %v6092_v6 }
 0x59c   :  { %v3918_v63 = vadd.f32 %v3917_v2, %v3868_v20  ;;  %v6091_v20 = vld [vmem:[%s9369_s6 + $0x68] sm:$0xff] }
 0x59d   :  { %v3871_v40 = vpop.f32.mrf.mxu1  ;;  %4315 = vmatpush.bf16.msrb.mxu3 %v6080_v44  ;;  %v9240_v44 = vld [vmem:[%s9368_s5] ss:$0 sm:$0xff] }
 0x59e   :  { %v4055_v11 = vadd.f32 %v3918_v63, %v9043_v34  ;;  %v6099_v34 = vld [vmem:[%s9369_s6 + $0xa8] sm:$0xff] }
 0x59f   :  { %v3665_v22 = vpop.f32.mrf.mxu2  ;;  %4250 = vmatpush.bf16.msrb.mxu1 %v6091_v20  ;;  %4398 = vmatpush.bf16.msrb.mxu0 %v6099_v34  ;;  %v6087_v20 = vld [vmem:[%s9369_s6 + $0x48] sm:$0xff] }
 0x5a0   :  { %v3666_v43 = vadd.f32 %v3665_v22, %v3616_v60  ;;  %v3964_v37 = vpop.f32.mrf.mxu0 }
 0x5a1   :  { %4316 = vmatpush.bf16.msrb.mxu3 %v6079_v46 }
 0x5a2   :  { %v9210_v24 = vadd.f32 %v3666_v43, %v9049_v31  ;;  %v6078_v31 = vld [vmem:[%s9369_s6] sm:$0xff] }
 0x5a3   :  { %v3920_v10 = vpop.f32.mrf.mxu3  ;;  %4251 = vmatpush.bf16.msrb.mxu1 %v6090_v51  ;;  %v6086_v51 = vld [vmem:[%s9369_s6 + $0x40] sm:$0xff] }
 0x5a4   :  { %v3921_v2 = vadd.f32 %v3920_v10, %v3871_v40 }
 0x5a5   :  { %v3873_v58 = vpop.f32.mrf.mxu1  ;;  %4317 = vmatpush.bf16.msrb.mxu3 %v6078_v31  ;;  %v6089_v31 = vld [vmem:[%s9369_s6 + $0x58] sm:$0xff] }
 0x5a6   :  { %v4057_v40 = vadd.f32 %v3921_v2, %v9055_v61 }
 0x5a7   :  { %v4013_v21 = vpop.f32.mrf.mxu2  ;;  %4252 = vmatpush.bf16.msrb.mxu1 %v6089_v31 }
 0x5a8   :  { %v4014_v28 = vadd.f32 %v4013_v21, %v3964_v37  ;;  %v3966_v18 = vpop.f32.mrf.mxu0 }
 0x5aa   :  { %v4054_v48 = vadd.f32 %v4014_v28, %v9058_v7  ;;  %v6107_v7 = vld [vmem:[%s9369_s6 + $0xe8] sm:$0xff] }
 0x5ab   :  { %v3922_v36 = vpop.f32.mrf.mxu3  ;;  %4486 = vmatpush.bf16.msrb.mxu2 %v6107_v7 }
 0x5ac   :  { %v4085_v52 = vmax.f32 %v4053_v30, %v4054_v48  ;;  %v3923_v30 = vadd.f32 %v3922_v36, %v3873_v58  ;;  %v6106_v58 = vld [vmem:[%s9369_s6 + $0xe0] sm:$0xff] }
 0x5ad   :  { %v3876_v60 = vpop.f32.mrf.mxu1 }
 0x5ae   :  { %v4105_v28 = vadd.f32 %v9240_v44, %v4085_v52  ;;  %v4059_v52 = vadd.f32 %v3923_v30, %v9061_v59 }
 0x5af   :  { %v4015_v62 = vpop.f32.mrf.mxu2  ;;  %4487 = vmatpush.bf16.msrb.mxu2 %v6106_v58 }
 0x5b0   :  { %v4016_v26 = vadd.f32 %v4015_v62, %v3966_v18  ;;  %v3969_v16 = vpop.f32.mrf.mxu0  ;;  %v4121_v25 = vmax.f32 %v4105_v28, 0.0 }
 0x5b2   :  { %v4056_v39 = vadd.f32 %v4016_v26, %v9067_v32 }
 0x5b3   :  { %v3925_v22 = vpop.f32.mrf.mxu3 }
 0x5b4   :  { %v4086_v43 = vmax.f32 %v4055_v11, %v4056_v39  ;;  %v3926_v2 = vadd.f32 %v3925_v22, %v3876_v60 }
 0x5b5   :  { %v3878_v32 = vpop.f32.mrf.mxu1 }
 0x5b6   :  { %v4106_v11 = vadd.f32 %v9240_v44, %v4086_v43  ;;  %v4061_v43 = vadd.f32 %v3926_v2, %v9073_v27  ;;  %v6105_v27 = vld [vmem:[%s9369_s6 + $0xd8] sm:$0xff] }
 0x5b7   :  { %v4018_v37 = vpop.f32.mrf.mxu2  ;;  %4488 = vmatpush.bf16.msrb.mxu2 %v6105_v27 }
 0x5b8   :  { %v4019_v55 = vadd.f32 %v4018_v37, %v3969_v16  ;;  %v3971_v46 = vpop.f32.mrf.mxu0 }
 0x5ba   :  { %v4058_v10 = vadd.f32 %v4019_v55, %v9076_v57  ;;  %v6088_v57 = vld [vmem:[%s9369_s6 + $0x50] sm:$0xff] }
 0x5bb   :  { %v3927_v21 = vpop.f32.mrf.mxu3  ;;  %4253 = vmatpush.bf16.msrb.mxu1 %v6088_v57 }
 0x5bc   :  { %v4087_v18 = vmax.f32 %v4057_v40, %v4058_v10  ;;  %v3928_v30 = vadd.f32 %v3927_v21, %v3878_v32 }
 0x5bd   :  { %v3881_v36 = vpop.f32.mrf.mxu1 }
 0x5be   :  { %v4107_v48 = vadd.f32 %v9240_v44, %v4087_v18  ;;  %v6098_v18 = vld [vmem:[%s9369_s6 + $0xa0] sm:$0xff] }
 0x5bf   :  { %v4020_v6 = vpop.f32.mrf.mxu2  ;;  %4254 = vmatpush.bf16.msrb.mxu1 %v6087_v20  ;;  %4399 = vmatpush.bf16.msrb.mxu0 %v6098_v18 }
 0x5c0   :  { %v4123_v63 = vmax.f32 %v4107_v48, 0.0  ;;  %v4021_v61 = vadd.f32 %v4020_v6, %v3971_v46  ;;  %v3974_v62 = vpop.f32.mrf.mxu0 }
 0x5c2   :  { %v4157_v26 = vmax.f32 %v4121_v25, %v4123_v63  ;;  %v4060_v16 = vadd.f32 %v4021_v61, %v9085_v54  ;;  %v4122_v54 = vmax.f32 %v4106_v11, 0.0 }
 0x5c3   :  { %v3930_v7 = vpop.f32.mrf.mxu3  ;;  %4255 = vmatpush.bf16.msrb.mxu1 %v6086_v51  ;;  %v6104_v51 = vld [vmem:[%s9369_s6 + $0xd0] sm:$0xff] }
 0x5c4   :  { %v4088_v39 = vmax.f32 %v4059_v52, %v4060_v16  ;;  %v3931_v57 = vadd.f32 %v3930_v7, %v3881_v36  ;;  %v6097_v16 = vld [vmem:[%s9369_s6 + $0x98] sm:$0xff]  ;;  %4489 = vmatpush.bf16.msrb.mxu2 %v6104_v51 }
 0x5c5   :  { %v3883_v31 = vpop.f32.mrf.mxu1  ;;  %4400 = vmatpush.bf16.msrb.mxu0 %v6097_v16 }
 0x5c6   :  { %v4108_v59 = vadd.f32 %v9240_v44, %v4088_v39  ;;  %v4065_v58 = vadd.f32 %v3931_v57, %v9091_v15  ;;  %v6096_v15 = vld [vmem:[%s9369_s6 + $0x90] sm:$0xff] }
 0x5c7   :  { %v4023_v37 = vpop.f32.mrf.mxu2 }
 0x5c8   :  { %v4124_v55 = vmax.f32 %v4108_v59, 0.0  ;;  %v4024_v46 = vadd.f32 %v4023_v37, %v3974_v62  ;;  %v3976_v34 = vpop.f32.mrf.mxu0 }
 0x5c9   :  { %4401 = vmatpush.bf16.msrb.mxu0 %v6096_v15 }
 0x5ca   :  { %v4158_v40 = vmax.f32 %v4122_v54, %v4124_v55  ;;  %v4062_v10 = vadd.f32 %v4024_v46, %v9094_v9  ;;  %v4063_v9 = vadd.f32 %v3928_v30, %v9079_v49 }
 0x5cb   :  { %v3932_v28 = vpop.f32.mrf.mxu3 }
 0x5cc   :  { %v4159_v60 = vpack.c.bf16 %v4158_v40, %v4157_v26  ;;  %v4089_v22 = vmax.f32 %v4061_v43, %v4062_v10  ;;  %v3933_v39 = vadd.f32 %v3932_v28, %v3883_v31  ;;  %v6095_v10 = vld [vmem:[%s9369_s6 + $0x88] sm:$0xff] }
 0x5cd   :  { %v3886_v52 = vpop.f32.mrf.mxu1  ;;  %4402 = vmatpush.bf16.msrb.mxu0 %v6095_v10 }
 0x5ce   :  { %4318 = vmatmul.bf16.vlgmr.msrb.gmra.mxu3 %v4159_v60  ;;  %v4109_v49 = vadd.f32 %v9240_v44, %v4089_v22 }
 0x5cf   :  { %v4025_v48 = vpop.f32.mrf.mxu2 }
 0x5d0   :  { %v4026_v6 = vadd.f32 %v4025_v48, %v3976_v34  ;;  %v3979_v25 = vpop.f32.mrf.mxu0  ;;  %v4125_v2 = vmax.f32 %v4109_v49, 0.0  ;;  %v6094_v48 = vld [vmem:[%s9369_s6 + $0x80] sm:$0xff] }
 0x5d1   :  { %4403 = vmatpush.bf16.msrb.mxu0 %v6094_v48 }
 0x5d2   :  { %v4064_v63 = vadd.f32 %v4026_v6, %v9103_v12 }
 0x5d3   :  { %v3935_v62 = vpop.f32.mrf.mxu3 }
 0x5d4   :  { %v4090_v61 = vmax.f32 %v4063_v9, %v4064_v63  ;;  %v3936_v28 = vadd.f32 %v3935_v62, %v3886_v52  ;;  %v3553_v63 = vadd.f32 %v9116_v14, %v9108_v13 }
 0x5d5   :  { %v3888_v55 = vpop.f32.mrf.mxu1 }
 0x5d6   :  { %v4110_v43 = vadd.f32 %v9240_v44, %v4090_v61  ;;  %v4069_v6 = vadd.f32 %v3936_v28, %v9111_v0  ;;  %v3651_v61 = vadd.f32 %v9138_v56, %v9130_v50 }
 0x5d7   :  { %v4028_v26 = vpop.f32.mrf.mxu2 }
 0x5d8   :  { %v4029_v32 = vadd.f32 %v4028_v26, %v3979_v25  ;;  %v3981_v21 = vpop.f32.mrf.mxu0  ;;  %v4126_v22 = vmax.f32 %v4110_v43, 0.0  ;;  %v3687_v0 = vadd.f32 %v3651_v61, %v8989_v17 }
 0x5da   :  { %v4066_v11 = vadd.f32 %v4029_v32, %v9114_v33  ;;  %v4067_v33 = vadd.f32 %v3933_v39, %v9097_v53  ;;  %v3686_v32 = vadd.f32 %v3553_v63, %v8935_v45 }
 0x5db   :  { %v3937_v36 = vpop.f32.mrf.mxu3 }
 0x5dc   :  { %v4091_v12 = vmax.f32 %v4065_v58, %v4066_v11  ;;  %v3938_v52 = vadd.f32 %v3937_v36, %v3888_v55 }
 0x5dd   :  { %v3891_v9 = vpop.f32.mrf.mxu1 }
 0x5de   :  { %v4111_v20 = vadd.f32 %v9240_v44, %v4091_v12  ;;  %v4071_v58 = vadd.f32 %v3938_v52, %v3686_v32 }
 0x5df   :  { %v4030_v7 = vpop.f32.mrf.mxu2 }
 0x5e0   :  { %v4127_v59 = vmax.f32 %v4111_v20, 0.0  ;;  %v4031_v37 = vadd.f32 %v4030_v7, %v3981_v21  ;;  %v3984_v54 = vpop.f32.mrf.mxu0 }
 0x5e2   :  { %v4180_v46 = vmax.f32 %v4125_v2, %v4127_v59  ;;  %v4068_v34 = vadd.f32 %v4031_v37, %v9122_v35 }
 0x5e3   :  { %v3940_v30 = vpop.f32.mrf.mxu3 }
 0x5e4   :  { %v4092_v40 = vmax.f32 %v4067_v33, %v4068_v34  ;;  %v3941_v11 = vadd.f32 %v3940_v30, %v3891_v9 }
 0x5e5   :  { %v3893_v56 = vpop.f32.mrf.mxu1 }
 0x5e6   :  { %v4112_v60 = vadd.f32 %v9240_v44, %v4092_v40  ;;  %v4073_v45 = vadd.f32 %v3941_v11, %v9128_v41 }
 0x5e7   :  { %v4033_v53 = vpop.f32.mrf.mxu2 }
 0x5e8   :  { %v4128_v35 = vmax.f32 %v4112_v60, 0.0  ;;  %v4034_v18 = vadd.f32 %v4033_v53, %v3984_v54  ;;  %v3986_v31 = vpop.f32.mrf.mxu0 }
 0x5ea   :  { %v4181_v25 = vmax.f32 %v4126_v22, %v4128_v35  ;;  %v4070_v27 = vadd.f32 %v4034_v18, %v9133_v3  ;;  %v6103_v3 = vld [vmem:[%s9369_s6 + $0xc8] sm:$0xff] }
 0x5eb   :  { %4490 = vmatpush.bf16.msrb.mxu2 %v6103_v3  ;;  %v3942_v14 = vpop.f32.mrf.mxu3 }
 0x5ec   :  { %v4182_v62 = vpack.c.bf16 %v4181_v25, %v4180_v46  ;;  %v4093_v57 = vmax.f32 %v4069_v6, %v4070_v27  ;;  %v3943_v2 = vadd.f32 %v3942_v14, %v3893_v56 }
 0x5ed   :  { %v3896_v37 = vpop.f32.mrf.mxu1 }
 0x5ee   :  { %4256 = vmatmul.bf16.vlgmr.msrb.gmra.mxu1 %v4182_v62  ;;  %v4113_v20 = vadd.f32 %v9240_v44, %v4093_v57  ;;  %v4075_v34 = vadd.f32 %v3943_v2, %v9136_v38 }
 0x5ef   :  { %v4035_v26 = vpop.f32.mrf.mxu2 }
 0x5f0   :  { %v4036_v21 = vadd.f32 %v4035_v26, %v3986_v31  ;;  %v3989_v16 = vpop.f32.mrf.mxu0  ;;  %v4129_v55 = vmax.f32 %v4113_v20, 0.0 }
 0x5f2   :  { %v4072_v13 = vadd.f32 %v4036_v21, %v3687_v0 }
 0x5f3   :  { %v3945_v7 = vpop.f32.mrf.mxu3 }
 0x5f4   :  { %v4094_v50 = vmax.f32 %v4071_v58, %v4072_v13  ;;  %v3946_v10 = vadd.f32 %v3945_v7, %v3896_v37  ;;  %v6113_v37 = vld [vmem:[%s9372_s8 + $0x18] sm:$0xff] }
 0x5f5   :  { %v3898_v38 = vpop.f32.mrf.mxu1  ;;  %4552 = vmatpush.bf16.msra.mxu1 %v6113_v37 }
 0x5f6   :  { %v4114_v43 = vadd.f32 %v9240_v44, %v4094_v50  ;;  %v4077_v31 = vadd.f32 %v3946_v10, %v9147_v29  ;;  %v6115_v10 = vld [vmem:[%s9370_s7] ss:$0 sm:$0xff] }
 0x5f7   :  { %v4038_v49 = vpop.f32.mrf.mxu2 }
 0x5f8   :  { %v4039_v12 = vadd.f32 %v4038_v49, %v3989_v16  ;;  %v3991_v39 = vpop.f32.mrf.mxu0  ;;  %v4130_v22 = vmax.f32 %v4114_v43, 0.0 }
 0x5fa   :  { %v4074_v17 = vadd.f32 %v4039_v12, %v9150_v23  ;;  %v6102_v23 = vld [vmem:[%s9369_s6 + $0xc0] sm:$0xff] }
 0x5fb   :  { %4491 = vmatpush.bf16.msrb.mxu2 %v6102_v23  ;;  %v3947_v60 = vpop.f32.mrf.mxu3 }
 0x5fc   :  { %v4095_v36 = vmax.f32 %v4073_v45, %v4074_v17  ;;  %v3948_v27 = vadd.f32 %v3947_v60, %v3898_v38 }
 0x5fd   :  { %v3901_v52 = vpop.f32.mrf.mxu1 }
 0x5fe   :  { %v4115_v59 = vadd.f32 %v9240_v44, %v4095_v36  ;;  %v4079_v62 = vadd.f32 %v3948_v27, %v9153_v5 }
 0x5ff   :  { %v4040_v54 = vpop.f32.mrf.mxu2 }
 0x600   :  { %v4131_v15 = vmax.f32 %v4115_v59, 0.0  ;;  %v4041_v33 = vadd.f32 %v4040_v54, %v3991_v39  ;;  %v3994_v46 = vpop.f32.mrf.mxu0 }
 0x602   :  { %v4328_v51 = vmax.f32 %v4129_v55, %v4131_v15  ;;  %v4076_v41 = vadd.f32 %v4041_v33, %v9159_v47 }
 0x603   :  { %v3950_v61 = vpop.f32.mrf.mxu3 }
 0x604   :  { %v4096_v40 = vmax.f32 %v4075_v34, %v4076_v41  ;;  %v3951_v0 = vadd.f32 %v3950_v61, %v3901_v52 }
 0x605   :  { %v3903_v14 = vpop.f32.mrf.mxu1 }
 0x606   :  { %v4116_v28 = vadd.f32 %v9240_v44, %v4096_v40 }
 0x607   :  { %v4043_v53 = vpop.f32.mrf.mxu2 }
 0x608   :  { %v4132_v35 = vmax.f32 %v4116_v28, 0.0  ;;  %v4044_v18 = vadd.f32 %v4043_v53, %v3994_v46  ;;  %v3996_v48 = vpop.f32.mrf.mxu0 }
 0x60a   :  { %v4329_v47 = vmax.f32 %v4130_v22, %v4132_v35  ;;  %v4078_v30 = vadd.f32 %v4044_v18, %v9168_v1  ;;  %v4081_v1 = vadd.f32 %v3951_v0, %v9165_v42 }
 0x60b   :  { %v3952_v3 = vpop.f32.mrf.mxu3 }
 0x60c   :  { %v4330_v6 = vpack.c.bf16 %v4329_v47, %v4328_v51  ;;  %v4097_v25 = vmax.f32 %v4077_v31, %v4078_v30  ;;  %v3953_v50 = vadd.f32 %v3952_v3, %v3903_v14  ;;  %v4562_v47 = vlaneseq }
 0x60e   :  { %4404 = vmatmul.bf16.vlgmr.msrb.gmra.mxu0 %v4330_v6  ;;  %v4117_v58 = vadd.f32 %v9240_v44, %v4097_v25  ;;  %v4083_v39 = vadd.f32 %v3953_v50, %v9174_v8  ;;  %v6112_v8 = vld [vmem:[%s9372_s8 + $0x10] sm:$0xff]  ;;  %v4563_v30 = vand.u32 127, %v4562_v47 }
 0x60f   :  { %v4045_v9 = vpop.f32.mrf.mxu2  ;;  %4553 = vmatpush.bf16.msra.mxu1 %v6112_v8 }
 0x610   :  { %v4046_v63 = vadd.f32 %v4045_v9, %v3996_v48  ;;  %v3999_v32 = vpop.f32.mrf.mxu0  ;;  %v4133_v11 = vmax.f32 %v4117_v58, 0.0  ;;  %v6116_v48 = vld [vmem:[%s9371_s9] ss:$0 sm:$0xff]  ;;  %vm4564_vm3 = vcmp.lt.s32.totalorder %v4563_v30, 10 }
 0x612   :  { %v4080_v57 = vadd.f32 %v4046_v63, %v9183_v4 }
 0x614   :  { %v4098_v26 = vmax.f32 %v4079_v62, %v4080_v57 }
 0x617   :  { %v4048_v29 = vpop.f32.mrf.mxu2 }
 0x618   :  { %v4049_v21 = vadd.f32 %v4048_v29, %v3999_v32  ;;  %v4001_v56 = vpop.f32.mrf.mxu0 }
 0x61a   :  { %v4082_v16 = vadd.f32 %v4049_v21, %v9201_v19  ;;  %v4118_v19 = vadd.f32 %v9240_v44, %v4098_v26 }
 0x61c   :  { %v4099_v13 = vmax.f32 %v4081_v1, %v4082_v16  ;;  %v4134_v36 = vmax.f32 %v4118_v19, 0.0 }
 0x61e   :  { %v4119_v5 = vadd.f32 %v9240_v44, %v4099_v13 }
 0x61f   :  { %v4050_v4 = vpop.f32.mrf.mxu2 }
 0x620   :  { %v4135_v49 = vmax.f32 %v4119_v5, 0.0  ;;  %v4051_v12 = vadd.f32 %v4050_v4, %v4001_v56 }
 0x622   :  { %v4416_v45 = vmax.f32 %v4133_v11, %v4135_v49  ;;  %v4084_v42 = vadd.f32 %v4051_v12, %v9210_v24  ;;  %v6111_v24 = vld [vmem:[%s9372_s8 + $0x8] sm:$0xff] }
 0x623   :  { %4554 = vmatpush.bf16.msra.mxu1 %v6111_v24 }
 0x624   :  { %v4100_v17 = vmax.f32 %v4083_v39, %v4084_v42 }
 0x626   :  { %v4120_v20 = vadd.f32 %v9240_v44, %v4100_v17  ;;  %v6110_v44 = vld [vmem:[%s9372_s8] sm:$0xff] }
 0x627   :  { %4555 = vmatpush.bf16.msra.mxu1 %v6110_v44 }
 0x628   :  { %v4136_v7 = vmax.f32 %v4120_v20, 0.0 }
 0x62a   :  { %v4417_v2 = vmax.f32 %v4134_v36, %v4136_v7 }
 0x62c   :  { %v4418_v59 = vpack.c.bf16 %v4417_v2, %v4416_v45 }
 0x62e   :  { %4492 = vmatmul.bf16.vlgmr.msrb.gmra.mxu2 %v4418_v59 }
 0x651   :  { %v4319_v55 = vpop.f32.mrf.mxu3 }
 0x659   :  { %v4321_v41 = vpop.f32.mrf.mxu3 }
 0x66b   :  { %v4257_v54 = vpop.f32.mrf.mxu1 }
 0x66c   :  { %v4320_v46 = vadd.f32 %v4319_v55, %v4257_v54 }
 0x673   :  { %v4259_v34 = vpop.f32.mrf.mxu1 }
 0x674   :  { %v4322_v43 = vadd.f32 %v4321_v41, %v4259_v34 }
 0x68b   :  { %v4405_v15 = vpop.f32.mrf.mxu0 }
 0x68c   :  { %v4410_v51 = vadd.f32 %v4405_v15, %v4320_v46 }
 0x693   :  { %v4407_v23 = vpop.f32.mrf.mxu0 }
 0x694   :  { %v4411_v28 = vadd.f32 %v4407_v23, %v4322_v43 }
 0x6b1   :  { %v4493_v33 = vpop.f32.mrf.mxu2 }
 0x6b2   :  { %v4498_v40 = vadd.f32 %v4493_v33, %v4410_v51 }
 0x6b4   :  { %v4504_v53 = vadd.f32 %v6115_v10, %v4498_v40 }
 0x6b6   :  { %v4506_v18 = vmax.f32 %v4504_v53, 0.0 }
 0x6b9   :  { %v4495_v60 = vpop.f32.mrf.mxu2 }
 0x6ba   :  { %v4499_v22 = vadd.f32 %v4495_v60, %v4411_v28 }
 0x6bc   :  { %v4505_v35 = vadd.f32 %v6115_v10, %v4499_v22 }
 0x6be   :  { %v4507_v38 = vmax.f32 %v4505_v35, 0.0 }
 0x6c0   :  { %v4508_v31 = vpack.c.bf16 %v4507_v38, %v4506_v18 }
 0x6c2   :  { %5873 = vmatmul.msk.bf16.vlgmr.msra.gmra.mxu1 %vm2381_vm2, %v4508_v31 }
 0x73f   :  { %v4557_v6 = vpop.f32.mrf.mxu1 }
 0x740   :  { %v4558_v25 = vadd.f32 %v6116_v48, %v4557_v6 }
 0x742   :  { %v4565_v27 = vsel %vm4564_vm3, %v4558_v25, -1e+30 }
 0x743   :  { %4567 = vmax.xlane.f32.xlu0 %v4565_v27 }
 0x747   :  { %v4559_v9 = vpop.f32.mrf.mxu1 }
 0x748   :  { %v4560_v63 = vadd.f32 %v6116_v48, %v4559_v9 }
 0x74a   :  { %v4566_v61 = vsel %vm4564_vm3, %v4560_v63, -1e+30 }
 0x74b   :  { %4569 = vmax.xlane.f32.xlu0 %v4566_v61 }
 0x7b6   :  { %v4568_v62 = vpop.xlane.xlu0 %4567 }
 0x7b7   :  { %v4571_v57 = vsub.f32 %v4565_v27, %v4568_v62 }
 0x7b9   :  { %v4573_v52 = vmul.f32 1.442695, %v4571_v57 }
 0x7bb   :  { %6117 = vpow2.f32 %v4573_v52 }
 0x7be   :  { %v4570_v26 = vpop.xlane.xlu0 %4569 }
 0x7bf   :  { %v4572_v32 = vsub.f32 %v4566_v61, %v4570_v26 }
 0x7c1   :  { %v6118_v0 = vpop.eup %6117  ;;  %v4575_v29 = vmul.f32 1.442695, %v4572_v32 }
 0x7c2   :  { %4577 = vadd.xlane.f32.xlu1 %v6118_v0 }
 0x7c3   :  { %6119 = vpow2.f32 %v4575_v29 }
 0x7c9   :  { %v6120_v21 = vpop.eup %6119 }
 0x7ca   :  { %4579 = vadd.xlane.f32.xlu1 %v6120_v21 }
 0x835   :  { %v4578_v1 = vpop.xlane.xlu1 %4577 }
 0x836   :  { %6121 = vlog2.f32 %v4578_v1 }
 0x83c   :  { %v6122_v16 = vpop.eup %6121 }
 0x83d   :  { %v4582_v3 = vmul.f32 0.6931472, %v6122_v16  ;;  %v4580_v58 = vpop.xlane.xlu1 %4579 }
 0x83e   :  { %6123 = vlog2.f32 %v4580_v58 }
 0x83f   :  { %v4585_v13 = vsub.f32 %v4571_v57, %v4582_v3 }
 0x841   :  { %4587 = vst [vmem:[%s9373_s10] sm:$0xff] %v4585_v13 }
 0x844   :  { %v6124_v14 = vpop.eup %6123 }
 0x845   :  { %v4584_v50 = vmul.f32 0.6931472, %v6124_v14 }
 0x847   :  { %v4586_v5 = vsub.f32 %v4572_v32, %v4584_v50 }
 0x849   :  { %4588 = vst [vmem:[%s9373_s10 + $0x8] sm:$0xff] %v4586_v5 }

</bundles_post_ra>
